<compile_context>
chip_gen: v7x
topology: tpu7x:2x2x1
jax: 0.10.0
libtpu: 0.0.40
codegen_flags: <defaults>
</compile_context>

<pallas_src>
import functools

import numpy as np
import jax
import jax.numpy as jnp
from jax.experimental import pallas as pl
from jax.experimental.pallas import tpu as pltpu

FILTER_SIZES = [1, 2, 3, 4, 5]
NUM_FILTERS = [128, 128, 128, 128, 128]


# ----------------------------- fused Pallas kernel ---------------------------

def _textcnn_fused_kernel(emb_ref, wconv_ref, bconv_ref, limits_ref,
                          w1_ref, b1_ref, w2_ref, b2_ref, out_ref,
                          *, b_tile, seq_len, e_pad, fmax):
    bt = b_tile * seq_len
    ntot = wconv_ref.shape[1]

    emb = emb_ref[...]                                       # (bt, e_pad) f32

    # ---- all conv banks as one accumulated matmul over the filter offset ----
    # conv[r, :] = sum_k emb[r + k, :] @ W[k*E:(k+1)*E, :]; rows whose window
    # wraps past a sequence end only feed positions the mask below removes.
    acc = jnp.dot(emb.astype(jnp.bfloat16), wconv_ref[0:e_pad, :],
                  preferred_element_type=jnp.float32)        # (bt, ntot)
    for k in range(1, fmax):
        shifted = pltpu.roll(emb, bt - k, axis=0)            # row r -> emb[r+k]
        acc += jnp.dot(shifted.astype(jnp.bfloat16),
                       wconv_ref[k * e_pad:(k + 1) * e_pad, :],
                       preferred_element_type=jnp.float32)

    # ---- bias + ReLU + in-kernel validity mask + max-pool over time ---------
    conv = acc.reshape(b_tile, seq_len, ntot) + bconv_ref[...]
    conv = jnp.maximum(conv, 0.0)
    t_idx = jax.lax.broadcasted_iota(jnp.int32, (b_tile, seq_len, ntot), 1)
    conv = jnp.where(t_idx < limits_ref[...], conv, 0.0)     # mask-then-max is
    feat = jnp.max(conv, axis=1)                             # safe: ReLU >= 0

    # ---- MLP head: Linear -> ReLU -> Linear ---------------------------------
    h = jnp.dot(feat.astype(jnp.bfloat16), w1_ref[...],
                preferred_element_type=jnp.float32) + b1_ref[...]
    h = jnp.maximum(h, 0.0)
    out_ref[...] = jnp.dot(h.astype(jnp.bfloat16), w2_ref[...],
                           preferred_element_type=jnp.float32) + b2_ref[...]


# ------------------------------ params & packing -----------------------------

def init_textcnn_params(key, vocab_size, embed_dim, num_label):
    feature_dim = sum(NUM_FILTERS)
    hidden = feature_dim // 2
    n_keys = 1 + 2 * len(FILTER_SIZES) + 4
    ks = list(jax.random.split(key, n_keys))
    params = {}
    # nn.Embedding weight (init parity note: normal * E^-0.5).
    params["embedding"] = (
        jax.random.normal(ks[0], (vocab_size, embed_dim), jnp.float32)
        * embed_dim ** -0.5
    )
    convs = []
    idx = 1
    for n, f in zip(NUM_FILTERS, FILTER_SIZES):
        fan_in = f * embed_dim
        bound = float(1.0 / np.sqrt(fan_in))
        w = jax.random.uniform(ks[idx], (fan_in, n), jnp.float32, -bound, bound)
        b = jax.random.uniform(ks[idx + 1], (1, n), jnp.float32, -bound, bound)
        convs.append((w, b))
        idx += 2
    params["convs"] = convs
    b1 = float(1.0 / np.sqrt(feature_dim))
    params["fc1_w"] = jax.random.uniform(ks[idx], (feature_dim, hidden), jnp.float32, -b1, b1)
    params["fc1_b"] = jax.random.uniform(ks[idx + 1], (1, hidden), jnp.float32, -b1, b1)
    b2 = float(1.0 / np.sqrt(hidden))
    params["fc2_w"] = jax.random.uniform(ks[idx + 2], (hidden, num_label), jnp.float32, -b2, b2)
    params["fc2_b"] = jax.random.uniform(ks[idx + 3], (1, num_label), jnp.float32, -b2, b2)
    return params


def pack_params(params, lane=128):
    """One-time packing: pad E to a lane-friendly width, stack/zero-pad conv
    banks into one (FMAX*E_pad, 640) weight, pre-cast matmul weights to bf16."""
    table = np.asarray(params["embedding"], np.float32)          # (V, E)
    V, E = table.shape
    e_pad = ((E + lane - 1) // lane) * lane
    fmax = max(FILTER_SIZES)
    ntot = sum(NUM_FILTERS)

    table_pad = np.zeros((V, e_pad), np.float32)
    table_pad[:, :E] = table

    wc = np.zeros((fmax * e_pad, ntot), np.float32)
    bc = np.zeros((1, ntot), np.float32)
    col = 0
    for (w, b), f, n in zip(params["convs"], FILTER_SIZES, NUM_FILTERS):
        w = np.asarray(w, np.float32).reshape(f, E, n)           # row k*E+e -> [k,e]
        for k in range(f):
            wc[k * e_pad:k * e_pad + E, col:col + n] = w[k]
        bc[:, col:col + n] = np.asarray(b, np.float32)
        col += n

    return {
        "table": jnp.asarray(table_pad),                  # (V, E_pad) f32
        "wconv": jnp.asarray(wc, jnp.bfloat16),           # (FMAX*E_pad, NTOT)
        "bconv": jnp.asarray(bc),                         # (1, NTOT) f32
        "w1": params["fc1_w"].astype(jnp.bfloat16),       # (NTOT, H)
        "b1": params["fc1_b"],                            # (1, H) f32
        "w2": params["fc2_w"].astype(jnp.bfloat16),       # (H, C)
        "b2": params["fc2_b"],                            # (1, C) f32
    }


# ------------------------------ forward wrapper -------------------------------

@functools.partial(jax.jit, static_argnames=("b_tile",))
def textcnn_forward(packed, token_ids, b_tile=8):
    # TODO(synk): the 3-D soft-input embedding path (x @ embedding.weight) of
    # EmbeddingLayer is not exercised here (2-D integer tokens only).
    B, T = token_ids.shape
    _, e_pad = packed["table"].shape
    ntot = packed["wconv"].shape[1]
    fmax = packed["wconv"].shape[0] // e_pad
    H = packed["w1"].shape[1]
    C = packed["w2"].shape[1]
    assert T >= fmax, "sequence length must be >= max filter size"
    assert T % 8 == 0, "pad the sequence length to a multiple of 8 (sublanes)"

    # ---- embedding gather outside the kernel (cheap XLA gather, bf16-free) ---
    b_pad = -(-B // b_tile) * b_tile
    ids = token_ids.astype(jnp.int32)
    if b_pad != B:
        ids = jnp.pad(ids, ((0, b_pad - B), (0, 0)))      # pad rows use token 0
    emb = jnp.take(packed["table"], ids, axis=0).reshape(b_pad * T, e_pad)

    # Per-filter valid pool length T - f + 1, one int32 per output column.
    limits = np.repeat(
        np.array([T - f + 1 for f in FILTER_SIZES], np.int32),
        np.array(NUM_FILTERS, np.int64)).reshape(1, ntot)
    limits = jnp.asarray(limits)

    flops = int(2 * b_pad * T * fmax * e_pad * ntot
                + 2 * b_pad * (ntot * H + H * C))
    bytes_accessed = int(
        emb.size * 4 + packed["wconv"].size * 2 + packed["bconv"].size * 4
        + limits.size * 4 + packed["w1"].size * 2 + packed["b1"].size * 4
        + packed["w2"].size * 2 + packed["b2"].size * 4 + b_pad * C * 4)

    kernel = functools.partial(_textcnn_fused_kernel, b_tile=b_tile,
                               seq_len=T, e_pad=e_pad, fmax=fmax)

    # TODO(synk): for large B*T, grow the batch tile so the conv matmul M dim
    # reaches ~256 rows (v6e/v7x), and re-derive the tile against v7x's 64 MiB
    # VMEM (raise vmem_limit_bytes with headroom if needed).
    out = pl.pallas_call(
        kernel,
        out_shape=jax.ShapeDtypeStruct((b_pad, C), jnp.float32),
        grid=(b_pad // b_tile,),
        in_specs=[
            pl.BlockSpec((b_tile * T, e_pad), lambda i: (i, 0)),   # embeddings
            pl.BlockSpec((fmax * e_pad, ntot), lambda i: (0, 0)),  # stacked conv W
            pl.BlockSpec((1, ntot), lambda i: (0, 0)),             # stacked conv b
            pl.BlockSpec((1, ntot), lambda i: (0, 0)),             # pool limits
            pl.BlockSpec((ntot, H), lambda i: (0, 0)),             # fc1 W
            pl.BlockSpec((1, H), lambda i: (0, 0)),                # fc1 b
            pl.BlockSpec((H, C), lambda i: (0, 0)),                # fc2 W
            pl.BlockSpec((1, C), lambda i: (0, 0)),                # fc2 b
        ],
        out_specs=pl.BlockSpec((b_tile, C), lambda i: (i, 0)),
        compiler_params=pltpu.CompilerParams(
            dimension_semantics=("parallel",)),
        cost_estimate=pl.CostEstimate(flops=flops, transcendentals=0,
                                      bytes_accessed=bytes_accessed),
    )(emb, packed["wconv"], packed["bconv"], limits,
      packed["w1"], packed["b1"], packed["w2"], packed["b2"])
    return out[:B]


# ------------------------------ pure-JAX reference ----------------------------

def textcnn_reference(params, token_ids):
    """f32 reference with the PyTorch forward semantics (for validation)."""
    emb = params["embedding"][token_ids]                      # (B, T, E)
    B, T, E = emb.shape
    pools = []
    for (w, b), f in zip(params["convs"], FILTER_SIZES):
        wk = w.reshape(f, E, -1)                              # (f, E, n)
        L = T - f + 1
        acc = jnp.zeros((B, L, wk.shape[-1]), jnp.float32)
        for k in range(f):
            acc = acc + jnp.einsum("ble,en->bln", emb[:, k:k + L, :], wk[k])
        acc = jax.nn.relu(acc + b)
        pools.append(jnp.max(acc, axis=1))                    # (B, n)
    feat = jnp.concatenate(pools, axis=1)                     # (B, 640)
    h = jax.nn.relu(feat @ params["fc1_w"] + params["fc1_b"])
    return h @ params["fc2_w"] + params["fc2_b"]


if __name__ == "__main__":
    key = jax.random.PRNGKey(0)
    k_param, k_tok = jax.random.split(key)

    B, T = 12, 16            # batch (padded to 16 -> 2 grid steps), seq length
    embed_dim = 32
    vocab_size = 50
    num_label = 4

    params = init_textcnn_params(k_param, vocab_size, embed_dim, num_label)
    packed = pack_params(params)
    tokens = jax.random.randint(k_tok, (B, T), 0, vocab_size, dtype=jnp.int32)

    logits = jax.block_until_ready(textcnn_forward(packed, tokens))
    assert logits.shape == (B, num_label)
    assert bool(jnp.all(jnp.isfinite(logits)))

    ref = textcnn_reference(params, tokens)
    np.testing.assert_allclose(np.asarray(logits), np.asarray(ref),
                               rtol=5e-2, atol=5e-2)
    print("KERNEL_OK")
</pallas_src>

<mosaic_0001>
module attributes {stable_mosaic.version = 11 : i64} {
  func.func @_textcnn_fused_kernel(%arg0: i32, %arg1: memref<128x128xf32, #tpu.memory_space<vmem>>, %arg2: memref<640x640xbf16, #tpu.memory_space<vmem>>, %arg3: memref<1x640xf32, #tpu.memory_space<vmem>>, %arg4: memref<1x640xi32, #tpu.memory_space<vmem>>, %arg5: memref<640x320xbf16, #tpu.memory_space<vmem>>, %arg6: memref<1x320xf32, #tpu.memory_space<vmem>>, %arg7: memref<320x4xbf16, #tpu.memory_space<vmem>>, %arg8: memref<1x4xf32, #tpu.memory_space<vmem>>, %arg9: memref<8x4xf32, #tpu.memory_space<vmem>>) attributes {dimension_semantics = [#tpu.dimension_semantics<parallel>], iteration_bounds = array<i64: 2>, scalar_prefetch = 0 : i64, scratch_operands = 0 : i64, tpu.core_type = #tpu.core_type<tc>, window_params = [{transform_indices = @transform_0, window_bounds = array<i64: 128, 128>}, {pipeline_mode = #tpu.pipeline_mode<synchronous>, transform_indices = @transform_1, window_bounds = array<i64: 640, 640>}, {pipeline_mode = #tpu.pipeline_mode<synchronous>, transform_indices = @transform_2, window_bounds = array<i64: 1, 640>}, {pipeline_mode = #tpu.pipeline_mode<synchronous>, transform_indices = @transform_3, window_bounds = array<i64: 1, 640>}, {pipeline_mode = #tpu.pipeline_mode<synchronous>, transform_indices = @transform_4, window_bounds = array<i64: 640, 320>}, {pipeline_mode = #tpu.pipeline_mode<synchronous>, transform_indices = @transform_5, window_bounds = array<i64: 1, 320>}, {pipeline_mode = #tpu.pipeline_mode<synchronous>, transform_indices = @transform_6, window_bounds = array<i64: 320, 4>}, {pipeline_mode = #tpu.pipeline_mode<synchronous>, transform_indices = @transform_7, window_bounds = array<i64: 1, 4>}, {transform_indices = @transform_8, window_bounds = array<i64: 8, 4>}]} {
    %c0 = arith.constant 0 : index
    %c0_0 = arith.constant 0 : index
    %0 = vector.load %arg1[%c0, %c0_0] : memref<128x128xf32, #tpu.memory_space<vmem>>, vector<128x128xf32>
    %1 = arith.truncf %0 : vector<128x128xf32> to vector<128x128xbf16>
    %c0_1 = arith.constant 0 : index
    %c0_2 = arith.constant 0 : index
    %2 = vector.load %arg2[%c0_1, %c0_2] : memref<640x640xbf16, #tpu.memory_space<vmem>>, vector<128x640xbf16>
    %cst = arith.constant dense<0.000000e+00> : vector<128x640xf32>
    %3 = tpu.matmul %1, %2, %cst {dimension_numbers = #tpu.dot_dimension_numbers<[1], [0], [0], [1], [0, 0, 1, 1], [], []>} : vector<128x128xbf16>, vector<128x640xbf16>, vector<128x640xf32> -> vector<128x640xf32>
    %c127_i32 = arith.constant 127 : i32
    %4 = tpu.dynamic_rotate %0 by %c127_i32 dim 0 : vector<128x128xf32>, i32 -> vector<128x128xf32>
    %5 = arith.truncf %4 : vector<128x128xf32> to vector<128x128xbf16>
    %c128 = arith.constant 128 : index
    %c0_3 = arith.constant 0 : index
    %6 = vector.load %arg2[%c128, %c0_3] : memref<640x640xbf16, #tpu.memory_space<vmem>>, vector<128x640xbf16>
    %cst_4 = arith.constant dense<0.000000e+00> : vector<128x640xf32>
    %7 = tpu.matmul %5, %6, %cst_4 {dimension_numbers = #tpu.dot_dimension_numbers<[1], [0], [0], [1], [0, 0, 1, 1], [], []>} : vector<128x128xbf16>, vector<128x640xbf16>, vector<128x640xf32> -> vector<128x640xf32>
    %8 = arith.addf %3, %7 : vector<128x640xf32>
    %c126_i32 = arith.constant 126 : i32
    %9 = tpu.dynamic_rotate %0 by %c126_i32 dim 0 : vector<128x128xf32>, i32 -> vector<128x128xf32>
    %10 = arith.truncf %9 : vector<128x128xf32> to vector<128x128xbf16>
    %c256 = arith.constant 256 : index
    %c0_5 = arith.constant 0 : index
    %11 = vector.load %arg2[%c256, %c0_5] : memref<640x640xbf16, #tpu.memory_space<vmem>>, vector<128x640xbf16>
    %cst_6 = arith.constant dense<0.000000e+00> : vector<128x640xf32>
    %12 = tpu.matmul %10, %11, %cst_6 {dimension_numbers = #tpu.dot_dimension_numbers<[1], [0], [0], [1], [0, 0, 1, 1], [], []>} : vector<128x128xbf16>, vector<128x640xbf16>, vector<128x640xf32> -> vector<128x640xf32>
    %13 = arith.addf %8, %12 : vector<128x640xf32>
    %c125_i32 = arith.constant 125 : i32
    %14 = tpu.dynamic_rotate %0 by %c125_i32 dim 0 : vector<128x128xf32>, i32 -> vector<128x128xf32>
    %15 = arith.truncf %14 : vector<128x128xf32> to vector<128x128xbf16>
    %c384 = arith.constant 384 : index
    %c0_7 = arith.constant 0 : index
    %16 = vector.load %arg2[%c384, %c0_7] : memref<640x640xbf16, #tpu.memory_space<vmem>>, vector<128x640xbf16>
    %cst_8 = arith.constant dense<0.000000e+00> : vector<128x640xf32>
    %17 = tpu.matmul %15, %16, %cst_8 {dimension_numbers = #tpu.dot_dimension_numbers<[1], [0], [0], [1], [0, 0, 1, 1], [], []>} : vector<128x128xbf16>, vector<128x640xbf16>, vector<128x640xf32> -> vector<128x640xf32>
    %18 = arith.addf %13, %17 : vector<128x640xf32>
    %c124_i32 = arith.constant 124 : i32
    %19 = tpu.dynamic_rotate %0 by %c124_i32 dim 0 : vector<128x128xf32>, i32 -> vector<128x128xf32>
    %20 = arith.truncf %19 : vector<128x128xf32> to vector<128x128xbf16>
    %c512 = arith.constant 512 : index
    %c0_9 = arith.constant 0 : index
    %21 = vector.load %arg2[%c512, %c0_9] : memref<640x640xbf16, #tpu.memory_space<vmem>>, vector<128x640xbf16>
    %cst_10 = arith.constant dense<0.000000e+00> : vector<128x640xf32>
    %22 = tpu.matmul %20, %21, %cst_10 {dimension_numbers = #tpu.dot_dimension_numbers<[1], [0], [0], [1], [0, 0, 1, 1], [], []>} : vector<128x128xbf16>, vector<128x640xbf16>, vector<128x640xf32> -> vector<128x640xf32>
    %23 = arith.addf %18, %22 : vector<128x640xf32>
    %24 = vector.shape_cast %23 : vector<128x640xf32> to vector<8x16x640xf32>
    %c0_11 = arith.constant 0 : index
    %c0_12 = arith.constant 0 : index
    %25 = vector.load %arg3[%c0_11, %c0_12] : memref<1x640xf32, #tpu.memory_space<vmem>>, vector<1x640xf32>
    %26 = vector.shape_cast %25 : vector<1x640xf32> to vector<1x1x640xf32>
    %27 = vector.broadcast %26 : vector<1x1x640xf32> to vector<8x16x640xf32>
    %28 = arith.addf %24, %27 : vector<8x16x640xf32>
    %cst_13 = arith.constant 0.000000e+00 : f32
    %29 = vector.broadcast %cst_13 : f32 to vector<8x16x640xf32>
    %30 = arith.maximumf %28, %29 : vector<8x16x640xf32>
    %31 = tpu.iota {dimensions = array<i32: 1>} : vector<8x16x640xi32>
    %c0_14 = arith.constant 0 : index
    %c0_15 = arith.constant 0 : index
    %32 = vector.load %arg4[%c0_14, %c0_15] : memref<1x640xi32, #tpu.memory_space<vmem>>, vector<1x640xi32>
    %33 = vector.shape_cast %32 : vector<1x640xi32> to vector<1x1x640xi32>
    %34 = vector.broadcast %33 : vector<1x1x640xi32> to vector<8x16x640xi32>
    %35 = arith.cmpi slt, %31, %34 : vector<8x16x640xi32>
    %cst_16 = arith.constant 0.000000e+00 : f32
    %36 = vector.broadcast %cst_16 : f32 to vector<8x16x640xf32>
    %37 = arith.select %35, %30, %36 : vector<8x16x640xi1>, vector<8x16x640xf32>
    %cst_17 = arith.constant dense<0xFF800000> : vector<8x640xf32>
    %38 = vector.multi_reduction <maximumf>, %37, %cst_17 [1] : vector<8x16x640xf32> to vector<8x640xf32>
    %39 = arith.truncf %38 : vector<8x640xf32> to vector<8x640xbf16>
    %c0_18 = arith.constant 0 : index
    %c0_19 = arith.constant 0 : index
    %40 = vector.load %arg5[%c0_18, %c0_19] : memref<640x320xbf16, #tpu.memory_space<vmem>>, vector<640x320xbf16>
    %cst_20 = arith.constant dense<0.000000e+00> : vector<8x320xf32>
    %41 = tpu.matmul %39, %40, %cst_20 {dimension_numbers = #tpu.dot_dimension_numbers<[1], [0], [0], [1], [0, 0, 1, 1], [], []>} : vector<8x640xbf16>, vector<640x320xbf16>, vector<8x320xf32> -> vector<8x320xf32>
    %c0_21 = arith.constant 0 : index
    %c0_22 = arith.constant 0 : index
    %42 = vector.load %arg6[%c0_21, %c0_22] : memref<1x320xf32, #tpu.memory_space<vmem>>, vector<1x320xf32>
    %43 = vector.broadcast %42 : vector<1x320xf32> to vector<8x320xf32>
    %44 = arith.addf %41, %43 : vector<8x320xf32>
    %cst_23 = arith.constant 0.000000e+00 : f32
    %45 = vector.broadcast %cst_23 : f32 to vector<8x320xf32>
    %46 = arith.maximumf %44, %45 : vector<8x320xf32>
    %47 = arith.truncf %46 : vector<8x320xf32> to vector<8x320xbf16>
    %c0_24 = arith.constant 0 : index
    %c0_25 = arith.constant 0 : index
    %48 = vector.load %arg7[%c0_24, %c0_25] : memref<320x4xbf16, #tpu.memory_space<vmem>>, vector<320x4xbf16>
    %cst_26 = arith.constant dense<0.000000e+00> : vector<8x4xf32>
    %49 = tpu.matmul %47, %48, %cst_26 {dimension_numbers = #tpu.dot_dimension_numbers<[1], [0], [0], [1], [0, 0, 1, 1], [], []>} : vector<8x320xbf16>, vector<320x4xbf16>, vector<8x4xf32> -> vector<8x4xf32>
    %c0_27 = arith.constant 0 : index
    %c0_28 = arith.constant 0 : index
    %50 = vector.load %arg8[%c0_27, %c0_28] : memref<1x4xf32, #tpu.memory_space<vmem>>, vector<1x4xf32>
    %51 = vector.broadcast %50 : vector<1x4xf32> to vector<8x4xf32>
    %52 = arith.addf %49, %51 : vector<8x4xf32>
    %c0_29 = arith.constant 0 : index
    %c0_30 = arith.constant 0 : index
    %53 = vector.load %arg9[%c0_29, %c0_30] : memref<8x4xf32, #tpu.memory_space<vmem>>, vector<8x4xf32>
    tpu.vector_store %arg9[%c0_29, %c0_30], %52 {strides = array<i32>} : memref<8x4xf32, #tpu.memory_space<vmem>>, vector<8x4xf32>,
    return
  }
  func.func @transform_0(%arg0: i32) -> (i32, i32) {
    %c0_i32 = arith.constant 0 : i32
    %c0_i32_0 = arith.constant 0 : i32
    return %arg0, %c0_i32 : i32, i32
  }
  func.func @transform_1(%arg0: i32) -> (i32, i32) {
    %c0_i32 = arith.constant 0 : i32
    %c0_i32_0 = arith.constant 0 : i32
    %c0_i32_1 = arith.constant 0 : i32
    return %c0_i32, %c0_i32_0 : i32, i32
  }
  func.func @transform_2(%arg0: i32) -> (i32, i32) {
    %c0_i32 = arith.constant 0 : i32
    %c0_i32_0 = arith.constant 0 : i32
    %c0_i32_1 = arith.constant 0 : i32
    return %c0_i32, %c0_i32_0 : i32, i32
  }
  func.func @transform_3(%arg0: i32) -> (i32, i32) {
    %c0_i32 = arith.constant 0 : i32
    %c0_i32_0 = arith.constant 0 : i32
    %c0_i32_1 = arith.constant 0 : i32
    return %c0_i32, %c0_i32_0 : i32, i32
  }
  func.func @transform_4(%arg0: i32) -> (i32, i32) {
    %c0_i32 = arith.constant 0 : i32
    %c0_i32_0 = arith.constant 0 : i32
    %c0_i32_1 = arith.constant 0 : i32
    return %c0_i32, %c0_i32_0 : i32, i32
  }
  func.func @transform_5(%arg0: i32) -> (i32, i32) {
    %c0_i32 = arith.constant 0 : i32
    %c0_i32_0 = arith.constant 0 : i32
    %c0_i32_1 = arith.constant 0 : i32
    return %c0_i32, %c0_i32_0 : i32, i32
  }
  func.func @transform_6(%arg0: i32) -> (i32, i32) {
    %c0_i32 = arith.constant 0 : i32
    %c0_i32_0 = arith.constant 0 : i32
    %c0_i32_1 = arith.constant 0 : i32
    return %c0_i32, %c0_i32_0 : i32, i32
  }
  func.func @transform_7(%arg0: i32) -> (i32, i32) {
    %c0_i32 = arith.constant 0 : i32
    %c0_i32_0 = arith.constant 0 : i32
    %c0_i32_1 = arith.constant 0 : i32
    return %c0_i32, %c0_i32_0 : i32, i32
  }
  func.func @transform_8(%arg0: i32) -> (i32, i32) {
    %c0_i32 = arith.constant 0 : i32
    %c0_i32_0 = arith.constant 0 : i32
    return %arg0, %c0_i32 : i32, i32
  }
}

</mosaic_0001>

<bundles_post_ra>
// kernel: textcnn_forward.1
= control target key start
LH: loop header
LB: loop body
LE: loop exit
PB: predicated region body
PF: predicated region fallthrough
CT: control target
= control target key end

     0   :  { %s7334_s27 = smov 0   ;;  %s9425_s0 = inlined_call_operand.vmem [shape: f32[256,128], index: 0, kind: input, shape index: {}]   ;;  %s9426_s1 = inlined_call_operand.vmem [shape: bf16[640,640], index: 1, kind: input, shape index: {}]   ;;  %s9427_s2 = inlined_call_operand.vmem [shape: f32[1,640], index: 2, kind: input, shape index: {}]   ;;  %s9428_s3 = inlined_call_operand.vmem [shape: s32[1,640], index: 3, kind: input, shape index: {}]   ;;  %s9429_s4 = inlined_call_operand.vmem [shape: bf16[640,320], index: 4, kind: input, shape index: {}]   ;;  %s9430_s5 = inlined_call_operand.vmem [shape: f32[1,320], index: 5, kind: input, shape index: {}]   ;;  %s9431_s6 = inlined_call_operand.vmem [shape: bf16[320,4], index: 6, kind: input, shape index: {}]   ;;  %s9432_s7 = inlined_call_operand.vmem [shape: f32[1,4], index: 7, kind: input, shape index: {}]   ;;  %s9433_s8 = inlined_call_operand.vmem [shape: f32[16,4], index: 8, kind: output, shape index: {}]  }
   0x1 LB: > { %s7340_s28 = sadd.s32 4294967295, %s7284_s27   ;;  %p5759_p0 = scmp.ge.s32.totalorder %s7284_s27, 1  ;;  %s7284_s27 = sphi %s7334_s27, %s18_s27  }
   0x2   : > { %p263_p1 = scmp.lt.s32.totalorder %s7284_s27, 3 }
   0x4   : > { %p264_p2 = pnand %p5759_p0, %p263_p1 }
   0x5   : > { %v6800_v0 = vld [vmem:[%s9426_s1 + $0x144] ss:$20 sps:$4 sm:$0xff] (!%p264_p2)   ;;  %v6802_v1 = vld [vmem:[%s9426_s1 + $0x14c] ss:$20 sps:$4 sm:$0xff] (!%p264_p2)   ;;  %v7286_v2 = vmov (!%p264_p2), 0   ;;  %s5760_s17 = sshll.u32 (!%p264_p2), %s7340_s28, 4  ;;  %v395_v23 = vlaneseq (!%p264_p2) }
   0x6   : > { %267 = sbr.rel (%p264_p2) target bundleno = 1321 (0x529), region = 52  ;;  %710 = vmatprep.mubr.bf16.mxu0 (!%p264_p2), %v7286_v2  ;;  %823 = vmatprep.mubr.bf16.mxu1 (!%p264_p2), %v7286_v2  ;;  %v6804_v3 = vld [vmem:[%s9426_s1 + $0x140] ss:$20 sps:$4 sm:$0xff] (!%p264_p2)   ;;  %v6805_v4 = vld [vmem:[%s9426_s1 + $0x148] ss:$20 sps:$4 sm:$0xff] (!%p264_p2)   ;;  %p297_p3 = scmp.lt.s32.totalorder (!%p264_p2), %s5760_s17, 31 }
   0x7   : > { %678 = vmatprep.subr.bf16.mxu0 (!%p264_p2), %v6800_v0  ;;  %791 = vmatprep.subr.bf16.mxu1 (!%p264_p2), %v6802_v1  ;;  %v6806_v5 = vld [vmem:[%s9426_s1 + $0x16c] ss:$20 sps:$4 sm:$0xff] (!%p264_p2)   ;;  %v6808_v6 = vld [vmem:[%s9426_s1 + $0x174] ss:$20 sps:$4 sm:$0xff] (!%p264_p2)   ;;  %v6811_v8 = vld [vmem:[%s9426_s1 + $0x170] ss:$20 sps:$4 sm:$0xff] (!%p264_p2)  }
   0x8   : > { %679 = vmatpush1.bf16.msra.mxu0 (!%p264_p2), %v6804_v3  ;;  %792 = vmatpush1.bf16.msra.mxu1 (!%p264_p2), %v6805_v4  ;;  %v6810_v7 = vld [vmem:[%s9426_s1 + $0x168] ss:$20 sps:$4 sm:$0xff] (!%p264_p2)   ;;  %v6816_v11 = vld [vmem:[%s9426_s1 + $0x190] ss:$20 sps:$4 sm:$0xff] (!%p264_p2)   ;;  %v6817_v12 = vld [vmem:[%s9426_s1 + $0x198] ss:$20 sps:$4 sm:$0xff] (!%p264_p2)  }
   0x9   : > { %680 = vmatprep.subr.bf16.mxu0 (!%p264_p2), %v6806_v5  ;;  %793 = vmatprep.subr.bf16.mxu1 (!%p264_p2), %v6808_v6  ;;  %v6812_v9 = vld [vmem:[%s9426_s1 + $0x194] ss:$20 sps:$4 sm:$0xff] (!%p264_p2)   ;;  %v6814_v10 = vld [vmem:[%s9426_s1 + $0x19c] ss:$20 sps:$4 sm:$0xff] (!%p264_p2)   ;;  %v6820_v14 = vld [vmem:[%s9426_s1 + $0x1c4] ss:$20 sps:$4 sm:$0xff] (!%p264_p2)  }
   0xa   : > { %v6818_v13 = vld [vmem:[%s9426_s1 + $0x1bc] ss:$20 sps:$4 sm:$0xff] (!%p264_p2)   ;;  %v6822_v15 = vld [vmem:[%s9426_s1 + $0x1b8] ss:$20 sps:$4 sm:$0xff] (!%p264_p2)   ;;  %v6823_v16 = vld [vmem:[%s9426_s1 + $0x1c0] ss:$20 sps:$4 sm:$0xff] (!%p264_p2)  }
   0xb   : > { %v6824_v17 = vld [vmem:[%s9426_s1 + $0x1e4] ss:$20 sps:$4 sm:$0xff] (!%p264_p2)   ;;  %v6826_v18 = vld [vmem:[%s9426_s1 + $0x1ec] ss:$20 sps:$4 sm:$0xff] (!%p264_p2)   ;;  %v6829_v20 = vld [vmem:[%s9426_s1 + $0x1e8] ss:$20 sps:$4 sm:$0xff] (!%p264_p2)  }
   0xc   : > { %681 = vmatpush1.bf16.msra.mxu0 (!%p264_p2), %v6810_v7  ;;  %794 = vmatpush1.bf16.msra.mxu1 (!%p264_p2), %v6811_v8  ;;  %v6828_v19 = vld [vmem:[%s9426_s1 + $0x1e0] ss:$20 sps:$4 sm:$0xff] (!%p264_p2)   ;;  %v6834_v24 = vld [vmem:[%s9426_s1 + $0x208] ss:$20 sps:$4 sm:$0xff] (!%p264_p2)   ;;  %v6835_v25 = vld [vmem:[%s9426_s1 + $0x210] ss:$20 sps:$4 sm:$0xff] (!%p264_p2)  }
   0xd   : > { %682 = vmatprep.subr.bf16.mxu0 %v6812_v9  ;;  %795 = vmatprep.subr.bf16.mxu1 %v6814_v10  ;;  %s9455_s17 = smov (!%p297_p3, %s5760_s17), 31  ;;  %v6830_v21 = vld [vmem:[%s9426_s1 + $0x20c] ss:$20 sps:$4 sm:$0xff]   ;;  %v6832_v22 = vld [vmem:[%s9426_s1 + $0x214] ss:$20 sps:$4 sm:$0xff]   ;;  %v7436_v30 = vshrl.u32 %v395_v23, 7 }
   0xe   : > { %s5761_s9 = sshll.u32 %s9455_s17, 3  ;;  %v6836_v26 = vld [vmem:[%s9426_s1 + $0x234] ss:$20 sps:$4 sm:$0xff]   ;;  %v6838_v27 = vld [vmem:[%s9426_s1 + $0x23c] ss:$20 sps:$4 sm:$0xff]   ;;  %vm4508_vm8 = vcmask 1041409  }
   0xf   : > { %s7416_s16 = scalar_lea.vmem %s9425_s0, %s5761_s9  ;;  %v6840_v31 = vld [vmem:[%s9426_s1 + $0x230] ss:$20 sps:$4 sm:$0xff]   ;;  %v6841_v33 = vld [vmem:[%s9426_s1 + $0x238] ss:$20 sps:$4 sm:$0xff]   ;;  %vm397_vm0 = vcmp.lt.s32.totalorder %v7436_v30, 7  ;;  %vm1548_vm1 = vcmp.lt.s32.totalorder %v7436_v30, 6 }
  0x10   : > { %683 = vmatpush1.bf16.msra.mxu0 %v6816_v11  ;;  %796 = vmatpush1.bf16.msra.mxu1 %v6817_v12  ;;  %v7431_v28 = vld [vmem:[%s7416_s16] sm:$0xff]  ;;  %v7434_v29 = vld [vmem:[%s7416_s16 + $0x8] sm:$0xff]  ;;  %v7442_v32 = vld [vmem:[%s7416_s16 + $0x10] sm:$0xff]  ;;  %vm2248_vm2 = vcmp.lt.s32.totalorder %v7436_v30, 5  ;;  %vm2948_vm3 = vcmp.lt.s32.totalorder %v7436_v30, 4  ;;  %vm4510_vm9 = vcmask 1042434  }
  0x11   : > { %684 = vmatprep.subr.bf16.mxu0 %v6818_v13  ;;  %797 = vmatprep.subr.bf16.mxu1 %v6820_v14  ;;  %v379_v34 = vrot.slane %v7431_v28, 1  ;;  %v380_v35 = vrot.slane %v7434_v29, 1  ;;  %v381_v36 = vrot.slane %v7442_v32, 1  ;;  %v6842_v37 = vld [vmem:[%s9426_s1 + $0x25c] ss:$20 sps:$4 sm:$0xff]   ;;  %v7476_v45 = vld [vmem:[%s7416_s16 + $0x20] sm:$0xff] }
  0x12   : > { %v6844_v38 = vld [vmem:[%s9426_s1 + $0x264] ss:$20 sps:$4 sm:$0xff]   ;;  %v6847_v40 = vld [vmem:[%s9426_s1 + $0x260] ss:$20 sps:$4 sm:$0xff]   ;;  %v383_v49 = vrot.slane %v7476_v45, 1  ;;  %v7502_v55 = vld [vmem:[%s7416_s16 + $0x28] sm:$0xff] }
  0x13   : > { %v6846_v39 = vld [vmem:[%s9426_s1 + $0x258] ss:$20 sps:$4 sm:$0xff]   ;;  %v411_v41 = vsel %vm397_vm0, %v380_v35, %v381_v36  ;;  %v412_v42 = vsel %vm397_vm0, %v379_v34, %v380_v35  ;;  %v6848_v44 = vld [vmem:[%s9426_s1 + $0x150] ss:$20 sps:$4 sm:$0xff]   ;;  %v6853_v51 = vld [vmem:[%s9426_s1 + $0x8] ss:$20 sps:$4 sm:$0xff]  }
  0x14   : > { %685 = vmatpush1.bf16.msra.mxu0 %v6822_v15  ;;  %798 = vmatpush1.bf16.msra.mxu1 %v6823_v16  ;;  %v7470_v43 = vld [vmem:[%s7416_s16 + $0x18] sm:$0xff]  ;;  %v7478_v46 = vpack.c.bf16 %v411_v41, %v412_v42  ;;  %v6855_v47 = vld [vmem:[%s9426_s1 + $0xc] ss:$20 sps:$4 sm:$0xff]   ;;  %v6858_v52 = vld [vmem:[%s9426_s1 + $0x34] ss:$20 sps:$4 sm:$0xff]   ;;  %v384_v60 = vrot.slane %v7502_v55, 1 }
  0x15   : > { %686 = vmatprep.subr.bf16.mxu0 %v6824_v17  ;;  %799 = vmatprep.subr.bf16.mxu1 %v6826_v18  ;;  %v382_v48 = vrot.slane %v7470_v43, 1  ;;  %v6849_v50 = vld [vmem:[%s9426_s1 + $0x178] ss:$20 sps:$4 sm:$0xff]   ;;  %v7506_v56 = vld [vmem:[%s7416_s16 + $0x30] sm:$0xff]  ;;  %v6851_v63 = vld [vmem:[%s9426_s1 + $0x1c8] ss:$20 sps:$4 sm:$0xff]  }
  0x16   : > { %v6850_v57 = vld [vmem:[%s9426_s1 + $0x1a0] ss:$20 sps:$4 sm:$0xff]   ;;  %v6856_v58 = vld [vmem:[%s9426_s1 + $0x30] ss:$20 sps:$4 sm:$0xff]   ;;  %v385_v61 = vrot.slane %v7506_v56, 1  ;;  %v408_v4 = vsel %vm397_vm0, %v383_v49, %v384_v60  ;;  %v7539_v5 = vld [vmem:[%s7416_s16 + $0x38] sm:$0xff] }
  0x17   : > { %v409_v53 = vsel %vm397_vm0, %v382_v48, %v383_v49  ;;  %v410_v54 = vsel %vm397_vm0, %v381_v36, %v382_v48  ;;  %v6862_v62 = vld [vmem:[%s9426_s1 + $0x5c] ss:$20 sps:$4 sm:$0xff]   ;;  %v6860_v0 = vld [vmem:[%s9426_s1 + $0x58] ss:$20 sps:$4 sm:$0xff]   ;;  %v7542_v6 = vld [vmem:[%s7416_s16 + $0x40] sm:$0xff]  ;;  %v386_v10 = vrot.slane %v7539_v5, 1 }
  0x18   : > { %687 = vmatpush1.bf16.msra.mxu0 %v6828_v19  ;;  %800 = vmatpush1.bf16.msra.mxu1 %v6829_v20  ;;  %v7514_v59 = vpack.c.bf16 %v409_v53, %v410_v54  ;;  %v6865_v1 = vld [vmem:[%s9426_s1 + $0x84] ss:$20 sps:$4 sm:$0xff]   ;;  %v407_v3 = vsel %vm397_vm0, %v384_v60, %v385_v61  ;;  %v6863_v8 = vld [vmem:[%s9426_s1 + $0x80] ss:$20 sps:$4 sm:$0xff]   ;;  %v387_v11 = vrot.slane %v7542_v6, 1  ;;  %v7575_v18 = vld [vmem:[%s7416_s16 + $0x48] sm:$0xff] }
  0x19   : > { %688 = vmatprep.subr.bf16.mxu0 %v6830_v21  ;;  %801 = vmatprep.subr.bf16.mxu1 %v6832_v22  ;;  %v6852_v7 = vld [vmem:[%s9426_s1 + $0x1f0] ss:$20 sps:$4 sm:$0xff]   ;;  %v7550_v9 = vpack.c.bf16 %v407_v3, %v408_v4  ;;  %v6869_v12 = vld [vmem:[%s9426_s1 + $0xac] ss:$20 sps:$4 sm:$0xff]   ;;  %v6867_v14 = vld [vmem:[%s9426_s1 + $0xa8] ss:$20 sps:$4 sm:$0xff]   ;;  %v406_v17 = vsel %vm397_vm0, %v385_v61, %v386_v10  ;;  %v7678_v3 = vpack.c.bf16 %v7434_v29, %v7431_v28 }
  0x1a   : > { %v6859_v13 = vld [vmem:[%s9426_s1 + $0x218] ss:$20 sps:$4 sm:$0xff]   ;;  %v6872_v15 = vld [vmem:[%s9426_s1 + $0xd4] ss:$20 sps:$4 sm:$0xff]   ;;  %v405_v16 = vsel %vm397_vm0, %v386_v10, %v387_v11  ;;  %v6870_v21 = vld [vmem:[%s9426_s1 + $0xd0] ss:$20 sps:$4 sm:$0xff]  }
  0x1b   : > { %v7578_v19 = vld [vmem:[%s7416_s16 + $0x50] sm:$0xff]  ;;  %v7586_v22 = vpack.c.bf16 %v405_v16, %v406_v17  ;;  %v388_v23 = vrot.slane %v7575_v18, 1  ;;  %v7611_v36 = vld [vmem:[%s7416_s16 + $0x58] sm:$0xff]  ;;  %v7638_v49 = vld [vmem:[%s7416_s16 + $0x68] sm:$0xff]  ;;  %vm4512_vm10 = vcmask 1043459   ;;  %vm4514_vm11 = vcmask 1044484  }
  0x1c   : > { %689 = vmatpush1.bf16.msra.mxu0 %v6834_v24  ;;  %802 = vmatpush1.bf16.msra.mxu1 %v6835_v25  ;;  %v6866_v20 = vld [vmem:[%s9426_s1 + $0x240] ss:$20 sps:$4 sm:$0xff]   ;;  %v389_v24 = vrot.slane %v7578_v19, 1  ;;  %v6873_v25 = vld [vmem:[%s9426_s1 + $0x268] ss:$20 sps:$4 sm:$0xff]   ;;  %v390_v41 = vrot.slane %v7611_v36, 1 }
  0x1d   : > { %690 = vmatprep.subr.bf16.mxu0 %v6836_v26  ;;  %803 = vmatprep.subr.bf16.mxu1 %v6838_v27  ;;  %v6876_v26 = vld [vmem:[%s9426_s1 + $0xfc] ss:$20 sps:$4 sm:$0xff]   ;;  %v6874_v27 = vld [vmem:[%s9426_s1 + $0xf8] ss:$20 sps:$4 sm:$0xff]   ;;  %v404_v35 = vsel %vm397_vm0, %v387_v11, %v388_v23  ;;  %v6888_v28 = vld [vmem:[%s9426_s1 + $0x54] ss:$20 sps:$4 sm:$0xff]  }
  0x1e   : > { %v402_v48 = vsel %vm397_vm0, %v389_v24, %v390_v41  ;;  %v6905_v4 = vld [vmem:[%s9426_s1 + $0x288] ss:$20 sps:$4 sm:$0xff]   ;;  %v6912_v11 = vld [vmem:[%s9426_s1 + $0x2d8] ss:$20 sps:$4 sm:$0xff]   ;;  %v6915_v16 = vld [vmem:[%s9426_s1 + $0x300] ss:$20 sps:$4 sm:$0xff]  }
  0x1f   : > { %v6910_v29 = vld [vmem:[%s9426_s1 + $0x2b4] ss:$20 sps:$4 sm:$0xff]   ;;  %v6914_v10 = vld [vmem:[%s9426_s1 + $0x2dc] ss:$20 sps:$4 sm:$0xff]   ;;  %vm4516_vm12 = vcmask 1045509   ;;  %vm4518_vm13 = vcmask 1046534  }
  0x20   : > { %691 = vmatpush1.bf16.msra.mxu0 %v6840_v31  ;;  %804 = vmatpush1.bf16.msra.mxu1 %v6841_v33  ;;  %v6879_v31 = vld [vmem:[%s9426_s1 + $0x124] ss:$20 sps:$4 sm:$0xff]   ;;  %v403_v33 = vsel %vm397_vm0, %v388_v23, %v389_v24  ;;  %v6895_v17 = vld [vmem:[%s9426_s1 + $0xc8] ss:$20 sps:$4 sm:$0xff]   ;;  %vm4520_vm14 = vcmask 1047559   ;;  %p302_p4 = scmp.lt.s32.totalorder %s7340_s28, 1 }
  0x21   : > { %692 = vmatprep.subr.bf16.mxu0 %v6842_v37  ;;  %805 = vmatprep.subr.bf16.mxu1 %v6844_v38  ;;  %v7614_v37 = vld [vmem:[%s7416_s16 + $0x60] sm:$0xff]  ;;  %v6903_v23 = vld [vmem:[%s9426_s1 + $0x11c] ss:$20 sps:$4 sm:$0xff]   ;;  %v6924_v24 = vld [vmem:[%s9426_s1 + $0x354] ss:$20 sps:$4 sm:$0xff]  }
  0x22   : > { %v6877_v38 = vld [vmem:[%s9426_s1 + $0x120] ss:$20 sps:$4 sm:$0xff]   ;;  %v391_v42 = vrot.slane %v7614_v37, 1  ;;  %s9457_s28 = smov (!%p302_p4, %s7340_s28), 1 }
  0x23   : > { %s5762_s17 = sshll.u32 %s9457_s28, 3 }
  0x24   : > { %693 = vmatpush1.bf16.msra.mxu0 %v6846_v39  ;;  %806 = vmatpush1.bf16.msra.mxu1 %v6847_v40  ;;  %v6882_v39 = vld [vmem:[%s9426_s1 + $0x4] ss:$20 sps:$4 sm:$0xff]   ;;  %v7622_v40 = vpack.c.bf16 %v403_v33, %v404_v35  ;;  %v6929_v35 = vld [vmem:[%s9426_s1 + $0x3a0] ss:$20 sps:$4 sm:$0xff]   ;;  %s305_s21 = scalar_lea.vmem %s9433_s8, %s5762_s17 }
  0x25   : > { %6267 = vmatprep.subr.bf16.mxu0 %v6848_v44  ;;  %1322 = vmatprep.subr.bf16.mxu1 %v6855_v47  ;;  %v401_v47 = vsel %vm397_vm0, %v390_v41, %v391_v42  ;;  %v6926_v33 = vld [vmem:[%s9426_s1 + $0x378] ss:$20 sps:$4 sm:$0xff]   ;;  %v7830_v41 = vpack.c.bf16 %v7638_v49, %v7614_v37  ;;  %v6934_v37 = vld [vmem:[%s9426_s1 + $0x100] ss:$20 sps:$4 sm:$0xff]  }
  0x27   : > { %711 = vmatmul.mubr.bf16.vlgmr.msra.gmra.mrb[0].mxu0 %v7478_v46  ;;  %824 = vmatmul.mubr.bf16.vlgmr.msra.gmra.mrb[0].mxu1 %v7478_v46 }
  0x28   : > { %6268 = vmatpush3.bf16.msra.mxu0 %v6848_v44  ;;  %720 = vmatprep.mubr.bf16.mxu0 %v7286_v2  ;;  %v6907_v44 = vld [vmem:[%s9426_s1 + $0x28c] ss:$20 sps:$4 sm:$0xff]  }
  0x29   : > { %833 = vmatprep.mubr.bf16.mxu1 %v7286_v2  ;;  %6269 = vmatprep.subr.bf16.mxu0 %v6849_v50 }
  0x2a   : > { %1323 = vmatpush1.bf16.msra.mxu1 %v6853_v51  ;;  %v7643_v51 = vpack.c.bf16 %v401_v47, %v402_v48  ;;  %v7847_v47 = vld [vmem:[%s7416_s16] sm:$0xff] }
  0x2b   : > { %1324 = vmatprep.subr.bf16.mxu1 %v6858_v52  ;;  %v392_v52 = vrot.slane %v7638_v49, 1  ;;  %v1532_v48 = vrot.slane %v7847_v47, 2 }
  0x2c   : > { %6270 = vmatpush3.bf16.msra.mxu0 %v6849_v50  ;;  %v7641_v50 = vld [vmem:[%s7416_s16 + $0x70] sm:$0xff] }
  0x2d   : > { %6271 = vmatprep.subr.bf16.mxu0 %v6850_v57  ;;  %v393_v53 = vrot.slane %v7641_v50, 1 }
  0x2e   : > { %1325 = vmatpush1.bf16.msra.mxu1 %v6856_v58  ;;  %v7656_v58 = vld [vmem:[%s7416_s16 + $0x78] sm:$0xff] }
  0x2f   : > { %721 = vmatmul.mubr.bf16.gmra.mrb[4].mxu0 %v7514_v59  ;;  %834 = vmatmul.mubr.bf16.gmra.mrb[4].mxu1 %v7514_v59  ;;  %v399_v54 = vsel %vm397_vm0, %v392_v52, %v393_v53  ;;  %v394_v61 = vrot.slane %v7656_v58, 1 }
  0x30   : > { %730 = vmatprep.mubr.bf16.mxu0 %v7286_v2  ;;  %843 = vmatprep.mubr.bf16.mxu1 %v7286_v2 }
  0x31   : > { %6272 = vmatpush3.bf16.msra.mxu0 %v6850_v57  ;;  %1326 = vmatprep.subr.bf16.mxu1 %v6862_v62  ;;  %v400_v57 = vsel %vm397_vm0, %v391_v42, %v392_v52  ;;  %v398_v62 = vsel %vm397_vm0, %v393_v53, %v394_v61  ;;  %v6933_v42 = vld [vmem:[%s9426_s1 + $0xd8] ss:$20 sps:$4 sm:$0xff]   ;;  %v7855_v53 = vld [vmem:[%s7416_s16 + $0x10] sm:$0xff] }
  0x32   : > { %6273 = vmatprep.subr.bf16.mxu0 %v6851_v63  ;;  %1327 = vmatpush1.bf16.msra.mxu1 %v6860_v0  ;;  %v420_v60 = vpack.c.bf16 %v399_v54, %v400_v57  ;;  %v1534_v54 = vrot.slane %v7855_v53, 2 }
  0x33   : > { %1328 = vmatprep.subr.bf16.mxu1 %v6865_v1  ;;  %v6880_v1 = vld [vmem:[%s9426_s1] ss:$20 sps:$4 sm:$0xff]  }
  0x35   : > { %6274 = vmatpush3.bf16.msra.mxu0 %v6851_v63  ;;  %v413_v63 = vsel %vm397_vm0, %v394_v61, %v379_v34  ;;  %v6885_v34 = vld [vmem:[%s9426_s1 + $0x2c] ss:$20 sps:$4 sm:$0xff]  }
  0x36   : > { %6275 = vmatprep.subr.bf16.mxu0 %v6852_v7  ;;  %1329 = vmatpush1.bf16.msra.mxu1 %v6863_v8  ;;  %v7667_v0 = vpack.c.bf16 %v413_v63, %v398_v62  ;;  %v7707_v8 = vpack.c.bf16 %v7470_v43, %v7442_v32  ;;  %v6889_v32 = vld [vmem:[%s9426_s1 + $0x78] ss:$20 sps:$4 sm:$0xff]  }
  0x37   : > { %731 = vmatmul.mubr.bf16.gmra.mrb[8].mxu0 %v7550_v9  ;;  %844 = vmatmul.mubr.bf16.gmra.mrb[8].mxu1 %v7550_v9  ;;  %v6894_v43 = vld [vmem:[%s9426_s1 + $0xa4] ss:$20 sps:$4 sm:$0xff]  }
  0x38   : > { %740 = vmatprep.mubr.bf16.mxu0 %v7286_v2  ;;  %853 = vmatprep.mubr.bf16.mxu1 %v7286_v2  ;;  %v7878_v62 = vld [vmem:[%s7416_s16 + $0x18] sm:$0xff] }
  0x39   : > { %6276 = vmatpush3.bf16.msra.mxu0 %v6852_v7  ;;  %1330 = vmatprep.subr.bf16.mxu1 %v6869_v12  ;;  %v6908_v7 = vld [vmem:[%s9426_s1 + $0x2b0] ss:$20 sps:$4 sm:$0xff]   ;;  %v1535_v63 = vrot.slane %v7878_v62, 2 }
  0x3a   : > { %6277 = vmatprep.subr.bf16.mxu0 %v6859_v13  ;;  %1331 = vmatpush1.bf16.msra.mxu1 %v6867_v14  ;;  %v6917_v12 = vld [vmem:[%s9426_s1 + $0x304] ss:$20 sps:$4 sm:$0xff]   ;;  %v7736_v14 = vpack.c.bf16 %v7502_v55, %v7476_v45  ;;  %v6900_v45 = vld [vmem:[%s9426_s1 + $0xf4] ss:$20 sps:$4 sm:$0xff]   ;;  %v6921_v55 = vld [vmem:[%s9426_s1 + $0x32c] ss:$20 sps:$4 sm:$0xff]  }
  0x3b   : > { %1332 = vmatprep.subr.bf16.mxu1 %v6872_v15  ;;  %v6897_v15 = vld [vmem:[%s9426_s1 + $0xcc] ss:$20 sps:$4 sm:$0xff]  }
  0x3d   : > { %6278 = vmatpush3.bf16.msra.mxu0 %v6859_v13  ;;  %v6892_v13 = vld [vmem:[%s9426_s1 + $0xa0] ss:$20 sps:$4 sm:$0xff]  }
  0x3e   : > { %6279 = vmatprep.subr.bf16.mxu0 %v6866_v20  ;;  %1333 = vmatpush1.bf16.msra.mxu1 %v6870_v21  ;;  %v6919_v21 = vld [vmem:[%s9426_s1 + $0x328] ss:$20 sps:$4 sm:$0xff]  }
  0x3f   : > { %741 = vmatmul.mubr.bf16.gmra.mrb[12].mxu0 %v7586_v22  ;;  %854 = vmatmul.mubr.bf16.gmra.mrb[12].mxu1 %v7586_v22 }
  0x40   : > { %750 = vmatprep.mubr.bf16.mxu0 %v7286_v2  ;;  %863 = vmatprep.mubr.bf16.mxu1 %v7286_v2 }
  0x41   : > { %6280 = vmatpush3.bf16.msra.mxu0 %v6866_v20  ;;  %1334 = vmatprep.subr.bf16.mxu1 %v6876_v26  ;;  %v6898_v20 = vld [vmem:[%s9426_s1 + $0xf0] ss:$20 sps:$4 sm:$0xff]  }
  0x42   : > { %6281 = vmatprep.subr.bf16.mxu0 %v6873_v25  ;;  %1335 = vmatpush1.bf16.msra.mxu1 %v6874_v27  ;;  %v6928_v26 = vld [vmem:[%s9426_s1 + $0x37c] ss:$20 sps:$4 sm:$0xff]   ;;  %v7790_v27 = vpack.c.bf16 %v7575_v18, %v7542_v6  ;;  %v6918_v6 = vld [vmem:[%s9426_s1 + $0x60] ss:$20 sps:$4 sm:$0xff]   ;;  %v6931_v18 = vld [vmem:[%s9426_s1 + $0x3a4] ss:$20 sps:$4 sm:$0xff]  }
  0x43   : > { %1336 = vmatprep.subr.bf16.mxu1 %v6879_v31  ;;  %v6911_v31 = vld [vmem:[%s9426_s1 + $0x38] ss:$20 sps:$4 sm:$0xff]  }
  0x45   : > { %6282 = vmatpush3.bf16.msra.mxu0 %v6873_v25  ;;  %v6922_v25 = vld [vmem:[%s9426_s1 + $0x350] ss:$20 sps:$4 sm:$0xff]  }
  0x46   : > { %1337 = vmatpush1.bf16.msra.mxu1 %v6877_v38  ;;  %1209 = vmatprep.subr.bf16.mxu0 %v6882_v39  ;;  %v7813_v38 = vpack.c.bf16 %v7611_v36, %v7578_v19  ;;  %v6941_v39 = vld [vmem:[%s9426_s1 + $0x3cc] ss:$20 sps:$4 sm:$0xff]   ;;  %v6932_v19 = vld [vmem:[%s9426_s1 + $0xb0] ss:$20 sps:$4 sm:$0xff]  }
  0x47   : > { %751 = vmatmul.mubr.bf16.gmra.mrb[16].mxu0 %v7622_v40  ;;  %864 = vmatmul.mubr.bf16.gmra.mrb[16].mxu1 %v7622_v40 }
  0x48   : > { %760 = vmatprep.mubr.bf16.mxu0 %v7286_v2  ;;  %873 = vmatprep.mubr.bf16.mxu1 %v7286_v2 }
  0x49   : > { %1942 = vmatprep.subr.bf16.mxu1 %v6907_v44  ;;  %v7844_v44 = vpack.c.bf16 %v7656_v58, %v7641_v50  ;;  %v6935_v50 = vld [vmem:[%s9426_s1 + $0x128] ss:$20 sps:$4 sm:$0xff]  }
  0x4f   : > { %761 = vmatmul.mubr.bf16.gmra.mrb[20].mxu0 %v7643_v51  ;;  %874 = vmatmul.mubr.bf16.gmra.mrb[20].mxu1 %v7643_v51 }
  0x50   : > { %770 = vmatprep.mubr.bf16.mxu0 %v7286_v2  ;;  %883 = vmatprep.mubr.bf16.mxu1 %v7286_v2 }
  0x57   : > { %771 = vmatmul.mubr.bf16.gmra.mrb[24].mxu0 %v420_v60  ;;  %884 = vmatmul.mubr.bf16.gmra.mrb[24].mxu1 %v420_v60 }
  0x58   : > { %780 = vmatprep.mubr.bf16.mxu0 %v7286_v2  ;;  %893 = vmatprep.mubr.bf16.mxu1 %v7286_v2 }
  0x5f   : > { %781 = vmatmul.mubr.bf16.gmra.mrb[28].mxu0 %v7667_v0  ;;  %894 = vmatmul.mubr.bf16.gmra.mrb[28].mxu1 %v7667_v0 }
  0x60   : > { %6283 = vmatprep.mubr.bf16.mxu0 %v7478_v46  ;;  %1354 = vmatprep.mubr.bf16.mxu1 %v7286_v2  ;;  %v6883_v46 = vld [vmem:[%s9426_s1 + $0x28] ss:$20 sps:$4 sm:$0xff]  }
  0x67   : > { %6284 = vmatmul.mubr.bf16.vlgmr.msra.gmra.mrb[32].mxu0 %v7514_v59  ;;  %1355 = vmatmul.mubr.bf16.vlgmr.msra.gmra.mrb[0].mxu1 %v7678_v3  ;;  %v6886_v59 = vld [vmem:[%s9426_s1 + $0x50] ss:$20 sps:$4 sm:$0xff]  }
  0x68   : > { %1210 = vmatpush1.bf16.msra.mxu0 %v6880_v1  ;;  %6287 = vmatprep.mubr.bf16.mxu0 %v7550_v9  ;;  %v6891_v9 = vld [vmem:[%s9426_s1 + $0x7c] ss:$20 sps:$4 sm:$0xff]  }
  0x69   : > { %1211 = vmatprep.subr.bf16.mxu0 %v6885_v34  ;;  %1364 = vmatprep.mubr.bf16.mxu1 %v7286_v2  ;;  %v6939_v34 = vld [vmem:[%s9426_s1 + $0x3c8] ss:$20 sps:$4 sm:$0xff]  }
  0x6a   : > { %1943 = vmatpush1.bf16.msra.mxu1 %v6905_v4  ;;  %v6947_v4 = vld [vmem:[%s9426_s1 + $0x3f4] ss:$20 sps:$4 sm:$0xff]  }
  0x6b   : > { %1944 = vmatprep.subr.bf16.mxu1 %v6910_v29  ;;  %v6945_v29 = vld [vmem:[%s9426_s1 + $0x3f0] ss:$20 sps:$4 sm:$0xff]  }
  0x6c   : > { %1212 = vmatpush1.bf16.msra.mxu0 %v6883_v46 }
  0x6d   : > { %1213 = vmatprep.subr.bf16.mxu0 %v6888_v28  ;;  %v1561_v28 = vsel %vm1548_vm1, %v1534_v54, %v1535_v63 }
  0x6e   : > { %1945 = vmatpush1.bf16.msra.mxu1 %v6908_v7  ;;  %v6953_v7 = vld [vmem:[%s9426_s1 + $0x41c] ss:$20 sps:$4 sm:$0xff]  }
  0x6f   : > { %6288 = vmatmul.mubr.bf16.gmra.mrb[36].mxu0 %v7586_v22  ;;  %1365 = vmatmul.mubr.bf16.gmra.mrb[4].mxu1 %v7707_v8  ;;  %v7764_v22 = vpack.c.bf16 %v7539_v5, %v7506_v56  ;;  %v6901_v56 = vld [vmem:[%s9426_s1 + $0x118] ss:$20 sps:$4 sm:$0xff]   ;;  %v6904_v5 = vld [vmem:[%s9426_s1 + $0x10] ss:$20 sps:$4 sm:$0xff]  }
  0x70   : > { %1214 = vmatpush1.bf16.msra.mxu0 %v6886_v59  ;;  %6291 = vmatprep.mubr.bf16.mxu0 %v7622_v40  ;;  %v6925_v40 = vld [vmem:[%s9426_s1 + $0x88] ss:$20 sps:$4 sm:$0xff]  }
  0x71   : > { %1215 = vmatprep.subr.bf16.mxu0 %v6891_v9  ;;  %1374 = vmatprep.mubr.bf16.mxu1 %v7286_v2  ;;  %v7908_v9 = vld [vmem:[%s7416_s16 + $0x28] sm:$0xff] }
  0x72   : > { %1946 = vmatprep.subr.bf16.mxu1 %v6914_v10  ;;  %v1537_v10 = vrot.slane %v7908_v9, 2 }
  0x73   : > { %1947 = vmatpush1.bf16.msra.mxu1 %v6912_v11  ;;  %v7912_v11 = vld [vmem:[%s7416_s16 + $0x30] sm:$0xff] }
  0x74   : > { %1216 = vmatpush1.bf16.msra.mxu0 %v6889_v32  ;;  %1948 = vmatprep.subr.bf16.mxu1 %v6917_v12  ;;  %v1538_v32 = vrot.slane %v7912_v11, 2  ;;  %v6959_v12 = vld [vmem:[%s9426_s1 + $0x444] ss:$20 sps:$4 sm:$0xff]  }
  0x75   : > { %1217 = vmatprep.subr.bf16.mxu0 %v6894_v43  ;;  %v6951_v43 = vld [vmem:[%s9426_s1 + $0x418] ss:$20 sps:$4 sm:$0xff]  }
  0x77   : > { %6292 = vmatmul.mubr.bf16.gmra.mrb[40].mxu0 %v7643_v51  ;;  %1375 = vmatmul.mubr.bf16.gmra.mrb[8].mxu1 %v7736_v14  ;;  %v7851_v51 = vld [vmem:[%s7416_s16 + $0x8] sm:$0xff] }
  0x78   : > { %1218 = vmatpush1.bf16.msra.mxu0 %v6892_v13  ;;  %6295 = vmatprep.mubr.bf16.mxu0 %v420_v60  ;;  %v1533_v52 = vrot.slane %v7851_v51, 2  ;;  %v6938_v60 = vld [vmem:[%s9426_s1 + $0x284] ss:$20 sps:$4 sm:$0xff]   ;;  %v1558_v13 = vsel %vm1548_vm1, %v1537_v10, %v1538_v32 }
  0x79   : > { %1219 = vmatprep.subr.bf16.mxu0 %v6897_v15  ;;  %1384 = vmatprep.mubr.bf16.mxu1 %v7286_v2 }
  0x7a   : > { %1949 = vmatpush1.bf16.msra.mxu1 %v6915_v16  ;;  %v1562_v57 = vsel %vm1548_vm1, %v1533_v52, %v1534_v54  ;;  %v1563_v58 = vsel %vm1548_vm1, %v1532_v48, %v1533_v52  ;;  %v6957_v16 = vld [vmem:[%s9426_s1 + $0x440] ss:$20 sps:$4 sm:$0xff]  }
  0x7b   : > { %1950 = vmatprep.subr.bf16.mxu1 %v6921_v55  ;;  %v7875_v61 = vpack.c.bf16 %v1562_v57, %v1563_v58  ;;  %v7938_v55 = vld [vmem:[%s7416_s16 + $0x38] sm:$0xff]  ;;  %v7991_v52 = vld [vmem:[%s7416_s16 + $0x60] sm:$0xff] }
  0x7c   : > { %1220 = vmatpush1.bf16.msra.mxu0 %v6895_v17  ;;  %v6965_v17 = vld [vmem:[%s9426_s1 + $0x46c] ss:$20 sps:$4 sm:$0xff]   ;;  %v1544_v54 = vrot.slane %v7991_v52, 2 }
  0x7d   : > { %1221 = vmatprep.subr.bf16.mxu0 %v6900_v45  ;;  %v6981_v57 = vld [vmem:[%s9426_s1 + $0x4e0] ss:$20 sps:$4 sm:$0xff]  }
  0x7e   : > { %1951 = vmatpush1.bf16.msra.mxu1 %v6919_v21  ;;  %v7942_v21 = vld [vmem:[%s7416_s16 + $0x40] sm:$0xff] }
  0x7f   : > { %6296 = vmatmul.mubr.bf16.gmra.mrb[44].mxu0 %v7667_v0  ;;  %1385 = vmatmul.mubr.bf16.gmra.mrb[12].mxu1 %v7764_v22  ;;  %v7882_v0 = vld [vmem:[%s7416_s16 + $0x20] sm:$0xff] }
  0x80   : > { %1222 = vmatpush1.bf16.msra.mxu0 %v6898_v20  ;;  %1241 = vmatprep.mubr.bf16.mxu0 %v7286_v2  ;;  %v1536_v1 = vrot.slane %v7882_v0, 2  ;;  %v1539_v20 = vrot.slane %v7938_v55, 2  ;;  %v6991_v58 = vld [vmem:[%s9426_s1 + $0x50c] ss:$20 sps:$4 sm:$0xff]  }
  0x81   : > { %1223 = vmatprep.subr.bf16.mxu0 %v6903_v23  ;;  %1394 = vmatprep.mubr.bf16.mxu1 %v7286_v2  ;;  %v1540_v23 = vrot.slane %v7942_v21, 2 }
  0x82   : > { %1952 = vmatprep.subr.bf16.mxu1 %v6924_v24  ;;  %v1560_v46 = vsel %vm1548_vm1, %v1535_v63, %v1536_v1  ;;  %v1559_v15 = vsel %vm1548_vm1, %v1536_v1, %v1537_v10  ;;  %v6963_v24 = vld [vmem:[%s9426_s1 + $0x468] ss:$20 sps:$4 sm:$0xff]  }
  0x83   : > { %1953 = vmatpush1.bf16.msra.mxu1 %v6922_v25  ;;  %v7905_v59 = vpack.c.bf16 %v1560_v46, %v1561_v28  ;;  %v7935_v45 = vpack.c.bf16 %v1558_v13, %v1559_v15  ;;  %v6971_v25 = vld [vmem:[%s9426_s1 + $0x494] ss:$20 sps:$4 sm:$0xff]   ;;  %v6956_v10 = vld [vmem:[%s9426_s1 + $0x2fc] ss:$20 sps:$4 sm:$0xff]  }
  0x84   : > { %1224 = vmatpush1.bf16.msra.mxu0 %v6901_v56  ;;  %1954 = vmatprep.subr.bf16.mxu1 %v6928_v26  ;;  %v7954_v56 = vld [vmem:[%s7416_s16 + $0x48] sm:$0xff]  ;;  %v1556_v26 = vsel %vm1548_vm1, %v1539_v20, %v1540_v23  ;;  %v8027_v46 = vld [vmem:[%s7416_s16 + $0x70] sm:$0xff] }
  0x85   : > { %6299 = vmatprep.subr.bf16.mxu0 %v6904_v5  ;;  %v6942_v63 = vld [vmem:[%s9426_s1 + $0x2a8] ss:$20 sps:$4 sm:$0xff]   ;;  %v1546_v28 = vrot.slane %v8027_v46, 2 }
  0x86   : > { %v6950_v1 = vld [vmem:[%s9426_s1 + $0x2d4] ss:$20 sps:$4 sm:$0xff]  }
  0x87   : > { %1242 = vmatmul.mubr.bf16.vlgmr.msra.gmra.mrb[0].mxu0 %v7678_v3  ;;  %1395 = vmatmul.mubr.bf16.gmra.mrb[16].mxu1 %v7790_v27 }
  0x88   : > { %6300 = vmatpush3.bf16.msra.mxu0 %v6904_v5  ;;  %1251 = vmatprep.mubr.bf16.mxu0 %v7286_v2  ;;  %v1541_v5 = vrot.slane %v7954_v56, 2 }
  0x89   : > { %1404 = vmatprep.mubr.bf16.mxu1 %v7286_v2  ;;  %6301 = vmatprep.subr.bf16.mxu0 %v6911_v31 }
  0x8a   : > { %1955 = vmatpush1.bf16.msra.mxu1 %v6926_v33  ;;  %v7964_v33 = vld [vmem:[%s7416_s16 + $0x50] sm:$0xff] }
  0x8b   : > { %1956 = vmatprep.subr.bf16.mxu1 %v6931_v18  ;;  %v1543_v18 = vrot.slane %v7611_v36, 2  ;;  %v6983_v36 = vld [vmem:[%s9426_s1 + $0x4e4] ss:$20 sps:$4 sm:$0xff]  }
  0x8c   : > { %6302 = vmatpush3.bf16.msra.mxu0 %v6911_v31  ;;  %v1557_v31 = vsel %vm1548_vm1, %v1538_v32, %v1539_v20  ;;  %v6954_v32 = vld [vmem:[%s9426_s1 + $0x2f8] ss:$20 sps:$4 sm:$0xff]  }
  0x8d   : > { %6303 = vmatprep.subr.bf16.mxu0 %v6918_v6 }
  0x8e   : > { %1957 = vmatpush1.bf16.msra.mxu1 %v6929_v35  ;;  %v6969_v35 = vld [vmem:[%s9426_s1 + $0x490] ss:$20 sps:$4 sm:$0xff]  }
  0x8f   : > { %1252 = vmatmul.mubr.bf16.gmra.mrb[4].mxu0 %v7707_v8  ;;  %1405 = vmatmul.mubr.bf16.gmra.mrb[20].mxu1 %v7813_v38 }
  0x90   : > { %1261 = vmatprep.mubr.bf16.mxu0 %v7286_v2  ;;  %1414 = vmatprep.mubr.bf16.mxu1 %v7286_v2 }
  0x91   : > { %6304 = vmatpush3.bf16.msra.mxu0 %v6918_v6  ;;  %2642 = vmatprep.subr.bf16.mxu1 %v6941_v39  ;;  %v1542_v6 = vrot.slane %v7964_v33, 2  ;;  %v6977_v39 = vld [vmem:[%s9426_s1 + $0x4bc] ss:$20 sps:$4 sm:$0xff]  }
  0x92   : > { %6305 = vmatprep.subr.bf16.mxu0 %v6925_v40 }
  0x95   : > { %6306 = vmatpush3.bf16.msra.mxu0 %v6925_v40  ;;  %v7974_v40 = vpack.c.bf16 %v1556_v26, %v1557_v31  ;;  %v6978_v26 = vld [vmem:[%s9426_s1 + $0x398] ss:$20 sps:$4 sm:$0xff]  }
  0x96   : > { %6307 = vmatprep.subr.bf16.mxu0 %v6932_v19 }
  0x97   : > { %1262 = vmatmul.mubr.bf16.gmra.mrb[8].mxu0 %v7736_v14  ;;  %1415 = vmatmul.mubr.bf16.gmra.mrb[24].mxu1 %v7830_v41 }
  0x98   : > { %1271 = vmatprep.mubr.bf16.mxu0 %v7286_v2  ;;  %1424 = vmatprep.mubr.bf16.mxu1 %v7286_v2 }
  0x99   : > { %6308 = vmatpush3.bf16.msra.mxu0 %v6932_v19  ;;  %v6975_v19 = vld [vmem:[%s9426_s1 + $0x4b8] ss:$20 sps:$4 sm:$0xff]  }
  0x9a   : > { %6309 = vmatprep.subr.bf16.mxu0 %v6933_v42 }
  0x9d   : > { %6310 = vmatpush3.bf16.msra.mxu0 %v6933_v42  ;;  %v1554_v42 = vsel %vm1548_vm1, %v1541_v5, %v1542_v6 }
  0x9e   : > { %6311 = vmatprep.subr.bf16.mxu0 %v6934_v37 }
  0x9f   : > { %1272 = vmatmul.mubr.bf16.gmra.mrb[12].mxu0 %v7764_v22  ;;  %1425 = vmatmul.mubr.bf16.gmra.mrb[28].mxu1 %v7844_v44 }
  0xa0   : > { %1281 = vmatprep.mubr.bf16.mxu0 %v7286_v2  ;;  %1974 = vmatprep.mubr.bf16.mxu1 %v7286_v2 }
  0xa1   : > { %6312 = vmatpush3.bf16.msra.mxu0 %v6934_v37  ;;  %v1555_v37 = vsel %vm1548_vm1, %v1540_v23, %v1541_v5  ;;  %v6980_v5 = vld [vmem:[%s9426_s1 + $0x39c] ss:$20 sps:$4 sm:$0xff]  }
  0xa2   : > { %6313 = vmatprep.subr.bf16.mxu0 %v6935_v50 }
  0xa5   : > { %6314 = vmatpush3.bf16.msra.mxu0 %v6935_v50  ;;  %v1545_v50 = vrot.slane %v7638_v49, 2  ;;  %v6944_v49 = vld [vmem:[%s9426_s1 + $0x2ac] ss:$20 sps:$4 sm:$0xff]  }
  0xa6   : > { %1829 = vmatprep.subr.bf16.mxu0 %v6938_v60  ;;  %v8004_v60 = vpack.c.bf16 %v1554_v42, %v1555_v37  ;;  %v6994_v42 = vld [vmem:[%s9426_s1 + $0x534] ss:$20 sps:$4 sm:$0xff]  }
  0xa7   : > { %1282 = vmatmul.mubr.bf16.gmra.mrb[16].mxu0 %v7790_v27  ;;  %1975 = vmatmul.mubr.bf16.vlgmr.msra.gmra.mrb[0].mxu1 %v7875_v61  ;;  %v1551_v13 = vsel %vm1548_vm1, %v1544_v54, %v1545_v50 }
  0xa8   : > { %1291 = vmatprep.mubr.bf16.mxu0 %v7286_v2  ;;  %1984 = vmatprep.mubr.bf16.mxu1 %v7286_v2 }
  0xa9   : > { %2643 = vmatpush1.bf16.msra.mxu1 %v6939_v34  ;;  %v1552_v34 = vsel %vm1548_vm1, %v1543_v18, %v1544_v54 }
  0xaa   : > { %2644 = vmatprep.subr.bf16.mxu1 %v6947_v4  ;;  %v1553_v4 = vsel %vm1548_vm1, %v1542_v6, %v1543_v18 }
  0xad   : > { %2645 = vmatpush1.bf16.msra.mxu1 %v6945_v29  ;;  %v8031_v29 = vld [vmem:[%s7416_s16 + $0x78] sm:$0xff] }
  0xae   : > { %2646 = vmatprep.subr.bf16.mxu1 %v6953_v7  ;;  %v8034_v7 = vpack.c.bf16 %v1552_v34, %v1553_v4  ;;  %v6996_v34 = vld [vmem:[%s9426_s1 + $0x558] ss:$20 sps:$4 sm:$0xff]  }
  0xaf   : > { %1292 = vmatmul.mubr.bf16.gmra.mrb[20].mxu0 %v7813_v38  ;;  %1985 = vmatmul.mubr.bf16.gmra.mrb[4].mxu1 %v7905_v59  ;;  %v7001_v4 = vld [vmem:[%s9426_s1 + $0x584] ss:$20 sps:$4 sm:$0xff]  }
  0xb0   : > { %1301 = vmatprep.mubr.bf16.mxu0 %v7286_v2  ;;  %1994 = vmatprep.mubr.bf16.mxu1 %v7286_v2 }
  0xb1   : > { %2647 = vmatpush1.bf16.msra.mxu1 %v6951_v43  ;;  %v6962_v43 = vld [vmem:[%s9426_s1 + $0x324] ss:$20 sps:$4 sm:$0xff]  }
  0xb2   : > { %2648 = vmatprep.subr.bf16.mxu1 %v6959_v12  ;;  %v1550_v12 = vsel %vm1548_vm1, %v1545_v50, %v1546_v28  ;;  %v6986_v50 = vld [vmem:[%s9426_s1 + $0x2e0] ss:$20 sps:$4 sm:$0xff]  }
  0xb3   : > { %v8056_v15 = vpack.c.bf16 %v1550_v12, %v1551_v13  ;;  %v2240_v12 = vrot.slane %v7942_v21, 3  ;;  %v7005_v13 = vld [vmem:[%s9426_s1 + $0x5ac] ss:$20 sps:$4 sm:$0xff]  }
  0xb5   : > { %2649 = vmatpush1.bf16.msra.mxu1 %v6957_v16  ;;  %v6968_v16 = vld [vmem:[%s9426_s1 + $0x34c] ss:$20 sps:$4 sm:$0xff]  }
  0xb6   : > { %2650 = vmatprep.subr.bf16.mxu1 %v6965_v17 }
  0xb7   : > { %1302 = vmatmul.mubr.bf16.gmra.mrb[24].mxu0 %v7830_v41  ;;  %1995 = vmatmul.mubr.bf16.gmra.mrb[8].mxu1 %v7935_v45 }
  0xb8   : > { %1311 = vmatprep.mubr.bf16.mxu0 %v7286_v2  ;;  %2004 = vmatprep.mubr.bf16.mxu1 %v7286_v2 }
  0xb9   : > { %2651 = vmatpush1.bf16.msra.mxu1 %v6963_v24  ;;  %v2232_v24 = vrot.slane %v7847_v47, 3 }
  0xba   : > { %2652 = vmatprep.subr.bf16.mxu1 %v6971_v25  ;;  %v2233_v25 = vrot.slane %v7851_v51, 3 }
  0xbc   : > { %v2263_v6 = vsel %vm2248_vm2, %v2232_v24, %v2233_v25 }
  0xbd   : > { %2653 = vmatpush1.bf16.msra.mxu1 %v6969_v35  ;;  %v2235_v35 = vrot.slane %v7878_v62, 3 }
  0xbe   : > { %2654 = vmatprep.subr.bf16.mxu1 %v6977_v39  ;;  %v2236_v39 = vrot.slane %v7882_v0, 3 }
  0xbf   : > { %1312 = vmatmul.mubr.bf16.gmra.mrb[28].mxu0 %v7844_v44  ;;  %2005 = vmatmul.mubr.bf16.gmra.mrb[12].mxu1 %v7974_v40 }
  0xc0   : > { %6315 = vmatprep.mubr.bf16.mxu0 %v7678_v3  ;;  %2014 = vmatprep.mubr.bf16.mxu1 %v7286_v2  ;;  %v6936_v3 = vld [vmem:[%s9426_s1 + $0x280] ss:$20 sps:$4 sm:$0xff]   ;;  %v2260_v37 = vsel %vm2248_vm2, %v2235_v35, %v2236_v39 }
  0xc1   : > { %2655 = vmatpush1.bf16.msra.mxu1 %v6975_v19  ;;  %v6985_v19 = vld [vmem:[%s9426_s1 + $0x2b8] ss:$20 sps:$4 sm:$0xff]  }
  0xc2   : > { %2656 = vmatprep.subr.bf16.mxu1 %v6983_v36  ;;  %v6989_v36 = vld [vmem:[%s9426_s1 + $0x508] ss:$20 sps:$4 sm:$0xff]  }
  0xc5   : > { %2657 = vmatpush1.bf16.msra.mxu1 %v6981_v57  ;;  %v6992_v57 = vld [vmem:[%s9426_s1 + $0x530] ss:$20 sps:$4 sm:$0xff]  }
  0xc6   : > { %3342 = vmatprep.subr.bf16.mxu1 %v6991_v58  ;;  %v2237_v58 = vrot.slane %v7908_v9, 3 }
  0xc7   : > { %6316 = vmatmul.mubr.bf16.vlgmr.msra.gmra.mrb[32].mxu0 %v7707_v8  ;;  %2015 = vmatmul.mubr.bf16.gmra.mrb[16].mxu1 %v8004_v60  ;;  %v6948_v8 = vld [vmem:[%s9426_s1 + $0x2d0] ss:$20 sps:$4 sm:$0xff]  }
  0xc8   : > { %1830 = vmatpush1.bf16.msra.mxu0 %v6936_v3  ;;  %6319 = vmatprep.mubr.bf16.mxu0 %v7736_v14  ;;  %v1547_v14 = vrot.slane %v8031_v29, 2 }
  0xc9   : > { %1831 = vmatprep.subr.bf16.mxu0 %v6944_v49  ;;  %2024 = vmatprep.mubr.bf16.mxu1 %v7286_v2  ;;  %v2238_v49 = vrot.slane %v7912_v11, 3 }
  0xca   : > { %v1549_v17 = vsel %vm1548_vm1, %v1546_v28, %v1547_v14  ;;  %v1564_v20 = vsel %vm1548_vm1, %v1547_v14, %v1532_v48  ;;  %v2234_v48 = vrot.slane %v7855_v53, 3  ;;  %v2259_v28 = vsel %vm2248_vm2, %v2236_v39, %v2237_v58  ;;  %v6988_v14 = vld [vmem:[%s9426_s1 + $0x330] ss:$20 sps:$4 sm:$0xff]  }
  0xcb   : > { %v8077_v23 = vpack.c.bf16 %v1564_v20, %v1549_v17 }
  0xcc   : > { %1832 = vmatpush1.bf16.msra.mxu0 %v6942_v63  ;;  %v2262_v31 = vsel %vm2248_vm2, %v2233_v25, %v2234_v48  ;;  %v2261_v54 = vsel %vm2248_vm2, %v2234_v48, %v2235_v35  ;;  %v6998_v63 = vld [vmem:[%s9426_s1 + $0x55c] ss:$20 sps:$4 sm:$0xff]   ;;  %v2241_v48 = vrot.slane %v7954_v56, 3 }
  0xcd   : > { %1833 = vmatprep.subr.bf16.mxu0 %v6950_v1  ;;  %v8105_v18 = vpack.c.bf16 %v2262_v31, %v2263_v6  ;;  %v8132_v3 = vpack.c.bf16 %v2260_v37, %v2261_v54  ;;  %v6987_v1 = vld [vmem:[%s9426_s1 + $0x308] ss:$20 sps:$4 sm:$0xff]   ;;  %v7010_v6 = vld [vmem:[%s9426_s1 + $0x5f8] ss:$20 sps:$4 sm:$0xff]  }
  0xce   : > { %v7009_v31 = vld [vmem:[%s9426_s1 + $0x3a8] ss:$20 sps:$4 sm:$0xff]   ;;  %v2255_v39 = vsel %vm2248_vm2, %v2240_v12, %v2241_v48 }
  0xcf   : > { %6320 = vmatmul.mubr.bf16.gmra.mrb[36].mxu0 %v7764_v22  ;;  %2025 = vmatmul.mubr.bf16.gmra.mrb[20].mxu1 %v8034_v7  ;;  %v6960_v22 = vld [vmem:[%s9426_s1 + $0x320] ss:$20 sps:$4 sm:$0xff]   ;;  %v8225_v37 = vld [vmem:[%s7416_s16 + $0x58] sm:$0xff] }
  0xd0   : > { %1834 = vmatpush1.bf16.msra.mxu0 %v6948_v8  ;;  %6323 = vmatprep.mubr.bf16.mxu0 %v7790_v27  ;;  %v6966_v27 = vld [vmem:[%s9426_s1 + $0x348] ss:$20 sps:$4 sm:$0xff]   ;;  %v2258_v8 = vsel %vm2248_vm2, %v2237_v58, %v2238_v49  ;;  %v2243_v54 = vrot.slane %v8225_v37, 3 }
  0xd1   : > { %1835 = vmatprep.subr.bf16.mxu0 %v6956_v10  ;;  %2034 = vmatprep.mubr.bf16.mxu1 %v7286_v2  ;;  %v6999_v10 = vld [vmem:[%s9426_s1 + $0x580] ss:$20 sps:$4 sm:$0xff]  }
  0xd4   : > { %1836 = vmatpush1.bf16.msra.mxu0 %v6954_v32  ;;  %v8162_v32 = vpack.c.bf16 %v2258_v8, %v2259_v28 }
  0xd5   : > { %1837 = vmatprep.subr.bf16.mxu0 %v6962_v43  ;;  %v2239_v43 = vrot.slane %v7938_v55, 3 }
  0xd7   : > { %6324 = vmatmul.mubr.bf16.gmra.mrb[40].mxu0 %v7813_v38  ;;  %2035 = vmatmul.mubr.bf16.gmra.mrb[24].mxu1 %v8056_v15  ;;  %v6974_v38 = vld [vmem:[%s9426_s1 + $0x374] ss:$20 sps:$4 sm:$0xff]   ;;  %v2256_v17 = vsel %vm2248_vm2, %v2239_v43, %v2240_v12  ;;  %v2257_v20 = vsel %vm2248_vm2, %v2238_v49, %v2239_v43 }
  0xd8   : > { %1838 = vmatpush1.bf16.msra.mxu0 %v6960_v22  ;;  %6327 = vmatprep.mubr.bf16.mxu0 %v7830_v41  ;;  %v6972_v41 = vld [vmem:[%s9426_s1 + $0x370] ss:$20 sps:$4 sm:$0xff]   ;;  %v6995_v22 = vld [vmem:[%s9426_s1 + $0x358] ss:$20 sps:$4 sm:$0xff]   ;;  %v8192_v25 = vpack.c.bf16 %v2256_v17, %v2257_v20  ;;  %v2935_v17 = vrot.slane %v7878_v62, 4 }
  0xd9   : > { %1839 = vmatprep.subr.bf16.mxu0 %v6968_v16  ;;  %2044 = vmatprep.mubr.bf16.mxu1 %v7286_v2  ;;  %v7003_v16 = vld [vmem:[%s9426_s1 + $0x5a8] ss:$20 sps:$4 sm:$0xff]   ;;  %v7021_v20 = vld [vmem:[%s9426_s1 + $0x3ec] ss:$20 sps:$4 sm:$0xff]  }
  0xdc   : > { %1840 = vmatpush1.bf16.msra.mxu0 %v6966_v27  ;;  %v7008_v27 = vld [vmem:[%s9426_s1 + $0x5d4] ss:$20 sps:$4 sm:$0xff]  }
  0xdd   : > { %1841 = vmatprep.subr.bf16.mxu0 %v6974_v38  ;;  %v7002_v38 = vld [vmem:[%s9426_s1 + $0x380] ss:$20 sps:$4 sm:$0xff]  }
  0xdf   : > { %6328 = vmatmul.mubr.bf16.gmra.mrb[44].mxu0 %v7844_v44  ;;  %2045 = vmatmul.mubr.bf16.gmra.mrb[28].mxu1 %v8077_v23  ;;  %v6984_v44 = vld [vmem:[%s9426_s1 + $0x290] ss:$20 sps:$4 sm:$0xff]  }
  0xe0   : > { %1842 = vmatpush1.bf16.msra.mxu0 %v6972_v41  ;;  %1861 = vmatprep.mubr.bf16.mxu0 %v7286_v2  ;;  %v7006_v41 = vld [vmem:[%s9426_s1 + $0x5d0] ss:$20 sps:$4 sm:$0xff]  }
  0xe1   : > { %1843 = vmatprep.subr.bf16.mxu0 %v6980_v5  ;;  %2674 = vmatprep.mubr.bf16.mxu1 %v7286_v2  ;;  %v2242_v5 = vrot.slane %v7964_v33, 3 }
  0xe3   : > { %v2254_v35 = vsel %vm2248_vm2, %v2241_v48, %v2242_v5  ;;  %v2253_v58 = vsel %vm2248_vm2, %v2242_v5, %v2243_v54  ;;  %v2937_v48 = vrot.slane %v7908_v9, 4  ;;  %v2938_v5 = vrot.slane %v7912_v11, 4 }
  0xe4   : > { %1844 = vmatpush1.bf16.msra.mxu0 %v6978_v26  ;;  %v7012_v26 = vld [vmem:[%s9426_s1 + $0x5fc] ss:$20 sps:$4 sm:$0xff]  }
  0xe5   : > { %6331 = vmatprep.subr.bf16.mxu0 %v6984_v44  ;;  %v2958_v9 = vsel %vm2948_vm3, %v2937_v48, %v2938_v5 }
  0xe7   : > { %1862 = vmatmul.mubr.bf16.vlgmr.msra.gmra.mrb[0].mxu0 %v7875_v61  ;;  %2675 = vmatmul.mubr.bf16.vlgmr.msra.gmra.mrb[0].mxu1 %v8105_v18 }
  0xe8   : > { %6332 = vmatpush3.bf16.msra.mxu0 %v6984_v44  ;;  %1871 = vmatprep.mubr.bf16.mxu0 %v7286_v2  ;;  %v7015_v44 = vld [vmem:[%s9426_s1 + $0x624] ss:$20 sps:$4 sm:$0xff]  }
  0xe9   : > { %2684 = vmatprep.mubr.bf16.mxu1 %v7286_v2  ;;  %6333 = vmatprep.subr.bf16.mxu0 %v6985_v19 }
  0xea   : > { %3343 = vmatpush1.bf16.msra.mxu1 %v6989_v36  ;;  %v7018_v36 = vld [vmem:[%s9426_s1 + $0x3c4] ss:$20 sps:$4 sm:$0xff]  }
  0xeb   : > { %3344 = vmatprep.subr.bf16.mxu1 %v6994_v42  ;;  %v8222_v42 = vpack.c.bf16 %v2254_v35, %v2255_v39  ;;  %v2940_v35 = vrot.slane %v7942_v21, 4  ;;  %v7033_v39 = vld [vmem:[%s9426_s1 + $0x48c] ss:$20 sps:$4 sm:$0xff]  }
  0xec   : > { %6334 = vmatpush3.bf16.msra.mxu0 %v6985_v19  ;;  %v7013_v19 = vld [vmem:[%s9426_s1 + $0x620] ss:$20 sps:$4 sm:$0xff]  }
  0xed   : > { %6335 = vmatprep.subr.bf16.mxu0 %v6986_v50 }
  0xee   : > { %3345 = vmatpush1.bf16.msra.mxu1 %v6992_v57 }
  0xef   : > { %1872 = vmatmul.mubr.bf16.gmra.mrb[4].mxu0 %v7905_v59  ;;  %2685 = vmatmul.mubr.bf16.gmra.mrb[4].mxu1 %v8132_v3 }
  0xf0   : > { %1881 = vmatprep.mubr.bf16.mxu0 %v7286_v2  ;;  %2694 = vmatprep.mubr.bf16.mxu1 %v7286_v2 }
  0xf1   : > { %6336 = vmatpush3.bf16.msra.mxu0 %v6986_v50  ;;  %3346 = vmatprep.subr.bf16.mxu1 %v6998_v63  ;;  %v2244_v50 = vrot.slane %v7991_v52, 3  ;;  %v8240_v63 = vld [vmem:[%s7416_s16 + $0x68] sm:$0xff] }
  0xf2   : > { %6337 = vmatprep.subr.bf16.mxu0 %v6987_v1  ;;  %3347 = vmatpush1.bf16.msra.mxu1 %v6996_v34  ;;  %v2246_v34 = vrot.slane %v8027_v46, 3 }
  0xf3   : > { %3348 = vmatprep.subr.bf16.mxu1 %v7001_v4  ;;  %v2252_v57 = vsel %vm2248_vm2, %v2243_v54, %v2244_v50  ;;  %v2941_v54 = vrot.slane %v7954_v56, 4 }
  0xf4   : > { %v8237_v49 = vpack.c.bf16 %v2252_v57, %v2253_v58  ;;  %v7039_v57 = vld [vmem:[%s9426_s1 + $0x4dc] ss:$20 sps:$4 sm:$0xff]   ;;  %v7037_v58 = vld [vmem:[%s9426_s1 + $0x4d8] ss:$20 sps:$4 sm:$0xff]  }
  0xf5   : > { %6338 = vmatpush3.bf16.msra.mxu0 %v6987_v1  ;;  %v2245_v1 = vrot.slane %v8240_v63, 3 }
  0xf6   : > { %6339 = vmatprep.subr.bf16.mxu0 %v6988_v14  ;;  %3349 = vmatpush1.bf16.msra.mxu1 %v6999_v10 }
  0xf7   : > { %1882 = vmatmul.mubr.bf16.gmra.mrb[8].mxu0 %v7935_v45  ;;  %2695 = vmatmul.mubr.bf16.gmra.mrb[8].mxu1 %v8162_v32  ;;  %v2250_v4 = vsel %vm2248_vm2, %v2245_v1, %v2246_v34  ;;  %v2251_v8 = vsel %vm2248_vm2, %v2244_v50, %v2245_v1  ;;  %v2942_v50 = vrot.slane %v7964_v33, 4  ;;  %v2955_v33 = vsel %vm2948_vm3, %v2940_v35, %v2941_v54 }
  0xf8   : > { %1891 = vmatprep.mubr.bf16.mxu0 %v7286_v2  ;;  %2704 = vmatprep.mubr.bf16.mxu1 %v7286_v2  ;;  %v8252_v28 = vpack.c.bf16 %v2250_v4, %v2251_v8  ;;  %v2944_v4 = vrot.slane %v7991_v52, 4  ;;  %v7041_v8 = vld [vmem:[%s9426_s1 + $0x3f8] ss:$20 sps:$4 sm:$0xff]   ;;  %v7042_v52 = vld [vmem:[%s9426_s1 + $0x420] ss:$20 sps:$4 sm:$0xff]  }
  0xf9   : > { %6340 = vmatpush3.bf16.msra.mxu0 %v6988_v14  ;;  %3350 = vmatprep.subr.bf16.mxu1 %v7005_v13  ;;  %v2247_v14 = vrot.slane %v8031_v29, 3  ;;  %v2932_v13 = vrot.slane %v7847_v47, 4  ;;  %v2954_v56 = vsel %vm2948_vm3, %v2941_v54, %v2942_v50  ;;  %v7050_v47 = vld [vmem:[%s9426_s1 + $0x504] ss:$20 sps:$4 sm:$0xff]   ;;  %v7088_v54 = vld [vmem:[%s9429_s4 + $0x2a8] ss:$12 sps:$4 sm:$0xff]  }
  0xfa   : > { %6341 = vmatprep.subr.bf16.mxu0 %v6995_v22  ;;  %3351 = vmatpush1.bf16.msra.mxu1 %v7003_v16  ;;  %v2934_v16 = vrot.slane %v7855_v53, 4  ;;  %v7016_v53 = vld [vmem:[%s9426_s1 + $0x3c0] ss:$20 sps:$4 sm:$0xff]   ;;  %v8377_v1 = vpack.c.bf16 %v2954_v56, %v2955_v33 }
  0xfb   : > { %3352 = vmatprep.subr.bf16.mxu1 %v7008_v27  ;;  %v2249_v10 = vsel %vm2248_vm2, %v2246_v34, %v2247_v14  ;;  %v2264_v43 = vsel %vm2248_vm2, %v2247_v14, %v2232_v24  ;;  %v2943_v34 = vrot.slane %v8225_v37, 4  ;;  %v7090_v56 = vld [vmem:[%s9429_s4 + $0x2c0] ss:$12 sps:$4 sm:$0xff]  }
  0xfc   : > { %v8265_v12 = vpack.c.bf16 %v2264_v43, %v2249_v10  ;;  %v2945_v43 = vrot.slane %v8240_v63, 4 }
  0xfd   : > { %6342 = vmatpush3.bf16.msra.mxu0 %v6995_v22  ;;  %v2933_v22 = vrot.slane %v7851_v51, 4  ;;  %v2952_v14 = vsel %vm2948_vm3, %v2943_v34, %v2944_v4  ;;  %v2953_v37 = vsel %vm2948_vm3, %v2942_v50, %v2943_v34  ;;  %v8576_v50 = vsub.s32 2, %v7436_v30  ;;  %v7091_v34 = vld [vmem:[%s9429_s4 + $0x200] ss:$12 sps:$4 sm:$0xff]  }
  0xfe   : > { %6343 = vmatprep.subr.bf16.mxu0 %v7002_v38  ;;  %3353 = vmatpush1.bf16.msra.mxu1 %v7006_v41  ;;  %v8395_v10 = vpack.c.bf16 %v2952_v14, %v2953_v37  ;;  %v2951_v63 = vsel %vm2948_vm3, %v2944_v4, %v2945_v43  ;;  %v7092_v4 = vld [vmem:[%s9429_s4 + $0x2d8] ss:$12 sps:$4 sm:$0xff]   ;;  %v8613_v37 = vadd.s32 8, %v7436_v30 }
  0xff   : > { %1892 = vmatmul.mubr.bf16.gmra.mrb[12].mxu0 %v7974_v40  ;;  %2705 = vmatmul.mubr.bf16.gmra.mrb[12].mxu1 %v8192_v25  ;;  %v2962_v24 = vsel %vm2948_vm3, %v2933_v22, %v2934_v16  ;;  %v2963_v51 = vsel %vm2948_vm3, %v2932_v13, %v2933_v22  ;;  %v2946_v22 = vrot.slane %v8027_v46, 4  ;;  %v7044_v46 = vld [vmem:[%s9426_s1 + $0x470] ss:$20 sps:$4 sm:$0xff]  }
 0x100   : > { %1901 = vmatprep.mubr.bf16.mxu0 %v7286_v2  ;;  %2714 = vmatprep.mubr.bf16.mxu1 %v7286_v2  ;;  %v8281_v27 = vpack.c.bf16 %v2962_v24, %v2963_v51 }
 0x101   : > { %6344 = vmatpush3.bf16.msra.mxu0 %v7002_v38  ;;  %3354 = vmatprep.subr.bf16.mxu1 %v7012_v26  ;;  %v7019_v38 = vld [vmem:[%s9426_s1 + $0x3e8] ss:$20 sps:$4 sm:$0xff]   ;;  %v2950_v24 = vsel %vm2948_vm3, %v2945_v43, %v2946_v22 }
 0x102   : > { %6345 = vmatprep.subr.bf16.mxu0 %v7009_v31  ;;  %3355 = vmatpush1.bf16.msra.mxu1 %v7010_v6  ;;  %v7027_v26 = vld [vmem:[%s9426_s1 + $0x43c] ss:$20 sps:$4 sm:$0xff]   ;;  %v8413_v51 = vpack.c.bf16 %v2950_v24, %v2951_v63  ;;  %v7093_v24 = vld [vmem:[%s9429_s4 + $0x218] ss:$12 sps:$4 sm:$0xff]  }
 0x103   : > { %3356 = vmatprep.subr.bf16.mxu1 %v7015_v44  ;;  %v2939_v44 = vrot.slane %v7938_v55, 4 }
 0x105   : > { %6346 = vmatpush3.bf16.msra.mxu0 %v7009_v31  ;;  %v7025_v31 = vld [vmem:[%s9426_s1 + $0x438] ss:$20 sps:$4 sm:$0xff]   ;;  %v2956_v55 = vsel %vm2948_vm3, %v2939_v44, %v2940_v35  ;;  %v2957_v21 = vsel %vm2948_vm3, %v2938_v5, %v2939_v44  ;;  %v7060_v5 = vld [vmem:[%s9426_s1 + $0x5a0] ss:$20 sps:$4 sm:$0xff]  }
 0x106   : > { %3357 = vmatpush1.bf16.msra.mxu1 %v7013_v19  ;;  %2529 = vmatprep.subr.bf16.mxu0 %v7018_v36  ;;  %v7031_v19 = vld [vmem:[%s9426_s1 + $0x488] ss:$20 sps:$4 sm:$0xff]   ;;  %v8353_v36 = vpack.c.bf16 %v2956_v55, %v2957_v21  ;;  %v7077_v44 = vld [vmem:[%s9426_s1 + $0x5d8] ss:$20 sps:$4 sm:$0xff]   ;;  %v7078_v35 = vld [vmem:[%s9426_s1 + $0x600] ss:$20 sps:$4 sm:$0xff]  }
 0x107   : > { %1902 = vmatmul.mubr.bf16.gmra.mrb[16].mxu0 %v8004_v60  ;;  %2715 = vmatmul.mubr.bf16.gmra.mrb[16].mxu1 %v8222_v42  ;;  %v7081_v55 = vld [vmem:[%s9429_s4 + $0x188] ss:$12 sps:$4 sm:$0xff]   ;;  %v7082_v21 = vld [vmem:[%s9429_s4 + $0x260] ss:$12 sps:$4 sm:$0xff]  }
 0x108   : > { %1911 = vmatprep.mubr.bf16.mxu0 %v7286_v2  ;;  %2724 = vmatprep.mubr.bf16.mxu1 %v7286_v2 }
 0x10f   : > { %1912 = vmatmul.mubr.bf16.gmra.mrb[20].mxu0 %v8034_v7  ;;  %2725 = vmatmul.mubr.bf16.gmra.mrb[20].mxu1 %v8237_v49 }
 0x110   : > { %1921 = vmatprep.mubr.bf16.mxu0 %v7286_v2  ;;  %2734 = vmatprep.mubr.bf16.mxu1 %v7286_v2 }
 0x117   : > { %1922 = vmatmul.mubr.bf16.gmra.mrb[24].mxu0 %v8056_v15  ;;  %2735 = vmatmul.mubr.bf16.gmra.mrb[24].mxu1 %v8252_v28 }
 0x118   : > { %1931 = vmatprep.mubr.bf16.mxu0 %v7286_v2  ;;  %2744 = vmatprep.mubr.bf16.mxu1 %v7286_v2 }
 0x11f   : > { %1932 = vmatmul.mubr.bf16.gmra.mrb[28].mxu0 %v8077_v23  ;;  %2745 = vmatmul.mubr.bf16.gmra.mrb[28].mxu1 %v8265_v12 }
 0x120   : > { %6347 = vmatprep.mubr.bf16.mxu0 %v7875_v61  ;;  %3374 = vmatprep.mubr.bf16.mxu1 %v7286_v2  ;;  %v2936_v61 = vrot.slane %v7882_v0, 4  ;;  %v2961_v0 = vsel %vm2948_vm3, %v2934_v16, %v2935_v17  ;;  %v7043_v16 = vld [vmem:[%s9426_s1 + $0x448] ss:$20 sps:$4 sm:$0xff]  }
 0x122   : > { %v2960_v62 = vsel %vm2948_vm3, %v2935_v17, %v2936_v61  ;;  %v2959_v11 = vsel %vm2948_vm3, %v2936_v61, %v2937_v48  ;;  %v7045_v17 = vld [vmem:[%s9426_s1 + $0x498] ss:$20 sps:$4 sm:$0xff]  }
 0x123   : > { %v8305_v41 = vpack.c.bf16 %v2960_v62, %v2961_v0  ;;  %v8329_v6 = vpack.c.bf16 %v2958_v9, %v2959_v11  ;;  %v7047_v62 = vld [vmem:[%s9426_s1 + $0x4e8] ss:$20 sps:$4 sm:$0xff]   ;;  %v7053_v0 = vld [vmem:[%s9426_s1 + $0x52c] ss:$20 sps:$4 sm:$0xff]   ;;  %v7062_v48 = vld [vmem:[%s9426_s1 + $0x5a4] ss:$20 sps:$4 sm:$0xff]  }
 0x124   : > { %v7072_v9 = vld [vmem:[%s9426_s1 + $0x510] ss:$20 sps:$4 sm:$0xff]   ;;  %v7073_v11 = vld [vmem:[%s9426_s1 + $0x538] ss:$20 sps:$4 sm:$0xff]  }
 0x127   : > { %6348 = vmatmul.mubr.bf16.vlgmr.msra.gmra.mrb[32].mxu0 %v7905_v59  ;;  %3375 = vmatmul.mubr.bf16.vlgmr.msra.gmra.mrb[0].mxu1 %v8281_v27  ;;  %v7024_v59 = vld [vmem:[%s9426_s1 + $0x414] ss:$20 sps:$4 sm:$0xff]  }
 0x128   : > { %2530 = vmatpush1.bf16.msra.mxu0 %v7016_v53  ;;  %6351 = vmatprep.mubr.bf16.mxu0 %v7935_v45  ;;  %v7022_v45 = vld [vmem:[%s9426_s1 + $0x410] ss:$20 sps:$4 sm:$0xff]   ;;  %v2947_v53 = vrot.slane %v8031_v29, 4 }
 0x129   : > { %2531 = vmatprep.subr.bf16.mxu0 %v7021_v20  ;;  %3384 = vmatprep.mubr.bf16.mxu1 %v7286_v2  ;;  %v7046_v20 = vld [vmem:[%s9426_s1 + $0x4c0] ss:$20 sps:$4 sm:$0xff]  }
 0x12a   : > { %v2949_v61 = vsel %vm2948_vm3, %v2946_v22, %v2947_v53  ;;  %v2964_v29 = vsel %vm2948_vm3, %v2947_v53, %v2932_v13  ;;  %v7048_v13 = vld [vmem:[%s9426_s1 + $0x500] ss:$20 sps:$4 sm:$0xff]   ;;  %v7094_v53 = vld [vmem:[%s9429_s4 + $0x2f0] ss:$12 sps:$4 sm:$0xff]  }
 0x12c   : > { %2532 = vmatpush1.bf16.msra.mxu0 %v7019_v38  ;;  %v8432_v38 = vpack.c.bf16 %v2964_v29, %v2949_v61 }
 0x12d   : > { %2533 = vmatprep.subr.bf16.mxu0 %v7024_v59  ;;  %v7051_v59 = vld [vmem:[%s9426_s1 + $0x528] ss:$20 sps:$4 sm:$0xff]  }
 0x12f   : > { %6352 = vmatmul.mubr.bf16.gmra.mrb[36].mxu0 %v7974_v40  ;;  %3385 = vmatmul.mubr.bf16.gmra.mrb[4].mxu1 %v8305_v41  ;;  %v7030_v40 = vld [vmem:[%s9426_s1 + $0x464] ss:$20 sps:$4 sm:$0xff]  }
 0x130   : > { %2534 = vmatpush1.bf16.msra.mxu0 %v7022_v45  ;;  %6355 = vmatprep.mubr.bf16.mxu0 %v8004_v60  ;;  %v7028_v60 = vld [vmem:[%s9426_s1 + $0x460] ss:$20 sps:$4 sm:$0xff]   ;;  %v7054_v45 = vld [vmem:[%s9426_s1 + $0x550] ss:$20 sps:$4 sm:$0xff]  }
 0x131   : > { %2535 = vmatprep.subr.bf16.mxu0 %v7027_v26  ;;  %3394 = vmatprep.mubr.bf16.mxu1 %v7286_v2  ;;  %v7068_v26 = vld [vmem:[%s9426_s1 + $0x5f4] ss:$20 sps:$4 sm:$0xff]  }
 0x134   : > { %2536 = vmatpush1.bf16.msra.mxu0 %v7025_v31  ;;  %v7066_v31 = vld [vmem:[%s9426_s1 + $0x5f0] ss:$20 sps:$4 sm:$0xff]  }
 0x135   : > { %2537 = vmatprep.subr.bf16.mxu0 %v7030_v40  ;;  %v7075_v40 = vld [vmem:[%s9426_s1 + $0x588] ss:$20 sps:$4 sm:$0xff]  }
 0x137   : > { %6356 = vmatmul.mubr.bf16.gmra.mrb[40].mxu0 %v8034_v7  ;;  %3395 = vmatmul.mubr.bf16.gmra.mrb[8].mxu1 %v8329_v6  ;;  %v7036_v7 = vld [vmem:[%s9426_s1 + $0x4b4] ss:$20 sps:$4 sm:$0xff]  }
 0x138   : > { %2538 = vmatpush1.bf16.msra.mxu0 %v7028_v60  ;;  %6359 = vmatprep.mubr.bf16.mxu0 %v8056_v15  ;;  %v7034_v15 = vld [vmem:[%s9426_s1 + $0x4b0] ss:$20 sps:$4 sm:$0xff]  }
 0x139   : > { %2539 = vmatprep.subr.bf16.mxu0 %v7033_v39  ;;  %3404 = vmatprep.mubr.bf16.mxu1 %v7286_v2  ;;  %v7076_v60 = vld [vmem:[%s9426_s1 + $0x5b0] ss:$20 sps:$4 sm:$0xff]   ;;  %v7079_v39 = vld [vmem:[%s9426_s1 + $0x628] ss:$20 sps:$4 sm:$0xff]  }
 0x13c   : > { %2540 = vmatpush1.bf16.msra.mxu0 %v7031_v19  ;;  %v7080_v19 = vld [vmem:[%s9429_s4 + $0x248] ss:$12 sps:$4 sm:$0xff]  }
 0x13d   : > { %2541 = vmatprep.subr.bf16.mxu0 %v7036_v7  ;;  %v7083_v7 = vld [vmem:[%s9429_s4 + $0x1a0] ss:$12 sps:$4 sm:$0xff]  }
 0x13f   : > { %6360 = vmatmul.mubr.bf16.gmra.mrb[44].mxu0 %v8077_v23  ;;  %3405 = vmatmul.mubr.bf16.gmra.mrb[12].mxu1 %v8353_v36  ;;  %v7040_v23 = vld [vmem:[%s9426_s1 + $0x3d0] ss:$20 sps:$4 sm:$0xff]  }
 0x140   : > { %2542 = vmatpush1.bf16.msra.mxu0 %v7034_v15  ;;  %2561 = vmatprep.mubr.bf16.mxu0 %v7286_v2  ;;  %v7085_v15 = vld [vmem:[%s9429_s4 + $0x1b8] ss:$12 sps:$4 sm:$0xff]  }
 0x141   : > { %2543 = vmatprep.subr.bf16.mxu0 %v7039_v57  ;;  %3414 = vmatprep.mubr.bf16.mxu1 %v7286_v2  ;;  %v8581_v57 = vld [vmem:[%s9427_s2] sm:$0x1f] }
 0x142   : > { %v8593_v33 = vrot.slane %v8581_v57, %v8576_v50 }
 0x144   : > { %2544 = vmatpush1.bf16.msra.mxu0 %v7037_v58  ;;  %v7089_v58 = vld [vmem:[%s9429_s4 + $0x1e8] ss:$12 sps:$4 sm:$0xff]  }
 0x145   : > { %6363 = vmatprep.subr.bf16.mxu0 %v7040_v23 }
 0x147   : > { %2562 = vmatmul.mubr.bf16.vlgmr.msra.gmra.mrb[0].mxu0 %v8105_v18  ;;  %3415 = vmatmul.mubr.bf16.gmra.mrb[16].mxu1 %v8377_v1 }
 0x148   : > { %6364 = vmatpush3.bf16.msra.mxu0 %v7040_v23  ;;  %2571 = vmatprep.mubr.bf16.mxu0 %v7286_v2  ;;  %v8598_v23 = vld [vmem:[%s9428_s3] sm:$0x1f] }
 0x149   : > { %3424 = vmatprep.mubr.bf16.mxu1 %v7286_v2  ;;  %6365 = vmatprep.subr.bf16.mxu0 %v7041_v8  ;;  %v3832_v14 = vrot.slane %v8598_v23, %v8576_v50 }
 0x14b   : > { %vm8626_vm4 = vcmp.lt.s32.totalorder %v7436_v30, %v3832_v14  ;;  %vm8631_vm5 = vcmp.lt.s32.totalorder %v8613_v37, %v3832_v14 }
 0x14c   : > { %6366 = vmatpush3.bf16.msra.mxu0 %v7041_v8 }
 0x14d   : > { %6367 = vmatprep.subr.bf16.mxu0 %v7042_v52 }
 0x14f   : > { %2572 = vmatmul.mubr.bf16.gmra.mrb[4].mxu0 %v8132_v3  ;;  %3425 = vmatmul.mubr.bf16.gmra.mrb[20].mxu1 %v8395_v10 }
 0x150   : > { %2581 = vmatprep.mubr.bf16.mxu0 %v7286_v2  ;;  %3434 = vmatprep.mubr.bf16.mxu1 %v7286_v2 }
 0x151   : > { %6368 = vmatpush3.bf16.msra.mxu0 %v7042_v52 }
 0x152   : > { %6369 = vmatprep.subr.bf16.mxu0 %v7043_v16 }
 0x155   : > { %6370 = vmatpush3.bf16.msra.mxu0 %v7043_v16 }
 0x156   : > { %6371 = vmatprep.subr.bf16.mxu0 %v7044_v46 }
 0x157   : > { %2582 = vmatmul.mubr.bf16.gmra.mrb[8].mxu0 %v8162_v32  ;;  %3435 = vmatmul.mubr.bf16.gmra.mrb[24].mxu1 %v8413_v51 }
 0x158   : > { %2591 = vmatprep.mubr.bf16.mxu0 %v7286_v2  ;;  %3444 = vmatprep.mubr.bf16.mxu1 %v7286_v2 }
 0x159   : > { %6372 = vmatpush3.bf16.msra.mxu0 %v7044_v46 }
 0x15a   : > { %6373 = vmatprep.subr.bf16.mxu0 %v7045_v17 }
 0x15d   : > { %6374 = vmatpush3.bf16.msra.mxu0 %v7045_v17 }
 0x15e   : > { %6375 = vmatprep.subr.bf16.mxu0 %v7046_v20 }
 0x15f   : > { %2592 = vmatmul.mubr.bf16.gmra.mrb[12].mxu0 %v8192_v25  ;;  %3445 = vmatmul.mubr.bf16.gmra.mrb[28].mxu1 %v8432_v38 }
 0x160   : > { %2601 = vmatprep.mubr.bf16.mxu0 %v7286_v2 }
 0x161   : > { %6376 = vmatpush3.bf16.msra.mxu0 %v7046_v20 }
 0x162   : > { %6377 = vmatprep.subr.bf16.mxu0 %v7047_v62 }
 0x165   : > { %6378 = vmatpush3.bf16.msra.mxu0 %v7047_v62  ;;  %v7122_v62 = vld [vmem:[%s9429_s4 + $0xc4] ss:$12 sps:$4 sm:$0xff]  }
 0x166   : > { %3229 = vmatprep.subr.bf16.mxu0 %v7050_v47 }
 0x167   : > { %2602 = vmatmul.mubr.bf16.gmra.mrb[16].mxu0 %v8222_v42 }
 0x168   : > { %2611 = vmatprep.mubr.bf16.mxu0 %v7286_v2 }
 0x16f   : > { %2612 = vmatmul.mubr.bf16.gmra.mrb[20].mxu0 %v8237_v49 }
 0x170   : > { %2621 = vmatprep.mubr.bf16.mxu0 %v7286_v2 }
 0x177   : > { %2622 = vmatmul.mubr.bf16.gmra.mrb[24].mxu0 %v8252_v28 }
 0x178   : > { %2631 = vmatprep.mubr.bf16.mxu0 %v7286_v2 }
 0x17f   : > { %2632 = vmatmul.mubr.bf16.gmra.mrb[28].mxu0 %v8265_v12 }
 0x180   : > { %6379 = vmatprep.mubr.bf16.mxu0 %v8105_v18  ;;  %v7056_v18 = vld [vmem:[%s9426_s1 + $0x554] ss:$20 sps:$4 sm:$0xff]  }
 0x187   : > { %6380 = vmatmul.mubr.bf16.vlgmr.msra.gmra.mrb[32].mxu0 %v8132_v3  ;;  %v7059_v3 = vld [vmem:[%s9426_s1 + $0x57c] ss:$20 sps:$4 sm:$0xff]  }
 0x188   : > { %3230 = vmatpush1.bf16.msra.mxu0 %v7048_v13  ;;  %6383 = vmatprep.mubr.bf16.mxu0 %v8162_v32  ;;  %v7057_v32 = vld [vmem:[%s9426_s1 + $0x578] ss:$20 sps:$4 sm:$0xff]   ;;  %v7125_v13 = vld [vmem:[%s9429_s4 + $0xdc] ss:$12 sps:$4 sm:$0xff]  }
 0x189   : > { %3231 = vmatprep.subr.bf16.mxu0 %v7053_v0 }
 0x18c   : > { %3232 = vmatpush1.bf16.msra.mxu0 %v7051_v59  ;;  %v7095_v59 = vld [vmem:[%s9429_s4 + $0x230] ss:$12 sps:$4 sm:$0xff]  }
 0x18d   : > { %3233 = vmatprep.subr.bf16.mxu0 %v7056_v18 }
 0x18f   : > { %6384 = vmatmul.mubr.bf16.gmra.mrb[36].mxu0 %v8192_v25  ;;  %v7065_v25 = vld [vmem:[%s9426_s1 + $0x5cc] ss:$20 sps:$4 sm:$0xff]  }
 0x190   : > { %3234 = vmatpush1.bf16.msra.mxu0 %v7054_v45  ;;  %6387 = vmatprep.mubr.bf16.mxu0 %v8222_v42  ;;  %v7063_v42 = vld [vmem:[%s9426_s1 + $0x5c8] ss:$20 sps:$4 sm:$0xff]  }
 0x191   : > { %3235 = vmatprep.subr.bf16.mxu0 %v7059_v3 }
 0x194   : > { %3236 = vmatpush1.bf16.msra.mxu0 %v7057_v32 }
 0x195   : > { %3237 = vmatprep.subr.bf16.mxu0 %v7062_v48 }
 0x197   : > { %6388 = vmatmul.mubr.bf16.gmra.mrb[40].mxu0 %v8237_v49  ;;  %v7071_v49 = vld [vmem:[%s9426_s1 + $0x61c] ss:$20 sps:$4 sm:$0xff]  }
 0x198   : > { %3238 = vmatpush1.bf16.msra.mxu0 %v7060_v5  ;;  %6391 = vmatprep.mubr.bf16.mxu0 %v8252_v28  ;;  %v7069_v28 = vld [vmem:[%s9426_s1 + $0x618] ss:$20 sps:$4 sm:$0xff]  }
 0x199   : > { %3239 = vmatprep.subr.bf16.mxu0 %v7065_v25 }
 0x19c   : > { %3240 = vmatpush1.bf16.msra.mxu0 %v7063_v42 }
 0x19d   : > { %3241 = vmatprep.subr.bf16.mxu0 %v7068_v26 }
 0x19f   : > { %6392 = vmatmul.mubr.bf16.gmra.mrb[44].mxu0 %v8265_v12  ;;  %v7074_v12 = vld [vmem:[%s9426_s1 + $0x560] ss:$20 sps:$4 sm:$0xff]  }
 0x1a0   : > { %3242 = vmatpush1.bf16.msra.mxu0 %v7066_v31  ;;  %3261 = vmatprep.mubr.bf16.mxu0 %v7286_v2 }
 0x1a1   : > { %3243 = vmatprep.subr.bf16.mxu0 %v7071_v49 }
 0x1a4   : > { %3244 = vmatpush1.bf16.msra.mxu0 %v7069_v28 }
 0x1a5   : > { %6395 = vmatprep.subr.bf16.mxu0 %v7072_v9 }
 0x1a7   : > { %3262 = vmatmul.mubr.bf16.vlgmr.msra.gmra.mrb[0].mxu0 %v8281_v27 }
 0x1a8   : > { %3271 = vmatprep.mubr.bf16.mxu0 %v7286_v2  ;;  %6396 = vmatpush3.bf16.msra.mxu0 %v7072_v9 }
 0x1a9   : > { %6397 = vmatprep.subr.bf16.mxu0 %v7073_v11 }
 0x1ac   : > { %6398 = vmatpush3.bf16.msra.mxu0 %v7073_v11 }
 0x1ad   : > { %6399 = vmatprep.subr.bf16.mxu0 %v7074_v12 }
 0x1af   : > { %3272 = vmatmul.mubr.bf16.gmra.mrb[4].mxu0 %v8305_v41 }
 0x1b0   : > { %3281 = vmatprep.mubr.bf16.mxu0 %v7286_v2  ;;  %6400 = vmatpush3.bf16.msra.mxu0 %v7074_v12 }
 0x1b1   : > { %6401 = vmatprep.subr.bf16.mxu0 %v7075_v40 }
 0x1b4   : > { %6402 = vmatpush3.bf16.msra.mxu0 %v7075_v40 }
 0x1b5   : > { %6403 = vmatprep.subr.bf16.mxu0 %v7076_v60 }
 0x1b7   : > { %3282 = vmatmul.mubr.bf16.gmra.mrb[8].mxu0 %v8329_v6 }
 0x1b8   : > { %3291 = vmatprep.mubr.bf16.mxu0 %v7286_v2  ;;  %6404 = vmatpush3.bf16.msra.mxu0 %v7076_v60 }
 0x1b9   : > { %6405 = vmatprep.subr.bf16.mxu0 %v7077_v44 }
 0x1bc   : > { %6406 = vmatpush3.bf16.msra.mxu0 %v7077_v44 }
 0x1bd   : > { %6407 = vmatprep.subr.bf16.mxu0 %v7078_v35 }
 0x1bf   : > { %3292 = vmatmul.mubr.bf16.gmra.mrb[12].mxu0 %v8353_v36 }
 0x1c0   : > { %3301 = vmatprep.mubr.bf16.mxu0 %v7286_v2  ;;  %6408 = vmatpush3.bf16.msra.mxu0 %v7078_v35 }
 0x1c1   : > { %6409 = vmatprep.subr.bf16.mxu0 %v7079_v39 }
 0x1c4   : > { %6410 = vmatpush3.bf16.msra.mxu0 %v7079_v39 }
 0x1c5   : > { %6209 = vmatprep.subr.bf16.mxu0 %v7080_v19 }
 0x1c7   : > { %3302 = vmatmul.mubr.bf16.gmra.mrb[16].mxu0 %v8377_v1 }
 0x1c8   : > { %3311 = vmatprep.mubr.bf16.mxu0 %v7286_v2 }
 0x1cf   : > { %3312 = vmatmul.mubr.bf16.gmra.mrb[20].mxu0 %v8395_v10 }
 0x1d0   : > { %3321 = vmatprep.mubr.bf16.mxu0 %v7286_v2 }
 0x1d7   : > { %3322 = vmatmul.mubr.bf16.gmra.mrb[24].mxu0 %v8413_v51 }
 0x1d8   : > { %3331 = vmatprep.mubr.bf16.mxu0 %v7286_v2 }
 0x1df   : > { %3332 = vmatmul.mubr.bf16.gmra.mrb[28].mxu0 %v8432_v38 }
 0x1e0   : > { %6411 = vmatprep.mubr.bf16.mxu0 %v8281_v27  ;;  %v7084_v27 = vld [vmem:[%s9429_s4 + $0x278] ss:$12 sps:$4 sm:$0xff]  }
 0x1e7   : > { %6412 = vmatmul.mubr.bf16.vlgmr.msra.gmra.mrb[32].mxu0 %v8305_v41  ;;  %v7086_v41 = vld [vmem:[%s9429_s4 + $0x290] ss:$12 sps:$4 sm:$0xff]  }
 0x1e8   : > { %6415 = vmatprep.mubr.bf16.mxu0 %v8329_v6  ;;  %6210 = vmatpush3.bf16.msra.mxu0 %v7081_v55  ;;  %v7087_v6 = vld [vmem:[%s9429_s4 + $0x1d0] ss:$12 sps:$4 sm:$0xff]  }
 0x1e9   : > { %6211 = vmatprep.subr.bf16.mxu0 %v7082_v21 }
 0x1ec   : > { %6212 = vmatpush3.bf16.msra.mxu0 %v7083_v7 }
 0x1ed   : > { %6213 = vmatprep.subr.bf16.mxu0 %v7084_v27 }
 0x1ef   : > { %6416 = vmatmul.mubr.bf16.gmra.mrb[36].mxu0 %v8353_v36  ;;  %v3648_v36 = vsub.s32 3, %v7436_v30 }
 0x1f0   : > { %6419 = vmatprep.mubr.bf16.mxu0 %v8377_v1  ;;  %6214 = vmatpush3.bf16.msra.mxu0 %v7085_v15 }
 0x1f1   : > { %6215 = vmatprep.subr.bf16.mxu0 %v7086_v41  ;;  %v8601_v1 = vrot.slane %v8581_v57, %v3648_v36  ;;  %v3836_v43 = vrot.slane %v8598_v23, %v3648_v36 }
 0x1f3   : > { %vm8637_vm6 = vcmp.lt.s32.totalorder %v7436_v30, %v3836_v43  ;;  %vm8642_vm7 = vcmp.lt.s32.totalorder %v8613_v37, %v3836_v43 }
 0x1f4   : > { %6216 = vmatpush3.bf16.msra.mxu0 %v7087_v6 }
 0x1f5   : > { %6217 = vmatprep.subr.bf16.mxu0 %v7088_v54 }
 0x1f7   : > { %6420 = vmatmul.mubr.bf16.gmra.mrb[40].mxu0 %v8395_v10 }
 0x1f8   : > { %6423 = vmatprep.mubr.bf16.mxu0 %v8413_v51  ;;  %6218 = vmatpush3.bf16.msra.mxu0 %v7089_v58 }
 0x1f9   : > { %6219 = vmatprep.subr.bf16.mxu0 %v7090_v56 }
 0x1fa   : > { %v3376_v8 = vpop.f32.mrb[0].mxu1 }
 0x1fb   : > { %v3661_v52 = vadd.f32 %v8593_v33, %v3376_v8  ;;  %v3378_v10 = vpop.f32.mrb[1].mxu1 }
 0x1fc   : > { %v3662_v22 = vadd.f32 %v8601_v1, %v3378_v10  ;;  %v3380_v16 = vpop.f32.mrb[2].mxu1  ;;  %6220 = vmatpush3.bf16.msra.mxu0 %v7091_v34 }
 0x1fd   : > { %v3741_v63 = vmax.f32 %v3661_v52, 0.0  ;;  %v3666_v46 = vadd.f32 %v8593_v33, %v3380_v16  ;;  %v3382_v51 = vpop.f32.mrb[3].mxu1  ;;  %6221 = vmatprep.subr.bf16.mxu0 %v7092_v4 }
 0x1fe   : > { %v3742_v61 = vmax.f32 %v3662_v22, 0.0  ;;  %v3667_v20 = vadd.f32 %v8601_v1, %v3382_v51 }
 0x1ff   : > { %v3746_v47 = vmax.f32 %v3666_v46, 0.0  ;;  %6424 = vmatmul.mubr.bf16.gmra.mrb[44].mxu0 %v8432_v38  ;;  %v3853_v18 = vsel %vm8626_vm4, %v3741_v63, 0.0 }
 0x200   : > { %v3747_v0 = vmax.f32 %v3667_v20, 0.0  ;;  %6222 = vmatpush3.bf16.msra.mxu0 %v7093_v24  ;;  %v3854_v3 = vsel %vm8637_vm6, %v3742_v61, 0.0 }
 0x201   : > { %v3858_v45 = vsel %vm8631_vm5, %v3746_v47, 0.0  ;;  %6223 = vmatprep.subr.bf16.mxu0 %v7094_v53 }
 0x202   : > { %v3945_v32 = vmax.f32 %v3853_v18, %v3858_v45  ;;  %v3859_v38 = vsel %vm8642_vm7, %v3747_v0, 0.0  ;;  %v3386_v48 = vpop.f32.mrb[4].mxu1 }
 0x203   : > { %v3952_v5 = vmax.f32 %v3854_v3, %v3859_v38  ;;  %v3671_v25 = vadd.f32 %v8593_v33, %v3386_v48  ;;  %v3388_v42 = vpop.f32.mrb[5].mxu1 }
 0x204   : > { %v3946_v26 = vrot.slane %v3945_v32, 4  ;;  %v3672_v31 = vadd.f32 %v8601_v1, %v3388_v42  ;;  %v3390_v49 = vpop.f32.mrb[6].mxu1  ;;  %6224 = vmatpush3.bf16.msra.mxu0 %v7095_v59 }
 0x205   : > { %v3953_v28 = vrot.slane %v3952_v5, 4  ;;  %v3751_v9 = vmax.f32 %v3671_v25, 0.0  ;;  %v3676_v11 = vadd.f32 %v8593_v33, %v3390_v49  ;;  %v3392_v12 = vpop.f32.mrb[7].mxu1 }
 0x206   : > { %v3947_v40 = vmax.f32 %v3945_v32, %v3946_v26  ;;  %v3752_v60 = vmax.f32 %v3672_v31, 0.0  ;;  %v3677_v44 = vadd.f32 %v8601_v1, %v3392_v12 }
 0x207   : > { %v3954_v35 = vmax.f32 %v3952_v5, %v3953_v28  ;;  %v3756_v39 = vmax.f32 %v3676_v11, 0.0  ;;  %v3863_v7 = vsel %vm8626_vm4, %v3751_v9, 0.0 }
 0x208   : > { %v3948_v19 = vrot.slane %v3947_v40, 2  ;;  %v3757_v55 = vmax.f32 %v3677_v44, 0.0  ;;  %v3864_v41 = vsel %vm8637_vm6, %v3752_v60, 0.0 }
 0x209   : > { %v3955_v21 = vrot.slane %v3954_v35, 2  ;;  %v3868_v27 = vsel %vm8631_vm5, %v3756_v39, 0.0 }
 0x20a   : > { %v3949_v15 = vmax.f32 %v3947_v40, %v3948_v19  ;;  %v3980_v6 = vmax.f32 %v3863_v7, %v3868_v27  ;;  %v3869_v54 = vsel %vm8642_vm7, %v3757_v55, 0.0  ;;  %v3396_v36 = vpop.f32.mrb[8].mxu1 }
 0x20b   : > { %v3956_v58 = vmax.f32 %v3954_v35, %v3955_v21  ;;  %v3987_v56 = vmax.f32 %v3864_v41, %v3869_v54  ;;  %v3681_v34 = vadd.f32 %v8593_v33, %v3396_v36  ;;  %v3398_v4 = vpop.f32.mrb[9].mxu1 }
 0x20c   : > { %v3950_v8 = vrot.slane %v3949_v15, 1  ;;  %v3981_v14 = vrot.slane %v3980_v6, 4  ;;  %v3682_v52 = vadd.f32 %v8601_v1, %v3398_v4  ;;  %v3400_v10 = vpop.f32.mrb[10].mxu1 }
 0x20d   : > { %v3957_v43 = vrot.slane %v3956_v58, 1  ;;  %v3988_v22 = vrot.slane %v3987_v56, 4  ;;  %v3761_v16 = vmax.f32 %v3681_v34, 0.0  ;;  %v3686_v24 = vadd.f32 %v8593_v33, %v3400_v10  ;;  %v3402_v63 = vpop.f32.mrb[11].mxu1 }
 0x20e   : > { %v3951_v46 = vmax.f32 %v3949_v15, %v3950_v8  ;;  %v3982_v51 = vmax.f32 %v3980_v6, %v3981_v14  ;;  %v3762_v53 = vmax.f32 %v3682_v52, 0.0  ;;  %v3687_v61 = vadd.f32 %v8601_v1, %v3402_v63 }
 0x20f   : > { %v3958_v20 = vmax.f32 %v3956_v58, %v3957_v43  ;;  %v3989_v47 = vmax.f32 %v3987_v56, %v3988_v22  ;;  %v3766_v0 = vmax.f32 %v3686_v24, 0.0  ;;  %v3873_v32 = vsel %vm8626_vm4, %v3761_v16, 0.0 }
 0x210   : > { %v4213_v59 = vpack.c.bf16 %v3951_v46, %v3951_v46  ;;  %v3983_v18 = vrot.slane %v3982_v51, 2  ;;  %v3767_v45 = vmax.f32 %v3687_v61, 0.0  ;;  %v3874_v5 = vsel %vm8637_vm6, %v3762_v53, 0.0  ;;  %v7098_v53 = vld [vmem:[%s9429_s4 + $0x4] ss:$12 sps:$4 sm:$0xff]  }
 0x211   : > { %v3990_v3 = vrot.slane %v3989_v47, 2  ;;  %v3878_v38 = vsel %vm8631_vm5, %v3766_v0, 0.0  ;;  %v4214_v31 = vpack.c.bf16 %v3958_v20, %v3958_v20  ;;  %5200 = vmatprep.subr.bf16.mxu1 %v7098_v53 }
 0x212   : > { %v3984_v48 = vmax.f32 %v3982_v51, %v3983_v18  ;;  %v4015_v25 = vmax.f32 %v3873_v32, %v3878_v38  ;;  %v3879_v42 = vsel %vm8642_vm7, %v3767_v45, 0.0  ;;  %v3406_v26 = vpop.f32.mrb[12].mxu1  ;;  %v4470_v12 = vunpack.c.l.b16 %v4213_v59  ;;  %v7096_v18 = vld [vmem:[%s9429_s4] ss:$12 sps:$4 sm:$0xff]  }
 0x213   : > { %v3991_v49 = vmax.f32 %v3989_v47, %v3990_v3  ;;  %v4022_v28 = vmax.f32 %v3874_v5, %v3879_v42  ;;  %v3691_v9 = vadd.f32 %v8593_v33, %v3406_v26  ;;  %v3408_v11 = vpop.f32.mrb[13].mxu1  ;;  %v4471_v54 = vunpack.c.l.b16 %v4214_v31  ;;  %5201 = vmatpush1.bf16.msra.mxu1 %v7096_v18 }
 0x214   : > { %v3985_v40 = vrot.slane %v3984_v48, 1  ;;  %v4016_v60 = vrot.slane %v4015_v25, 4  ;;  %v3692_v44 = vadd.f32 %v8601_v1, %v3408_v11  ;;  %v3410_v35 = vpop.f32.mrb[14].mxu1 }
 0x215   : > { %v3992_v39 = vrot.slane %v3991_v49, 1  ;;  %v4023_v19 = vrot.slane %v4022_v28, 4  ;;  %v3771_v55 = vmax.f32 %v3691_v9, 0.0  ;;  %v3696_v21 = vadd.f32 %v8593_v33, %v3410_v35  ;;  %v3412_v7 = vpop.f32.mrb[15].mxu1  ;;  %v7099_v35 = vld [vmem:[%s9429_s4 + $0x18] ss:$12 sps:$4 sm:$0xff]  }
 0x216   : > { %v3986_v27 = vmax.f32 %v3984_v48, %v3985_v40  ;;  %v4017_v15 = vmax.f32 %v4015_v25, %v4016_v60  ;;  %v3772_v41 = vmax.f32 %v3692_v44, 0.0  ;;  %v3697_v6 = vadd.f32 %v8601_v1, %v3412_v7 }
 0x217   : > { %v3993_v36 = vmax.f32 %v3991_v49, %v3992_v39  ;;  %v4024_v58 = vmax.f32 %v4022_v28, %v4023_v19  ;;  %v3776_v56 = vmax.f32 %v3696_v21, 0.0  ;;  %v3883_v8 = vsel %vm8626_vm4, %v3771_v55, 0.0 }
 0x218   : > { %v4218_v34 = vpack.c.bf16 %v3986_v27, %v3986_v27  ;;  %v4018_v4 = vrot.slane %v4017_v15, 2  ;;  %v3777_v14 = vmax.f32 %v3697_v6, 0.0  ;;  %v3884_v43 = vsel %vm8637_vm6, %v3772_v41, 0.0 }
 0x219   : > { %v4219_v52 = vpack.c.bf16 %v3993_v36, %v3993_v36  ;;  %v4025_v10 = vrot.slane %v4024_v58, 2  ;;  %v3888_v22 = vsel %vm8631_vm5, %v3776_v56, 0.0  ;;  %v7104_v56 = vld [vmem:[%s9429_s4 + $0x34] ss:$12 sps:$4 sm:$0xff]  }
 0x21a   : > { %v4475_v16 = vunpack.c.l.b16 %v4218_v34  ;;  %v4019_v24 = vmax.f32 %v4017_v15, %v4018_v4  ;;  %v4050_v63 = vmax.f32 %v3883_v8, %v3888_v22  ;;  %v3889_v46 = vsel %vm8642_vm7, %v3777_v14, 0.0  ;;  %v3416_v51 = vpop.f32.mrb[16].mxu1 }
 0x21b   : > { %v4476_v61 = vunpack.c.l.b16 %v4219_v52  ;;  %v4026_v20 = vmax.f32 %v4024_v58, %v4025_v10  ;;  %v4057_v47 = vmax.f32 %v3884_v43, %v3889_v46  ;;  %v3701_v0 = vadd.f32 %v8593_v33, %v3416_v51  ;;  %v3418_v59 = vpop.f32.mrb[17].mxu1  ;;  %v7102_v10 = vld [vmem:[%s9429_s4 + $0x30] ss:$12 sps:$4 sm:$0xff]  }
 0x21c   : > { %v4529_v45 = vsel %vm4508_vm8, %v4475_v16, %v4470_v12  ;;  %v4020_v3 = vrot.slane %v4019_v24, 1  ;;  %v4051_v32 = vrot.slane %v4050_v63, 4  ;;  %v3702_v38 = vadd.f32 %v8601_v1, %v3418_v59  ;;  %v3420_v48 = vpop.f32.mrb[18].mxu1  ;;  %v7101_v12 = vld [vmem:[%s9429_s4 + $0x1c] ss:$12 sps:$4 sm:$0xff]  }
 0x21d   : > { %v8704_v5 = vsel %vm4508_vm8, %v4476_v61, %v4471_v54  ;;  %v4027_v25 = vrot.slane %v4026_v20, 1  ;;  %v4058_v42 = vrot.slane %v4057_v47, 4  ;;  %v3781_v26 = vmax.f32 %v3701_v0, 0.0  ;;  %v3422_v31 = vpop.f32.mrb[19].mxu1  ;;  %5202 = vmatprep.subr.bf16.mxu1 %v7101_v12 }
 0x21e   : > { %v4021_v49 = vmax.f32 %v4019_v24, %v4020_v3  ;;  %v4052_v28 = vmax.f32 %v4050_v63, %v4051_v32  ;;  %v3782_v9 = vmax.f32 %v3702_v38, 0.0  ;;  %v3706_v11 = vadd.f32 %v8593_v33, %v3420_v48  ;;  %5203 = vmatpush1.bf16.msra.mxu1 %v7099_v35 }
 0x21f   : > { %v4028_v40 = vmax.f32 %v4026_v20, %v4027_v25  ;;  %v4059_v60 = vmax.f32 %v4057_v47, %v4058_v42  ;;  %v3707_v44 = vadd.f32 %v8601_v1, %v3422_v31  ;;  %v3893_v27 = vsel %vm8626_vm4, %v3781_v26, 0.0  ;;  %5204 = vmatprep.subr.bf16.mxu1 %v7104_v56  ;;  %v7105_v25 = vld [vmem:[%s9429_s4 + $0x48] ss:$12 sps:$4 sm:$0xff]  }
 0x220   : > { %v4223_v39 = vpack.c.bf16 %v4021_v49, %v4021_v49  ;;  %v4053_v19 = vrot.slane %v4052_v28, 2  ;;  %v3786_v55 = vmax.f32 %v3706_v11, 0.0  ;;  %v3894_v54 = vsel %vm8637_vm6, %v3782_v9, 0.0 }
 0x221   : > { %v4224_v21 = vpack.c.bf16 %v4028_v40, %v4028_v40  ;;  %v4060_v7 = vrot.slane %v4059_v60, 2  ;;  %v3787_v15 = vmax.f32 %v3707_v44, 0.0 }
 0x222   : > { %v4480_v41 = vunpack.c.l.b16 %v4223_v39  ;;  %v4054_v6 = vmax.f32 %v4052_v28, %v4053_v19  ;;  %v3898_v36 = vsel %vm8631_vm5, %v3786_v55, 0.0  ;;  %v3426_v58 = vpop.f32.mrb[20].mxu1  ;;  %5205 = vmatpush1.bf16.msra.mxu1 %v7102_v10  ;;  %v7110_v19 = vld [vmem:[%s9429_s4 + $0x64] ss:$12 sps:$4 sm:$0xff]  }
 0x223   : > { %v8723_v34 = vunpack.c.l.b16 %v4224_v21  ;;  %v4061_v4 = vmax.f32 %v4059_v60, %v4060_v7  ;;  %v4085_v8 = vmax.f32 %v3893_v27, %v3898_v36  ;;  %v3899_v14 = vsel %vm8642_vm7, %v3787_v15, 0.0  ;;  %v3428_v52 = vpop.f32.mrb[21].mxu1 }
 0x224   : > { %v4530_v43 = vsel %vm4510_vm9, %v4480_v41, %v4529_v45  ;;  %v4055_v22 = vrot.slane %v4054_v6, 1  ;;  %v4092_v16 = vmax.f32 %v3894_v54, %v3899_v14  ;;  %v3711_v24 = vadd.f32 %v8593_v33, %v3426_v58  ;;  %v3430_v63 = vpop.f32.mrb[22].mxu1  ;;  %v7107_v45 = vld [vmem:[%s9429_s4 + $0x4c] ss:$12 sps:$4 sm:$0xff]  }
 0x225   : > { %v4062_v46 = vrot.slane %v4061_v4, 1  ;;  %v4086_v51 = vrot.slane %v4085_v8, 4  ;;  %v3712_v53 = vadd.f32 %v8601_v1, %v3428_v52  ;;  %v3716_v61 = vadd.f32 %v8593_v33, %v3430_v63  ;;  %v3432_v20 = vpop.f32.mrb[23].mxu1  ;;  %5206 = vmatprep.subr.bf16.mxu1 %v7107_v45  ;;  %v7108_v41 = vld [vmem:[%s9429_s4 + $0x60] ss:$12 sps:$4 sm:$0xff]  }
 0x226   : > { %v4056_v47 = vmax.f32 %v4054_v6, %v4055_v22  ;;  %v4093_v0 = vrot.slane %v4092_v16, 4  ;;  %v3791_v59 = vmax.f32 %v3711_v24, 0.0  ;;  %v3717_v18 = vadd.f32 %v8601_v1, %v3432_v20  ;;  %5207 = vmatpush1.bf16.msra.mxu1 %v7105_v25  ;;  %v7111_v20 = vld [vmem:[%s9429_s4 + $0x78] ss:$12 sps:$4 sm:$0xff]  }
 0x227   : > { %v4063_v3 = vmax.f32 %v4061_v4, %v4062_v46  ;;  %v4087_v32 = vmax.f32 %v4085_v8, %v4086_v51  ;;  %v3792_v38 = vmax.f32 %v3712_v53, 0.0  ;;  %v3796_v48 = vmax.f32 %v3716_v61, 0.0  ;;  %5208 = vmatprep.subr.bf16.mxu1 %v7110_v19 }
 0x228   : > { %v4228_v42 = vpack.c.bf16 %v4056_v47, %v4056_v47  ;;  %v4094_v26 = vmax.f32 %v4092_v16, %v4093_v0  ;;  %v3903_v31 = vsel %vm8626_vm4, %v3791_v59, 0.0  ;;  %v3797_v49 = vmax.f32 %v3717_v18, 0.0 }
 0x229   : > { %v4229_v28 = vpack.c.bf16 %v4063_v3, %v4063_v3  ;;  %v4088_v9 = vrot.slane %v4087_v32, 2  ;;  %v3904_v11 = vsel %vm8637_vm6, %v3792_v38, 0.0  ;;  %v3908_v12 = vsel %vm8631_vm5, %v3796_v48, 0.0 }
 0x22a   : > { %v4485_v40 = vunpack.c.l.b16 %v4228_v42  ;;  %v4095_v60 = vrot.slane %v4094_v26, 2  ;;  %v4120_v44 = vmax.f32 %v3903_v31, %v3908_v12  ;;  %v3909_v35 = vsel %vm8642_vm7, %v3797_v49, 0.0  ;;  %v3436_v39 = vpop.f32.mrb[24].mxu1  ;;  %5209 = vmatpush1.bf16.msra.mxu1 %v7108_v41  ;;  %v7116_v49 = vld [vmem:[%s9429_s4 + $0x94] ss:$12 sps:$4 sm:$0xff]  }
 0x22b   : > { %v8752_v55 = vunpack.c.l.b16 %v4229_v28  ;;  %v4089_v21 = vmax.f32 %v4087_v32, %v4088_v9  ;;  %v4127_v7 = vmax.f32 %v3904_v11, %v3909_v35  ;;  %v3721_v27 = vadd.f32 %v8593_v33, %v3436_v39  ;;  %v3438_v15 = vpop.f32.mrb[25].mxu1 }
 0x22c   : > { %v4531_v6 = vsel %vm4512_vm10, %v4485_v40, %v4530_v43  ;;  %v4096_v54 = vmax.f32 %v4094_v26, %v4095_v60  ;;  %v4121_v36 = vrot.slane %v4120_v44, 4  ;;  %v3722_v58 = vadd.f32 %v8601_v1, %v3438_v15  ;;  %v3440_v56 = vpop.f32.mrb[26].mxu1  ;;  %v7113_v43 = vld [vmem:[%s9429_s4 + $0x7c] ss:$12 sps:$4 sm:$0xff]  }
 0x22d   : > { %v4090_v4 = vrot.slane %v4089_v21, 1  ;;  %v4128_v8 = vrot.slane %v4127_v7, 4  ;;  %v3801_v14 = vmax.f32 %v3721_v27, 0.0  ;;  %v3726_v52 = vadd.f32 %v8593_v33, %v3440_v56  ;;  %v3442_v10 = vpop.f32.mrb[27].mxu1  ;;  %5210 = vmatprep.subr.bf16.mxu1 %v7113_v43  ;;  %v7119_v56 = vld [vmem:[%s9429_s4 + $0xac] ss:$12 sps:$4 sm:$0xff]  }
 0x22e   : > { %v4097_v22 = vrot.slane %v4096_v54, 1  ;;  %v4122_v16 = vmax.f32 %v4120_v44, %v4121_v36  ;;  %v3802_v24 = vmax.f32 %v3722_v58, 0.0  ;;  %v3727_v63 = vadd.f32 %v8601_v1, %v3442_v10  ;;  %5211 = vmatpush1.bf16.msra.mxu1 %v7111_v20 }
 0x22f   : > { %v4091_v46 = vmax.f32 %v4089_v21, %v4090_v4  ;;  %v4129_v51 = vmax.f32 %v4127_v7, %v4128_v8  ;;  %v3913_v53 = vsel %vm8626_vm4, %v3801_v14, 0.0  ;;  %v3806_v61 = vmax.f32 %v3726_v52, 0.0  ;;  %5212 = vmatprep.subr.bf16.mxu1 %v7116_v49  ;;  %v7117_v52 = vld [vmem:[%s9429_s4 + $0xa8] ss:$12 sps:$4 sm:$0xff]  }
 0x230   : > { %v4098_v47 = vmax.f32 %v4096_v54, %v4097_v22  ;;  %v4123_v0 = vrot.slane %v4122_v16, 2  ;;  %v3914_v59 = vsel %vm8637_vm6, %v3802_v24, 0.0  ;;  %v3807_v18 = vmax.f32 %v3727_v63, 0.0 }
 0x231   : > { %v4233_v45 = vpack.c.bf16 %v4091_v46, %v4091_v46  ;;  %v4130_v3 = vrot.slane %v4129_v51, 2  ;;  %v3918_v32 = vsel %vm8631_vm5, %v3806_v61, 0.0  ;;  %v4537_v38 = vsel %vm4510_vm9, %v8723_v34, %v8704_v5  ;;  %v7114_v5 = vld [vmem:[%s9429_s4 + $0x90] ss:$12 sps:$4 sm:$0xff]  }
 0x232   : > { %v4234_v48 = vpack.c.bf16 %v4098_v47, %v4098_v47  ;;  %v4124_v25 = vmax.f32 %v4122_v16, %v4123_v0  ;;  %v4155_v42 = vmax.f32 %v3913_v53, %v3918_v32  ;;  %v3919_v26 = vsel %vm8642_vm7, %v3807_v18, 0.0  ;;  %v3446_v31 = vpop.f32.mrb[28].mxu1  ;;  %5213 = vmatpush1.bf16.msra.mxu1 %v7114_v5 }
 0x233   : > { %v4490_v28 = vunpack.c.l.b16 %v4233_v45  ;;  %v4131_v9 = vmax.f32 %v4129_v51, %v4130_v3  ;;  %v4162_v11 = vmax.f32 %v3914_v59, %v3919_v26  ;;  %v3731_v12 = vadd.f32 %v8593_v33, %v3446_v31  ;;  %v3448_v40 = vpop.f32.mrb[29].mxu1  ;;  %5214 = vmatprep.subr.bf16.mxu1 %v7119_v56  ;;  %v7123_v26 = vld [vmem:[%s9429_s4 + $0xd8] ss:$12 sps:$4 sm:$0xff]  }
 0x234   : > { %v4491_v34 = vunpack.c.l.b16 %v4234_v48  ;;  %v4125_v60 = vrot.slane %v4124_v25, 1  ;;  %v4156_v44 = vrot.slane %v4155_v42, 4  ;;  %v3732_v35 = vadd.f32 %v8601_v1, %v3448_v40  ;;  %v3450_v39 = vpop.f32.mrb[30].mxu1  ;;  %v7128_v40 = vld [vmem:[%s9429_s4 + $0xf4] ss:$12 sps:$4 sm:$0xff]  }
 0x235   : > { %v4532_v19 = vsel %vm4514_vm11, %v4490_v28, %v4531_v6  ;;  %v4132_v21 = vrot.slane %v4131_v9, 1  ;;  %v4163_v7 = vrot.slane %v4162_v11, 4  ;;  %v3811_v27 = vmax.f32 %v3731_v12, 0.0  ;;  %v3452_v15 = vpop.f32.mrb[31].mxu1 }
 0x236   : > { %v4126_v41 = vmax.f32 %v4124_v25, %v4125_v60  ;;  %v4157_v54 = vmax.f32 %v4155_v42, %v4156_v44  ;;  %v3812_v36 = vmax.f32 %v3732_v35, 0.0  ;;  %v3736_v58 = vadd.f32 %v8593_v33, %v3450_v39  ;;  %5215 = vmatpush1.bf16.msra.mxu1 %v7117_v52  ;;  %v7126_v60 = vld [vmem:[%s9429_s4 + $0xf0] ss:$12 sps:$4 sm:$0xff]  }
 0x237   : > { %v4133_v4 = vmax.f32 %v4131_v9, %v4132_v21  ;;  %v4164_v8 = vmax.f32 %v4162_v11, %v4163_v7  ;;  %v3923_v14 = vsel %vm8626_vm4, %v3811_v27, 0.0  ;;  %v3737_v6 = vadd.f32 %v8601_v1, %v3452_v15  ;;  %5216 = vmatprep.subr.bf16.mxu1 %v7122_v62  ;;  %v7131_v7 = vld [vmem:[%s9429_s4 + $0x10c] ss:$12 sps:$4 sm:$0xff]   ;;  %v7129_v15 = vld [vmem:[%s9429_s4 + $0x108] ss:$12 sps:$4 sm:$0xff]  }
 0x238   : > { %v4238_v10 = vpack.c.bf16 %v4126_v41, %v4126_v41  ;;  %v4158_v22 = vrot.slane %v4157_v54, 2  ;;  %v3924_v33 = vsel %vm8637_vm6, %v3812_v36, 0.0  ;;  %v3816_v16 = vmax.f32 %v3736_v58, 0.0  ;;  %v7134_v58 = vld [vmem:[%s9429_s4 + $0x124] ss:$12 sps:$4 sm:$0xff]  }
 0x239   : > { %v4239_v24 = vpack.c.bf16 %v4133_v4, %v4133_v4  ;;  %v4165_v63 = vrot.slane %v4164_v8, 2  ;;  %v3817_v43 = vmax.f32 %v3737_v6, 0.0  ;;  %v4538_v17 = vsel %vm4512_vm10, %v8752_v55, %v4537_v38  ;;  %v7120_v55 = vld [vmem:[%s9429_s4 + $0xc0] ss:$12 sps:$4 sm:$0xff]   ;;  %v7137_v52 = vld [vmem:[%s9429_s4 + $0x13c] ss:$12 sps:$4 sm:$0xff]  }
 0x23a   : > { %v4495_v46 = vunpack.c.l.b16 %v4238_v10  ;;  %v4159_v1 = vmax.f32 %v4157_v54, %v4158_v22  ;;  %v3928_v51 = vsel %vm8631_vm5, %v3816_v16, 0.0  ;;  %v4539_v53 = vsel %vm4514_vm11, %v4491_v34, %v4538_v17  ;;  %5217 = vmatpush1.bf16.msra.mxu1 %v7120_v55  ;;  %v7132_v4 = vld [vmem:[%s9429_s4 + $0x120] ss:$12 sps:$4 sm:$0xff]   ;;  %v7135_v22 = vld [vmem:[%s9429_s4 + $0x138] ss:$12 sps:$4 sm:$0xff]  }
 0x23b   : > { %v4496_v61 = vunpack.c.l.b16 %v4239_v24  ;;  %v4166_v20 = vmax.f32 %v4164_v8, %v4165_v63  ;;  %v4190_v47 = vmax.f32 %v3923_v14, %v3928_v51  ;;  %v3929_v0 = vsel %vm8642_vm7, %v3817_v43, 0.0  ;;  %5218 = vmatprep.subr.bf16.mxu1 %v7125_v13  ;;  %v7140_v16 = vld [vmem:[%s9429_s4 + $0x154] ss:$12 sps:$4 sm:$0xff]   ;;  %v7138_v24 = vld [vmem:[%s9429_s4 + $0x150] ss:$12 sps:$4 sm:$0xff]  }
 0x23c   : > { %v4160_v59 = vrot.slane %v4159_v1, 1  ;;  %v4197_v18 = vmax.f32 %v3924_v33, %v3929_v0  ;;  %v4533_v29 = vsel %vm4516_vm12, %v4495_v46, %v4532_v19  ;;  %v7143_v63 = vld [vmem:[%s9429_s4 + $0x16c] ss:$12 sps:$4 sm:$0xff]   ;;  %v7141_v43 = vld [vmem:[%s9429_s4 + $0x168] ss:$12 sps:$4 sm:$0xff]   ;;  %v8871_v46 = vsub.s32 0, %v7436_v30 }
 0x23d   : > { %v4167_v45 = vrot.slane %v4166_v20, 1  ;;  %v4191_v3 = vrot.slane %v4190_v47, 4  ;;  %v4540_v32 = vsel %vm4516_vm12, %v4496_v61, %v4539_v53  ;;  %v7146_v17 = vld [vmem:[%s9429_s4 + $0x184] ss:$12 sps:$4 sm:$0xff]   ;;  %vm7288_vm5 = vmmov 0  }
 0x23e   : > { %v4161_v38 = vmax.f32 %v4159_v1, %v4160_v59  ;;  %v4198_v48 = vrot.slane %v4197_v18, 4  ;;  %5219 = vmatpush1.bf16.msra.mxu1 %v7123_v26  ;;  %v8874_v1 = vsub.s32 1, %v7436_v30  ;;  %v8878_v51 = vrot.slane %v8581_v57, %v8871_v46 }
 0x23f   : > { %v4168_v25 = vmax.f32 %v4166_v20, %v4167_v45  ;;  %v4192_v42 = vmax.f32 %v4190_v47, %v4191_v3  ;;  %5220 = vmatprep.subr.bf16.mxu1 %v7128_v40  ;;  %v3824_v61 = vrot.slane %v8598_v23, %v8871_v46  ;;  %vm5616_vm6 = vcmask 523264  }
 0x240   : > { %v4243_v31 = vpack.c.bf16 %v4161_v38, %v4161_v38  ;;  %v4199_v49 = vmax.f32 %v4197_v18, %v4198_v48  ;;  %v8882_v53 = vrot.slane %v8581_v57, %v8874_v1  ;;  %v3828_v0 = vrot.slane %v8598_v23, %v8874_v1 }
 0x241   : > { %v4244_v28 = vpack.c.bf16 %v4168_v25, %v4168_v25  ;;  %v4193_v9 = vrot.slane %v4192_v42, 2  ;;  %vm8892_vm15 = vcmp.lt.s32.totalorder %v7436_v30, %v3824_v61  ;;  %vm8897_vm0 = vcmp.lt.s32.totalorder %v8613_v37, %v3824_v61 }
 0x242   : > { %v4500_v11 = vunpack.c.l.b16 %v4243_v31  ;;  %v4200_v12 = vrot.slane %v4199_v49, 2  ;;  %5221 = vmatpush1.bf16.msra.mxu1 %v7126_v60  ;;  %vm8903_vm1 = vcmp.lt.s32.totalorder %v7436_v30, %v3828_v0  ;;  %vm8908_vm2 = vcmp.lt.s32.totalorder %v8613_v37, %v3828_v0 }
 0x243   : > { %v4194_v5 = vmax.f32 %v4192_v42, %v4193_v9  ;;  %v4501_v34 = vunpack.c.l.b16 %v4244_v28  ;;  %5222 = vmatprep.subr.bf16.mxu1 %v7131_v7  ;;  %vm5700_vm7 = vcmask 31744  }
 0x244   : > { %v4201_v44 = vmax.f32 %v4199_v49, %v4200_v12  ;;  %v4534_v35 = vsel %vm4518_vm13, %v4500_v11, %v4533_v29 }
 0x245   : > { %v4195_v39 = vrot.slane %v4194_v5, 1  ;;  %v4541_v19 = vsel %vm4518_vm13, %v4501_v34, %v4540_v32 }
 0x246   : > { %v4202_v21 = vrot.slane %v4201_v44, 1  ;;  %5223 = vmatpush1.bf16.msra.mxu1 %v7129_v15 }
 0x247   : > { %v4196_v27 = vmax.f32 %v4194_v5, %v4195_v39  ;;  %5224 = vmatprep.subr.bf16.mxu1 %v7134_v58 }
 0x248   : > { %v4203_v41 = vmax.f32 %v4201_v44, %v4202_v21 }
 0x249   : > { %v4248_v54 = vpack.c.bf16 %v4196_v27, %v4196_v27 }
 0x24a   : > { %v4249_v36 = vpack.c.bf16 %v4203_v41, %v4203_v41  ;;  %5225 = vmatpush1.bf16.msra.mxu1 %v7132_v4 }
 0x24b   : > { %v4505_v56 = vunpack.c.l.b16 %v4248_v54  ;;  %5226 = vmatprep.subr.bf16.mxu1 %v7137_v52 }
 0x24c   : > { %v4506_v8 = vunpack.c.l.b16 %v4249_v36 }
 0x24d   : > { %v4535_v14 = vsel %vm4520_vm14, %v4505_v56, %v4534_v35 }
 0x24e   : > { %v4542_v6 = vsel %vm4520_vm14, %v4506_v8, %v4541_v19  ;;  %v8851_v33 = vpack.c.b16 %v4535_v14, %v4535_v14  ;;  %5227 = vmatpush1.bf16.msra.mxu1 %v7135_v22 }
 0x24f   : > { %v8846_v10 = vpack.c.b16 %v4542_v6, %v4542_v6  ;;  %5228 = vmatprep.subr.bf16.mxu1 %v7140_v16 }
 0x251   : > { %5395 = vmatprep.mubr.bf16.mxu0 %v8846_v10 }
 0x252   : > { %5396 = vmatmul.mubr.bf16.vlgmr.msra.gmra.mrb[48].mxu0 %v8851_v33  ;;  %5229 = vmatpush1.bf16.msra.mxu1 %v7138_v24 }
 0x253   : > { %5230 = vmatprep.subr.bf16.mxu1 %v7143_v63 }
 0x256   : > { %5231 = vmatpush1.bf16.msra.mxu1 %v7141_v43 }
 0x257   : > { %5241 = vmatprep.subr.bf16.mxu1 %v7146_v17 }
 0x27a   : > { %v3263_v62 = vpop.f32.mrb[0].mxu0 }
 0x27b   : > { %v3659_v20 = vadd.f32 %v8878_v51, %v3263_v62  ;;  %v3265_v47 = vpop.f32.mrb[1].mxu0 }
 0x27c   : > { %v3660_v55 = vadd.f32 %v8882_v53, %v3265_v47  ;;  %v3267_v59 = vpop.f32.mrb[2].mxu0 }
 0x27d   : > { %v3739_v18 = vmax.f32 %v3659_v20, 0.0  ;;  %v3664_v29 = vadd.f32 %v8878_v51, %v3267_v59  ;;  %v3269_v45 = vpop.f32.mrb[3].mxu0 }
 0x27e   : > { %v3740_v3 = vmax.f32 %v3660_v55, 0.0  ;;  %v3665_v23 = vadd.f32 %v8882_v53, %v3269_v45 }
 0x27f   : > { %v3744_v48 = vmax.f32 %v3664_v29, 0.0  ;;  %v3851_v42 = vsel %vm8892_vm15, %v3739_v18, 0.0 }
 0x280   : > { %v3745_v25 = vmax.f32 %v3665_v23, 0.0  ;;  %v3852_v31 = vsel %vm8903_vm1, %v3740_v3, 0.0 }
 0x281   : > { %v3856_v26 = vsel %vm8897_vm0, %v3744_v48, 0.0 }
 0x282   : > { %v3931_v49 = vmax.f32 %v3851_v42, %v3856_v26  ;;  %v3857_v28 = vsel %vm8908_vm2, %v3745_v25, 0.0  ;;  %v3273_v9 = vpop.f32.mrb[4].mxu0 }
 0x283   : > { %v3938_v11 = vmax.f32 %v3852_v31, %v3857_v28  ;;  %v3669_v12 = vadd.f32 %v8878_v51, %v3273_v9  ;;  %v3275_v40 = vpop.f32.mrb[5].mxu0 }
 0x284   : > { %v3932_v5 = vrot.slane %v3931_v49, 4  ;;  %v3670_v34 = vadd.f32 %v8882_v53, %v3275_v40  ;;  %v3277_v60 = vpop.f32.mrb[6].mxu0 }
 0x285   : > { %v3939_v44 = vrot.slane %v3938_v11, 4  ;;  %v3749_v35 = vmax.f32 %v3669_v12, 0.0  ;;  %v3674_v39 = vadd.f32 %v8878_v51, %v3277_v60  ;;  %v3279_v19 = vpop.f32.mrb[7].mxu0  ;;  %v3652_v12 = vsub.s32 4, %v7436_v30 }
 0x286   : > { %v3933_v21 = vmax.f32 %v3931_v49, %v3932_v5  ;;  %v3750_v7 = vmax.f32 %v3670_v34, 0.0  ;;  %v3675_v27 = vadd.f32 %v8882_v53, %v3279_v19 }
 0x287   : > { %v3940_v15 = vmax.f32 %v3938_v11, %v3939_v44  ;;  %v3754_v41 = vmax.f32 %v3674_v39, 0.0  ;;  %v3861_v56 = vsel %vm8892_vm15, %v3749_v35, 0.0 }
 0x288   : > { %v3934_v54 = vrot.slane %v3933_v21, 2  ;;  %v3755_v36 = vmax.f32 %v3675_v27, 0.0  ;;  %v3862_v14 = vsel %vm8903_vm1, %v3750_v7, 0.0 }
 0x289   : > { %v3941_v58 = vrot.slane %v3940_v15, 2  ;;  %v3866_v4 = vsel %vm8897_vm0, %v3754_v41, 0.0 }
 0x28a   : > { %v3935_v8 = vmax.f32 %v3933_v21, %v3934_v54  ;;  %v3966_v6 = vmax.f32 %v3861_v56, %v3866_v4  ;;  %v3867_v52 = vsel %vm8908_vm2, %v3755_v36, 0.0  ;;  %v3283_v22 = vpop.f32.mrb[8].mxu0 }
 0x28b   : > { %v3942_v16 = vmax.f32 %v3940_v15, %v3941_v58  ;;  %v3973_v24 = vmax.f32 %v3862_v14, %v3867_v52  ;;  %v3679_v63 = vadd.f32 %v8878_v51, %v3283_v22  ;;  %v3285_v43 = vpop.f32.mrb[9].mxu0 }
 0x28c   : > { %v3936_v17 = vrot.slane %v3935_v8, 1  ;;  %v3967_v62 = vrot.slane %v3966_v6, 4  ;;  %v3680_v61 = vadd.f32 %v8882_v53, %v3285_v43  ;;  %v3287_v20 = vpop.f32.mrb[10].mxu0 }
 0x28d   : > { %v3943_v47 = vrot.slane %v3942_v16, 1  ;;  %v3974_v0 = vrot.slane %v3973_v24, 4  ;;  %v3759_v55 = vmax.f32 %v3679_v63, 0.0  ;;  %v3684_v59 = vadd.f32 %v8878_v51, %v3287_v20  ;;  %v3289_v18 = vpop.f32.mrb[11].mxu0 }
 0x28e   : > { %v3937_v29 = vmax.f32 %v3935_v8, %v3936_v17  ;;  %v3968_v45 = vmax.f32 %v3966_v6, %v3967_v62  ;;  %v3760_v3 = vmax.f32 %v3680_v61, 0.0  ;;  %v3685_v23 = vadd.f32 %v8882_v53, %v3289_v18 }
 0x28f   : > { %v3944_v48 = vmax.f32 %v3942_v16, %v3943_v47  ;;  %v3975_v25 = vmax.f32 %v3973_v24, %v3974_v0  ;;  %v3764_v42 = vmax.f32 %v3684_v59, 0.0  ;;  %v3871_v9 = vsel %vm8892_vm15, %v3759_v55, 0.0 }
 0x290   : > { %v4211_v26 = vpack.c.bf16 %v3937_v29, %v3937_v29  ;;  %v3969_v31 = vrot.slane %v3968_v45, 2  ;;  %v3765_v49 = vmax.f32 %v3685_v23, 0.0  ;;  %v3872_v5 = vsel %vm8903_vm1, %v3760_v3, 0.0 }
 0x291   : > { %v3976_v28 = vrot.slane %v3975_v25, 2  ;;  %v3876_v11 = vsel %vm8897_vm0, %v3764_v42, 0.0  ;;  %v4212_v35 = vpack.c.bf16 %v3944_v48, %v3944_v48 }
 0x292   : > { %v3970_v40 = vmax.f32 %v3968_v45, %v3969_v31  ;;  %v4001_v34 = vmax.f32 %v3871_v9, %v3876_v11  ;;  %v3877_v60 = vsel %vm8908_vm2, %v3765_v49, 0.0  ;;  %v3293_v44 = vpop.f32.mrb[12].mxu0  ;;  %v4468_v27 = vunpack.c.l.b16 %v4211_v26 }
 0x293   : > { %v3977_v39 = vmax.f32 %v3975_v25, %v3976_v28  ;;  %v4008_v19 = vmax.f32 %v3872_v5, %v3877_v60  ;;  %v3689_v21 = vadd.f32 %v8878_v51, %v3293_v44  ;;  %v3295_v7 = vpop.f32.mrb[13].mxu0  ;;  %v4469_v24 = vunpack.c.l.b16 %v4212_v35 }
 0x294   : > { %v3971_v15 = vrot.slane %v3970_v40, 1  ;;  %v4002_v41 = vrot.slane %v4001_v34, 4  ;;  %v3690_v54 = vadd.f32 %v8882_v53, %v3295_v7  ;;  %v3297_v36 = vpop.f32.mrb[14].mxu0 }
 0x295   : > { %v3978_v58 = vrot.slane %v3977_v39, 1  ;;  %v4009_v56 = vrot.slane %v4008_v19, 4  ;;  %v3769_v4 = vmax.f32 %v3689_v21, 0.0  ;;  %v3694_v8 = vadd.f32 %v8878_v51, %v3297_v36  ;;  %v3299_v14 = vpop.f32.mrb[15].mxu0  ;;  %v7276_v36 = vld [vmem:[%s9427_s2] sm:$0x1f] }
 0x296   : > { %v3972_v6 = vmax.f32 %v3970_v40, %v3971_v15  ;;  %v4003_v52 = vmax.f32 %v4001_v34, %v4002_v41  ;;  %v3770_v22 = vmax.f32 %v3690_v54, 0.0  ;;  %v3695_v16 = vadd.f32 %v8882_v53, %v3299_v14  ;;  %v7277_v14 = vld [vmem:[%s9428_s3] sm:$0x1f] }
 0x297   : > { %v3979_v63 = vmax.f32 %v3977_v39, %v3978_v58  ;;  %v4010_v43 = vmax.f32 %v4008_v19, %v4009_v56  ;;  %v3774_v17 = vmax.f32 %v3694_v8, 0.0  ;;  %v3881_v20 = vsel %vm8892_vm15, %v3769_v4, 0.0 }
 0x298   : > { %v4216_v62 = vpack.c.bf16 %v3972_v6, %v3972_v6  ;;  %v4004_v61 = vrot.slane %v4003_v52, 2  ;;  %v3775_v47 = vmax.f32 %v3695_v16, 0.0  ;;  %v3882_v59 = vsel %vm8903_vm1, %v3770_v22, 0.0 }
 0x299   : > { %v4217_v0 = vpack.c.bf16 %v3979_v63, %v3979_v63  ;;  %v4011_v55 = vrot.slane %v4010_v43, 2  ;;  %v3886_v18 = vsel %vm8897_vm0, %v3774_v17, 0.0  ;;  %v8970_v58 = vrot.slane %v7276_v36, %v3652_v12 }
 0x29a   : > { %v4473_v29 = vunpack.c.l.b16 %v4216_v62  ;;  %v4005_v45 = vmax.f32 %v4003_v52, %v4004_v61  ;;  %v4036_v3 = vmax.f32 %v3881_v20, %v3886_v18  ;;  %v3887_v23 = vsel %vm8908_vm2, %v3775_v47, 0.0  ;;  %v3303_v48 = vpop.f32.mrb[16].mxu0 }
 0x29b   : > { %v4474_v25 = vunpack.c.l.b16 %v4217_v0  ;;  %v4012_v42 = vmax.f32 %v4010_v43, %v4011_v55  ;;  %v4043_v26 = vmax.f32 %v3882_v59, %v3887_v23  ;;  %v3699_v31 = vadd.f32 %v8878_v51, %v3303_v48  ;;  %v3305_v49 = vpop.f32.mrb[17].mxu0 }
 0x29c   : > { %v4509_v28 = vsel %vm4508_vm8, %v4473_v29, %v4468_v27  ;;  %v4006_v9 = vrot.slane %v4005_v45, 1  ;;  %v4037_v11 = vrot.slane %v4036_v3, 4  ;;  %v3700_v40 = vadd.f32 %v8882_v53, %v3305_v49  ;;  %v3307_v5 = vpop.f32.mrb[18].mxu0 }
 0x29d   : > { %v8961_v34 = vsel %vm4508_vm8, %v4474_v25, %v4469_v24  ;;  %v4013_v60 = vrot.slane %v4012_v42, 1  ;;  %v4044_v44 = vrot.slane %v4043_v26, 4  ;;  %v3779_v35 = vmax.f32 %v3699_v31, 0.0  ;;  %v3309_v39 = vpop.f32.mrb[19].mxu0 }
 0x29e   : > { %v4007_v19 = vmax.f32 %v4005_v45, %v4006_v9  ;;  %v4038_v21 = vmax.f32 %v4036_v3, %v4037_v11  ;;  %v3780_v7 = vmax.f32 %v3700_v40, 0.0  ;;  %v3704_v15 = vadd.f32 %v8878_v51, %v3307_v5 }
 0x29f   : > { %v4014_v41 = vmax.f32 %v4012_v42, %v4013_v60  ;;  %v4045_v54 = vmax.f32 %v4043_v26, %v4044_v44  ;;  %v3705_v27 = vadd.f32 %v8882_v53, %v3309_v39  ;;  %v8977_v6 = vrot.slane %v7277_v14, %v3652_v12 }
 0x2a0   : > { %v4221_v56 = vpack.c.bf16 %v4007_v19, %v4007_v19  ;;  %v4039_v4 = vrot.slane %v4038_v21, 2  ;;  %v3784_v8 = vmax.f32 %v3704_v15, 0.0  ;;  %v3891_v16 = vsel %vm8892_vm15, %v3779_v35, 0.0 }
 0x2a1   : > { %v4222_v52 = vpack.c.bf16 %v4014_v41, %v4014_v41  ;;  %v4046_v22 = vrot.slane %v4045_v54, 2  ;;  %v3785_v24 = vmax.f32 %v3705_v27, 0.0  ;;  %v3892_v17 = vsel %vm8903_vm1, %v3780_v7, 0.0 }
 0x2a2   : > { %v4478_v63 = vunpack.c.l.b16 %v4221_v56  ;;  %v4040_v43 = vmax.f32 %v4038_v21, %v4039_v4  ;;  %v3896_v62 = vsel %vm8897_vm0, %v3784_v8, 0.0  ;;  %v3313_v61 = vpop.f32.mrb[20].mxu0  ;;  %vm9025_vm3 = vcmp.lt.s32.totalorder %v7436_v30, %v8977_v6 }
 0x2a3   : > { %v8985_v20 = vunpack.c.l.b16 %v4222_v52  ;;  %v4047_v47 = vmax.f32 %v4045_v54, %v4046_v22  ;;  %v4071_v12 = vmax.f32 %v3891_v16, %v3896_v62  ;;  %v3897_v0 = vsel %vm8908_vm2, %v3785_v24, 0.0  ;;  %v3315_v55 = vpop.f32.mrb[21].mxu0 }
 0x2a4   : > { %v4511_v59 = vsel %vm4510_vm9, %v4478_v63, %v4509_v28  ;;  %v4041_v18 = vrot.slane %v4040_v43, 1  ;;  %v4078_v29 = vmax.f32 %v3892_v17, %v3897_v0  ;;  %v3709_v45 = vadd.f32 %v8878_v51, %v3313_v61  ;;  %v3317_v3 = vpop.f32.mrb[22].mxu0 }
 0x2a5   : > { %v4048_v23 = vrot.slane %v4047_v47, 1  ;;  %v4072_v48 = vrot.slane %v4071_v12, 4  ;;  %v3710_v25 = vadd.f32 %v8882_v53, %v3315_v55  ;;  %v3714_v42 = vadd.f32 %v8878_v51, %v3317_v3  ;;  %v3319_v26 = vpop.f32.mrb[23].mxu0 }
 0x2a6   : > { %v4042_v31 = vmax.f32 %v4040_v43, %v4041_v18  ;;  %v4079_v49 = vrot.slane %v4078_v29, 4  ;;  %v3789_v9 = vmax.f32 %v3709_v45, 0.0  ;;  %v3715_v11 = vadd.f32 %v8882_v53, %v3319_v26 }
 0x2a7   : > { %v4049_v40 = vmax.f32 %v4047_v47, %v4048_v23  ;;  %v4073_v5 = vmax.f32 %v4071_v12, %v4072_v48  ;;  %v3790_v28 = vmax.f32 %v3710_v25, 0.0  ;;  %v3794_v60 = vmax.f32 %v3714_v42, 0.0 }
 0x2a8   : > { %v4226_v44 = vpack.c.bf16 %v4042_v31, %v4042_v31  ;;  %v4080_v35 = vmax.f32 %v4078_v29, %v4079_v49  ;;  %v3901_v39 = vsel %vm8892_vm15, %v3789_v9, 0.0  ;;  %v3795_v19 = vmax.f32 %v3715_v11, 0.0 }
 0x2a9   : > { %v4227_v21 = vpack.c.bf16 %v4049_v40, %v4049_v40  ;;  %v4074_v7 = vrot.slane %v4073_v5, 2  ;;  %v3902_v15 = vsel %vm8903_vm1, %v3790_v28, 0.0  ;;  %v3906_v41 = vsel %vm8897_vm0, %v3794_v60, 0.0 }
 0x2aa   : > { %v4483_v54 = vunpack.c.l.b16 %v4226_v44  ;;  %v4081_v27 = vrot.slane %v4080_v35, 2  ;;  %v4106_v36 = vmax.f32 %v3901_v39, %v3906_v41  ;;  %v3907_v56 = vsel %vm8908_vm2, %v3795_v19, 0.0  ;;  %v3323_v4 = vpop.f32.mrb[24].mxu0 }
 0x2ab   : > { %v9002_v8 = vunpack.c.l.b16 %v4227_v21  ;;  %v4075_v14 = vmax.f32 %v4073_v5, %v4074_v7  ;;  %v4113_v52 = vmax.f32 %v3902_v15, %v3907_v56  ;;  %v3719_v22 = vadd.f32 %v8878_v51, %v3323_v4  ;;  %v3325_v16 = vpop.f32.mrb[25].mxu0 }
 0x2ac   : > { %v4513_v24 = vsel %vm4512_vm10, %v4483_v54, %v4511_v59  ;;  %v4082_v63 = vmax.f32 %v4080_v35, %v4081_v27  ;;  %v4107_v43 = vrot.slane %v4106_v36, 4  ;;  %v3720_v17 = vadd.f32 %v8882_v53, %v3325_v16  ;;  %v3327_v62 = vpop.f32.mrb[26].mxu0  ;;  %v7155_v16 = vld [vmem:[%s9429_s4 + $0x1cc] ss:$12 sps:$4 sm:$0xff]  }
 0x2ad   : > { %v4076_v61 = vrot.slane %v4075_v14, 1  ;;  %v4114_v47 = vrot.slane %v4113_v52, 4  ;;  %v3799_v12 = vmax.f32 %v3719_v22, 0.0  ;;  %v3724_v0 = vadd.f32 %v8878_v51, %v3327_v62  ;;  %v3329_v55 = vpop.f32.mrb[27].mxu0 }
 0x2ae   : > { %v4083_v18 = vrot.slane %v4082_v63, 1  ;;  %v4108_v29 = vmax.f32 %v4106_v36, %v4107_v43  ;;  %v3800_v45 = vmax.f32 %v3720_v17, 0.0  ;;  %v3725_v3 = vadd.f32 %v8882_v53, %v3329_v55 }
 0x2af   : > { %v4077_v23 = vmax.f32 %v4075_v14, %v4076_v61  ;;  %v4115_v48 = vmax.f32 %v4113_v52, %v4114_v47  ;;  %v3911_v59 = vsel %vm8892_vm15, %v3799_v12, 0.0  ;;  %v3804_v25 = vmax.f32 %v3724_v0, 0.0 }
 0x2b0   : > { %v4084_v42 = vmax.f32 %v4082_v63, %v4083_v18  ;;  %v4109_v26 = vrot.slane %v4108_v29, 2  ;;  %v3912_v31 = vsel %vm8903_vm1, %v3800_v45, 0.0  ;;  %v3805_v49 = vmax.f32 %v3725_v3, 0.0 }
 0x2b1   : > { %v4231_v9 = vpack.c.bf16 %v4077_v23, %v4077_v23  ;;  %v4116_v11 = vrot.slane %v4115_v48, 2  ;;  %v3916_v40 = vsel %vm8897_vm0, %v3804_v25, 0.0  ;;  %v4523_v5 = vsel %vm4510_vm9, %v8985_v20, %v8961_v34 }
 0x2b2   : > { %v4232_v28 = vpack.c.bf16 %v4084_v42, %v4084_v42  ;;  %v4110_v60 = vmax.f32 %v4108_v29, %v4109_v26  ;;  %v4141_v44 = vmax.f32 %v3911_v59, %v3916_v40  ;;  %v3917_v35 = vsel %vm8908_vm2, %v3805_v49, 0.0  ;;  %v3333_v39 = vpop.f32.mrb[28].mxu0 }
 0x2b3   : > { %v4488_v19 = vunpack.c.l.b16 %v4231_v9  ;;  %v4117_v21 = vmax.f32 %v4115_v48, %v4116_v11  ;;  %v4148_v7 = vmax.f32 %v3912_v31, %v3917_v35  ;;  %v3729_v15 = vadd.f32 %v8878_v51, %v3333_v39  ;;  %v3335_v41 = vpop.f32.mrb[29].mxu0 }
 0x2b4   : > { %v4489_v54 = vunpack.c.l.b16 %v4232_v28  ;;  %v4111_v27 = vrot.slane %v4110_v60, 1  ;;  %v4142_v36 = vrot.slane %v4141_v44, 4  ;;  %v3730_v56 = vadd.f32 %v8882_v53, %v3335_v41  ;;  %v3337_v4 = vpop.f32.mrb[30].mxu0 }
 0x2b5   : > { %v4515_v34 = vsel %vm4514_vm11, %v4488_v19, %v4513_v24  ;;  %v4118_v20 = vrot.slane %v4117_v21, 1  ;;  %v4149_v14 = vrot.slane %v4148_v7, 4  ;;  %v3809_v52 = vmax.f32 %v3729_v15, 0.0  ;;  %v3339_v22 = vpop.f32.mrb[31].mxu0 }
 0x2b6   : > { %v4112_v63 = vmax.f32 %v4110_v60, %v4111_v27  ;;  %v4143_v43 = vmax.f32 %v4141_v44, %v4142_v36  ;;  %v3810_v17 = vmax.f32 %v3730_v56, 0.0  ;;  %v3734_v62 = vadd.f32 %v8878_v51, %v3337_v4 }
 0x2b7   : > { %vm9032_vm4 = vcmp.lt.s32.totalorder %v8613_v37, %v8977_v6  ;;  %v4119_v24 = vmax.f32 %v4117_v21, %v4118_v20  ;;  %v4150_v47 = vmax.f32 %v4148_v7, %v4149_v14  ;;  %v3921_v12 = vsel %vm8892_vm15, %v3809_v52, 0.0 }
 0x2b8   : > { %v3735_v30 = vadd.f32 %v8882_v53, %v3339_v22  ;;  %v4236_v0 = vpack.c.bf16 %v4112_v63, %v4112_v63  ;;  %v4144_v55 = vrot.slane %v4143_v43, 2  ;;  %v3922_v18 = vsel %vm8903_vm1, %v3810_v17, 0.0 }
 0x2b9   : > { %v3814_v29 = vmax.f32 %v3734_v62, 0.0  ;;  %v4237_v51 = vpack.c.bf16 %v4119_v24, %v4119_v24  ;;  %v4151_v45 = vrot.slane %v4150_v47, 2  ;;  %v4524_v37 = vsel %vm4512_vm10, %v9002_v8, %v4523_v5 }
 0x2ba   : > { %v3815_v3 = vmax.f32 %v3735_v30, 0.0  ;;  %v4493_v6 = vunpack.c.l.b16 %v4236_v0  ;;  %v4145_v23 = vmax.f32 %v4143_v43, %v4144_v55  ;;  %v6413_v48 = vpop.f32.mrb[32].mxu0  ;;  %v4525_v53 = vsel %vm4514_vm11, %v4489_v54, %v4524_v37 }
 0x2bb   : > { %v3926_v57 = vsel %vm8897_vm0, %v3814_v29, 0.0  ;;  %v4494_v59 = vunpack.c.l.b16 %v4237_v51  ;;  %v4152_v25 = vmax.f32 %v4150_v47, %v4151_v45  ;;  %v3489_v26 = vpop.f32.mrb[33].mxu0  ;;  %v3673_v9 = vadd.f32 %v6413_v48, %v8970_v58 }
 0x2bc   : > { %v4176_v42 = vmax.f32 %v3921_v12, %v3926_v57  ;;  %v3927_v38 = vsel %vm8908_vm2, %v3815_v3, 0.0  ;;  %v9049_v31 = vsel %vm4516_vm12, %v4493_v6, %v4515_v34  ;;  %v4146_v49 = vrot.slane %v4145_v23, 1  ;;  %v6414_v11 = vpop.f32.mrb[34].mxu0 }
 0x2bd   : > { %v4183_v8 = vmax.f32 %v3922_v18, %v3927_v38  ;;  %v4153_v32 = vrot.slane %v4152_v25, 1  ;;  %v3663_v5 = vadd.f32 %v8970_v58, %v3489_v26  ;;  %v3678_v28 = vadd.f32 %v6414_v11, %v8970_v58  ;;  %v3492_v60 = vpop.f32.mrb[35].mxu0 }
 0x2be   : > { %v4177_v40 = vrot.slane %v4176_v42, 4  ;;  %v4147_v44 = vmax.f32 %v4145_v23, %v4146_v49  ;;  %v3753_v13 = vmax.f32 %v3673_v9, 0.0  ;;  %v3668_v39 = vadd.f32 %v8970_v58, %v3492_v60 }
 0x2bf   : > { %v4184_v35 = vrot.slane %v4183_v8, 4  ;;  %v4154_v19 = vmax.f32 %v4152_v25, %v4153_v32  ;;  %v3743_v7 = vmax.f32 %v3663_v5, 0.0  ;;  %v3758_v15 = vmax.f32 %v3678_v28, 0.0 }
 0x2c0   : > { %v4178_v21 = vmax.f32 %v4176_v42, %v4177_v40  ;;  %v4241_v41 = vpack.c.bf16 %v4147_v44, %v4147_v44  ;;  %v3865_v27 = vsel %vm9025_vm3, %v3753_v13, 0.0  ;;  %v3748_v36 = vmax.f32 %v3668_v39, 0.0 }
 0x2c1   : > { %v4185_v54 = vmax.f32 %v4183_v8, %v4184_v35  ;;  %v4242_v56 = vpack.c.bf16 %v4154_v19, %v4154_v19  ;;  %v3855_v34 = vsel %vm9025_vm3, %v3743_v7, 0.0  ;;  %v3870_v20 = vsel %vm9032_vm4, %v3758_v15, 0.0 }
 0x2c2   : > { %v4179_v4 = vrot.slane %v4178_v21, 2  ;;  %v9061_v14 = vunpack.c.l.b16 %v4241_v41  ;;  %v3994_v22 = vmax.f32 %v3865_v27, %v3870_v20  ;;  %v3860_v63 = vsel %vm9032_vm4, %v3748_v36, 0.0  ;;  %v6417_v43 = vpop.f32.mrb[36].mxu0 }
 0x2c3   : > { %v4186_v52 = vrot.slane %v4185_v54, 2  ;;  %v3959_v62 = vmax.f32 %v3855_v34, %v3860_v63  ;;  %v3693_v24 = vadd.f32 %v6417_v43, %v8970_v58  ;;  %v3505_v47 = vpop.f32.mrb[37].mxu0  ;;  %v4499_v12 = vunpack.c.l.b16 %v4242_v56 }
 0x2c4   : > { %v4180_v17 = vmax.f32 %v4178_v21, %v4179_v4  ;;  %v3995_v0 = vrot.slane %v3994_v22, 4  ;;  %v3683_v55 = vadd.f32 %v8970_v58, %v3505_v47  ;;  %v6418_v18 = vpop.f32.mrb[38].mxu0  ;;  %v4526_v29 = vsel %vm4516_vm12, %v4494_v59, %v4525_v53 }
 0x2c5   : > { %v4187_v30 = vmax.f32 %v4185_v54, %v4186_v52  ;;  %v3960_v45 = vrot.slane %v3959_v62, 4  ;;  %v3773_v3 = vmax.f32 %v3693_v24, 0.0  ;;  %v3698_v37 = vadd.f32 %v6418_v18, %v8970_v58  ;;  %v3508_v6 = vpop.f32.mrb[39].mxu0 }
 0x2c6   : > { %v4181_v51 = vrot.slane %v4180_v17, 1  ;;  %v3996_v57 = vmax.f32 %v3994_v22, %v3995_v0  ;;  %v3763_v48 = vmax.f32 %v3683_v55, 0.0  ;;  %v3688_v25 = vadd.f32 %v8970_v58, %v3508_v6 }
 0x2c7   : > { %v4188_v23 = vrot.slane %v4187_v30, 1  ;;  %v3961_v38 = vmax.f32 %v3959_v62, %v3960_v45  ;;  %v3885_v26 = vsel %vm9025_vm3, %v3773_v3, 0.0  ;;  %v3778_v49 = vmax.f32 %v3698_v37, 0.0 }
 0x2c8   : > { %v4182_v42 = vmax.f32 %v4180_v17, %v4181_v51  ;;  %v3997_v8 = vrot.slane %v3996_v57, 2  ;;  %v3875_v53 = vsel %vm9025_vm3, %v3763_v48, 0.0  ;;  %v3768_v59 = vmax.f32 %v3688_v25, 0.0 }
 0x2c9   : > { %v4189_v9 = vmax.f32 %v4187_v30, %v4188_v23  ;;  %v3962_v32 = vrot.slane %v3961_v38, 2  ;;  %v3890_v40 = vsel %vm9032_vm4, %v3778_v49, 0.0  ;;  %v4527_v5 = vsel %vm4518_vm13, %v4499_v12, %v4526_v29 }
 0x2ca   : > { %v4246_v11 = vpack.c.bf16 %v4182_v42, %v4182_v42  ;;  %v3998_v28 = vmax.f32 %v3996_v57, %v3997_v8  ;;  %v4064_v60 = vmax.f32 %v3885_v26, %v3890_v40  ;;  %v3880_v44 = vsel %vm9032_vm4, %v3768_v59, 0.0  ;;  %v6421_v35 = vpop.f32.mrb[40].mxu0 }
 0x2cb   : > { %v4247_v13 = vpack.c.bf16 %v4189_v9, %v4189_v9  ;;  %v3963_v19 = vmax.f32 %v3961_v38, %v3962_v32  ;;  %v4029_v21 = vmax.f32 %v3875_v53, %v3880_v44  ;;  %v3713_v7 = vadd.f32 %v6421_v35, %v8970_v58  ;;  %v3521_v15 = vpop.f32.mrb[41].mxu0 }
 0x2cc   : > { %v4503_v39 = vunpack.c.l.b16 %v4246_v11  ;;  %v3999_v41 = vrot.slane %v3998_v28, 1  ;;  %v4065_v54 = vrot.slane %v4064_v60, 4  ;;  %v3703_v27 = vadd.f32 %v8970_v58, %v3521_v15  ;;  %v6422_v36 = vpop.f32.mrb[42].mxu0 }
 0x2cd   : > { %v4504_v56 = vunpack.c.l.b16 %v4247_v13  ;;  %v3964_v4 = vrot.slane %v3963_v19, 1  ;;  %v4030_v34 = vrot.slane %v4029_v21, 4  ;;  %v3793_v20 = vmax.f32 %v3713_v7, 0.0  ;;  %v3524_v22 = vpop.f32.mrb[43].mxu0 }
 0x2ce   : > { %v3718_v52 = vadd.f32 %v6422_v36, %v8970_v58  ;;  %v4000_v63 = vmax.f32 %v3998_v28, %v3999_v41  ;;  %v4066_v43 = vmax.f32 %v4064_v60, %v4065_v54  ;;  %v3783_v17 = vmax.f32 %v3703_v27, 0.0  ;;  %v7144_v60 = vld [vmem:[%s9429_s4 + $0x180] ss:$12 sps:$4 sm:$0xff]  }
 0x2cf   : > { %v3708_v62 = vadd.f32 %v8970_v58, %v3524_v22  ;;  %v3965_v24 = vmax.f32 %v3963_v19, %v3964_v4  ;;  %v4031_v47 = vmax.f32 %v4029_v21, %v4030_v34  ;;  %v3905_v12 = vsel %vm9025_vm3, %v3793_v20, 0.0 }
 0x2d0   : > { %v3798_v30 = vmax.f32 %v3718_v52, 0.0  ;;  %v4220_v0 = vpack.c.bf16 %v4000_v63, %v4000_v63  ;;  %v4067_v55 = vrot.slane %v4066_v43, 2  ;;  %v3895_v18 = vsel %vm9025_vm3, %v3783_v17, 0.0  ;;  %v7147_v52 = vld [vmem:[%s9429_s4 + $0x198] ss:$12 sps:$4 sm:$0xff]  }
 0x2d1   : > { %v3788_v29 = vmax.f32 %v3708_v62, 0.0  ;;  %v4215_v51 = vpack.c.bf16 %v3965_v24, %v3965_v24  ;;  %v4032_v45 = vrot.slane %v4031_v47, 2  ;;  %v4528_v37 = vsel %vm4520_vm14, %v4504_v56, %v4527_v5 }
 0x2d2   : > { %v3910_v3 = vsel %vm9032_vm4, %v3798_v30, 0.0  ;;  %v4477_v6 = vunpack.c.l.b16 %v4220_v0  ;;  %v4068_v23 = vmax.f32 %v4066_v43, %v4067_v55  ;;  %v6425_v25 = vpop.f32.mrb[44].mxu0  ;;  %v9092_v49 = vpack.c.b16 %v4528_v37, %v4528_v37 }
 0x2d3   : > { %v4134_v57 = vmax.f32 %v3905_v12, %v3910_v3  ;;  %v3900_v48 = vsel %vm9032_vm4, %v3788_v29, 0.0  ;;  %v4472_v42 = vunpack.c.l.b16 %v4215_v51  ;;  %v4033_v38 = vmax.f32 %v4031_v47, %v4032_v45  ;;  %v3537_v8 = vpop.f32.mrb[45].mxu0  ;;  %v7150_v51 = vld [vmem:[%s9429_s4 + $0x1b0] ss:$12 sps:$4 sm:$0xff]  }
 0x2d4   : > { %v4099_v26 = vmax.f32 %v3895_v18, %v3900_v48  ;;  %v4069_v53 = vrot.slane %v4068_v23, 1  ;;  %v4519_v9 = vsel %vm4518_vm13, %v9061_v14, %v9049_v31  ;;  %v3733_v11 = vadd.f32 %v6425_v25, %v8970_v58  ;;  %v6426_v32 = vpop.f32.mrb[46].mxu0  ;;  %5232 = vmatprep.mubr.bf16.mxu1 %v9092_v49  ;;  %v7149_v14 = vld [vmem:[%s9429_s4 + $0x19c] ss:$12 sps:$4 sm:$0xff]  }
 0x2d5   : > { %v4135_v59 = vrot.slane %v4134_v57, 4  ;;  %v4543_v40 = vsel %vm4508_vm8, %v4477_v6, %v4472_v42  ;;  %v4034_v5 = vrot.slane %v4033_v38, 1  ;;  %v4521_v44 = vsel %vm4520_vm14, %v4503_v39, %v4519_v9  ;;  %v3540_v35 = vpop.f32.mrb[47].mxu0  ;;  %v7153_v42 = vld [vmem:[%s9429_s4 + $0x1c8] ss:$12 sps:$4 sm:$0xff]  }
 0x2d6   : > { %v4100_v28 = vrot.slane %v4099_v26, 4  ;;  %v4070_v13 = vmax.f32 %v4068_v23, %v4069_v53  ;;  %v9104_v21 = vpack.c.b16 %v4521_v44, %v4521_v44  ;;  %v3813_v31 = vmax.f32 %v3733_v11, 0.0 }
 0x2d7   : > { %v4136_v19 = vmax.f32 %v4134_v57, %v4135_v59  ;;  %v4035_v7 = vmax.f32 %v4033_v38, %v4034_v5  ;;  %v3723_v41 = vadd.f32 %v8970_v58, %v3537_v8  ;;  %v3738_v54 = vadd.f32 %v6426_v32, %v8970_v58  ;;  %v7156_v32 = vld [vmem:[%s9429_s4 + $0x1e0] ss:$12 sps:$4 sm:$0xff]  }
 0x2d8   : > { %v4101_v15 = vmax.f32 %v4099_v26, %v4100_v28  ;;  %v4230_v27 = vpack.c.bf16 %v4070_v13, %v4070_v13  ;;  %5233 = vmatmul.mubr.bf16.vlgmr.msra.gmra.mrb[32].mxu1 %v9104_v21  ;;  %v3728_v39 = vadd.f32 %v8970_v58, %v3540_v35  ;;  %v3925_v63 = vsel %vm9025_vm3, %v3813_v31, 0.0  ;;  %v7152_v58 = vld [vmem:[%s9429_s4 + $0x1b4] ss:$12 sps:$4 sm:$0xff]   ;;  %v7158_v26 = vld [vmem:[%s9429_s4 + $0x1e4] ss:$12 sps:$4 sm:$0xff]  }
 0x2d9   : > { %v4137_v36 = vrot.slane %v4136_v19, 2  ;;  %v4225_v56 = vpack.c.bf16 %v4035_v7, %v4035_v7  ;;  %5242 = vmatpush1.bf16.msra.mxu1 %v7144_v60  ;;  %5273 = vmatprep.mubr.bf16.mxu1 %v8846_v10  ;;  %v3803_v34 = vmax.f32 %v3723_v41, 0.0  ;;  %v3818_v20 = vmax.f32 %v3738_v54, 0.0  ;;  %v7161_v28 = vld [vmem:[%s9429_s4 + $0x1fc] ss:$12 sps:$4 sm:$0xff]  }
 0x2da   : > { %v4102_v4 = vrot.slane %v4101_v15, 2  ;;  %5243 = vmatprep.subr.bf16.mxu1 %v7149_v14  ;;  %v3808_v43 = vmax.f32 %v3728_v39, 0.0  ;;  %v4487_v17 = vunpack.c.l.b16 %v4230_v27  ;;  %v7164_v14 = vld [vmem:[%s9429_s4 + $0x214] ss:$12 sps:$4 sm:$0xff]   ;;  %v7162_v41 = vld [vmem:[%s9429_s4 + $0x210] ss:$12 sps:$4 sm:$0xff]  }
 0x2db   : > { %v4138_v22 = vmax.f32 %v4136_v19, %v4137_v36  ;;  %v4482_v62 = vunpack.c.l.b16 %v4225_v56  ;;  %v3930_v10 = vsel %vm9032_vm4, %v3818_v20, 0.0  ;;  %v3915_v12 = vsel %vm9025_vm3, %v3803_v34, 0.0  ;;  %v7159_v19 = vld [vmem:[%s9429_s4 + $0x1f8] ss:$12 sps:$4 sm:$0xff]   ;;  %v7165_v56 = vld [vmem:[%s9429_s4 + $0x228] ss:$12 sps:$4 sm:$0xff]  }
 0x2dc   : > { %v4103_v24 = vmax.f32 %v4101_v15, %v4102_v4  ;;  %v4204_v30 = vmax.f32 %v3925_v63, %v3930_v10  ;;  %v3920_v0 = vsel %vm9032_vm4, %v3808_v43, 0.0  ;;  %v7167_v27 = vld [vmem:[%s9429_s4 + $0x22c] ss:$12 sps:$4 sm:$0xff]   ;;  %v7170_v4 = vld [vmem:[%s9429_s4 + $0x244] ss:$12 sps:$4 sm:$0xff]  }
 0x2dd   : > { %v4139_v47 = vrot.slane %v4138_v22, 1  ;;  %v4544_v55 = vsel %vm4510_vm9, %v4482_v62, %v4543_v40  ;;  %v4169_v29 = vmax.f32 %v3915_v12, %v3920_v0  ;;  %5244 = vmatpush1.bf16.msra.mxu1 %v7147_v52  ;;  %v7168_v34 = vld [vmem:[%s9429_s4 + $0x240] ss:$12 sps:$4 sm:$0xff]   ;;  %v7173_v20 = vld [vmem:[%s9429_s4 + $0x25c] ss:$12 sps:$4 sm:$0xff]   ;;  %v7244_v62 = vld [vmem:[%s9431_s6 + $0x50] sm:$0xff]  }
 0x2de   : > { %v4104_v18 = vrot.slane %v4103_v24, 1  ;;  %v4205_v3 = vrot.slane %v4204_v30, 4  ;;  %5245 = vmatprep.subr.bf16.mxu1 %v7152_v58  ;;  %v4545_v37 = vsel %vm4512_vm10, %v4487_v17, %v4544_v55  ;;  %v7240_v52 = vld [vmem:[%s9431_s6 + $0x40] sm:$0xff]   ;;  %v7242_v63 = vld [vmem:[%s9431_s6 + $0x48] sm:$0xff]   ;;  %v7246_v12 = vld [vmem:[%s9431_s6 + $0x58] sm:$0xff]  }
 0x2df   : > { %v4140_v45 = vmax.f32 %v4138_v22, %v4139_v47  ;;  %v4170_v6 = vrot.slane %v4169_v29, 4  ;;  %v7241_v22 = vld [vmem:[%s9431_s6] sm:$0xff]   ;;  %6240 = vmatprep.subr.bf16.mxu0 %v7240_v52  ;;  %v7243_v17 = vld [vmem:[%s9431_s6 + $0x8] sm:$0xff]   ;;  %v7245_v47 = vld [vmem:[%s9431_s6 + $0x10] sm:$0xff]  }
 0x2e0   : > { %v4105_v61 = vmax.f32 %v4103_v24, %v4104_v18  ;;  %v4206_v57 = vmax.f32 %v4204_v30, %v4205_v3  ;;  %v7171_v43 = vld [vmem:[%s9429_s4 + $0x258] ss:$12 sps:$4 sm:$0xff]   ;;  %v7176_v58 = vld [vmem:[%s9429_s4 + $0x274] ss:$12 sps:$4 sm:$0xff]   ;;  %6241 = vmatpush3.bf16.msra.mxu0 %v7241_v22  ;;  %v7174_v24 = vld [vmem:[%s9429_s4 + $0x270] ss:$12 sps:$4 sm:$0xff]  }
 0x2e1   : > { %v4240_v23 = vpack.c.bf16 %v4140_v45, %v4140_v45  ;;  %v4171_v25 = vmax.f32 %v4169_v29, %v4170_v6  ;;  %5246 = vmatpush1.bf16.msra.mxu1 %v7150_v51  ;;  %6242 = vmatprep.subr.bf16.mxu0 %v7242_v63  ;;  %v7179_v10 = vld [vmem:[%s9429_s4 + $0x28c] ss:$12 sps:$4 sm:$0xff]   ;;  %v7177_v30 = vld [vmem:[%s9429_s4 + $0x288] ss:$12 sps:$4 sm:$0xff]   ;;  %v7182_v0 = vld [vmem:[%s9429_s4 + $0x2a4] ss:$12 sps:$4 sm:$0xff]  }
 0x2e2   : > { %v4235_v48 = vpack.c.bf16 %v4105_v61, %v4105_v61  ;;  %v4207_v38 = vrot.slane %v4206_v57, 2  ;;  %5247 = vmatprep.subr.bf16.mxu1 %v7155_v16  ;;  %v7247_v55 = vld [vmem:[%s9431_s6 + $0x18] sm:$0xff]   ;;  %v7248_v18 = vld [vmem:[%s9431_s6 + $0x60] sm:$0xff]   ;;  %v7250_v3 = vld [vmem:[%s9431_s6 + $0x68] sm:$0xff]  }
 0x2e3   : > { %v4172_v53 = vrot.slane %v4171_v25, 2  ;;  %v4497_v59 = vunpack.c.l.b16 %v4240_v23  ;;  %v7180_v29 = vld [vmem:[%s9429_s4 + $0x2a0] ss:$12 sps:$4 sm:$0xff]   ;;  %v7185_v51 = vld [vmem:[%s9429_s4 + $0x2bc] ss:$12 sps:$4 sm:$0xff]  }
 0x2e4   : > { %v4492_v8 = vunpack.c.l.b16 %v4235_v48  ;;  %v4208_v9 = vmax.f32 %v4206_v57, %v4207_v38  ;;  %6243 = vmatpush3.bf16.msra.mxu0 %v7243_v17  ;;  %v7249_v45 = vld [vmem:[%s9431_s6 + $0x20] sm:$0xff]   ;;  %v7251_v61 = vld [vmem:[%s9431_s6 + $0x28] sm:$0xff]   ;;  %v7186_v6 = vld [vmem:[%s9429_s4 + $0x2d0] ss:$12 sps:$4 sm:$0xff]  }
 0x2e5   : > { %v4173_v11 = vmax.f32 %v4171_v25, %v4172_v53  ;;  %5248 = vmatpush1.bf16.msra.mxu1 %v7153_v42  ;;  %6244 = vmatprep.subr.bf16.mxu0 %v7244_v62  ;;  %v7183_v16 = vld [vmem:[%s9429_s4 + $0x2b8] ss:$12 sps:$4 sm:$0xff]   ;;  %v7189_v57 = vld [vmem:[%s9429_s4 + $0x2e8] ss:$12 sps:$4 sm:$0xff]   ;;  %v7192_v25 = vld [vmem:[%s9429_s4 + $0x300] ss:$12 sps:$4 sm:$0xff]  }
 0x2e6   : > { %v4546_v40 = vsel %vm4514_vm11, %v4492_v8, %v4545_v37  ;;  %v4209_v5 = vrot.slane %v4208_v9, 1  ;;  %5249 = vmatprep.subr.bf16.mxu1 %v7158_v26  ;;  %v7188_v37 = vld [vmem:[%s9429_s4 + $0x2d4] ss:$12 sps:$4 sm:$0xff]   ;;  %v7191_v23 = vld [vmem:[%s9429_s4 + $0x2ec] ss:$12 sps:$4 sm:$0xff]  }
 0x2e7   : > { %v4547_v60 = vsel %vm4516_vm12, %v4497_v59, %v4546_v40  ;;  %v4174_v44 = vrot.slane %v4173_v11, 1  ;;  %v7194_v48 = vld [vmem:[%s9429_s4 + $0x304] ss:$12 sps:$4 sm:$0xff]   ;;  %v7197_v42 = vld [vmem:[%s9429_s4 + $0x31c] ss:$12 sps:$4 sm:$0xff]  }
 0x2e8   : > { %v4210_v35 = vmax.f32 %v4208_v9, %v4209_v5  ;;  %6245 = vmatpush3.bf16.msra.mxu0 %v7245_v47  ;;  %v7195_v38 = vld [vmem:[%s9429_s4 + $0x318] ss:$12 sps:$4 sm:$0xff]   ;;  %v7200_v26 = vld [vmem:[%s9429_s4 + $0x334] ss:$12 sps:$4 sm:$0xff]   ;;  %v7198_v8 = vld [vmem:[%s9429_s4 + $0x330] ss:$12 sps:$4 sm:$0xff]  }
 0x2e9   : > { %v4175_v13 = vmax.f32 %v4173_v11, %v4174_v44  ;;  %5250 = vmatpush1.bf16.msra.mxu1 %v7156_v32  ;;  %6246 = vmatprep.subr.bf16.mxu0 %v7246_v12  ;;  %v7206_v53 = vld [vmem:[%s9429_s4 + $0x364] ss:$12 sps:$4 sm:$0xff]   ;;  %v7204_v59 = vld [vmem:[%s9429_s4 + $0x360] ss:$12 sps:$4 sm:$0xff]   ;;  %v7209_v11 = vld [vmem:[%s9429_s4 + $0x37c] ss:$12 sps:$4 sm:$0xff]  }
 0x2ea   : > { %v4250_v31 = vpack.c.bf16 %v4210_v35, %v4210_v35  ;;  %5251 = vmatprep.subr.bf16.mxu1 %v7161_v28  ;;  %v7212_v44 = vld [vmem:[%s9429_s4 + $0x394] ss:$12 sps:$4 sm:$0xff]   ;;  %v7210_v35 = vld [vmem:[%s9429_s4 + $0x390] ss:$12 sps:$4 sm:$0xff]   ;;  %v7229_v52 = vld [vmem:[%s9429_s4 + $0x98] ss:$12 sps:$4 sm:$0xff]  }
 0x2eb   : > { %v4245_v7 = vpack.c.bf16 %v4175_v13, %v4175_v13  ;;  %v7215_v13 = vld [vmem:[%s9429_s4 + $0x3ac] ss:$12 sps:$4 sm:$0xff]   ;;  %v7230_v22 = vld [vmem:[%s9429_s4 + $0x170] ss:$12 sps:$4 sm:$0xff]  }
 0x2ec   : > { %v4507_v54 = vunpack.c.l.b16 %v4250_v31  ;;  %6247 = vmatpush3.bf16.msra.mxu0 %v7247_v55  ;;  %v7216_v31 = vld [vmem:[%s9429_s4 + $0xc8] ss:$12 sps:$4 sm:$0xff]   ;;  %v7231_v63 = vld [vmem:[%s9429_s4 + $0xb0] ss:$12 sps:$4 sm:$0xff]   ;;  %v7233_v17 = vld [vmem:[%s9429_s4 + $0x320] ss:$12 sps:$4 sm:$0xff]  }
 0x2ed   : > { %v4502_v15 = vunpack.c.l.b16 %v4245_v7  ;;  %5252 = vmatpush1.bf16.msra.mxu1 %v7159_v19  ;;  %6248 = vmatprep.subr.bf16.mxu0 %v7248_v18  ;;  %v7213_v19 = vld [vmem:[%s9429_s4 + $0x3a8] ss:$12 sps:$4 sm:$0xff]   ;;  %v7234_v62 = vld [vmem:[%s9429_s4 + $0x338] ss:$12 sps:$4 sm:$0xff]   ;;  %v7239_v12 = vld [vmem:[%s9429_s4 + $0x3b0] ss:$12 sps:$4 sm:$0xff]  }
 0x2ee   : > { %5253 = vmatprep.subr.bf16.mxu1 %v7164_v14  ;;  %v7217_v14 = vld [vmem:[%s9429_s4 + $0x8] ss:$12 sps:$4 sm:$0xff]   ;;  %v7238_v47 = vld [vmem:[%s9429_s4 + $0x398] ss:$12 sps:$4 sm:$0xff]  }
 0x2ef   : > { %v4548_v36 = vsel %vm4518_vm13, %v4502_v15, %v4547_v60  ;;  %v7207_v60 = vld [vmem:[%s9429_s4 + $0x378] ss:$12 sps:$4 sm:$0xff]   ;;  %v7218_v15 = vld [vmem:[%s9429_s4 + $0xe0] ss:$12 sps:$4 sm:$0xff]  }
 0x2f0   : > { %v9164_v39 = vsel %vm4520_vm14, %v4507_v54, %v4548_v36  ;;  %6249 = vmatpush3.bf16.msra.mxu0 %v7249_v45  ;;  %v7220_v54 = vld [vmem:[%s9429_s4 + $0xf8] ss:$12 sps:$4 sm:$0xff]   ;;  %v7222_v36 = vld [vmem:[%s9429_s4 + $0x110] ss:$12 sps:$4 sm:$0xff]  }
 0x2f1   : > { %5254 = vmatpush1.bf16.msra.mxu1 %v7162_v41  ;;  %6250 = vmatprep.subr.bf16.mxu0 %v7250_v3  ;;  %v4554_v7 = vpack.c.b16 %v9164_v39, %v9164_v39  ;;  %v7219_v41 = vld [vmem:[%s9429_s4 + $0x20] ss:$12 sps:$4 sm:$0xff]   ;;  %v7224_v39 = vld [vmem:[%s9429_s4 + $0x128] ss:$12 sps:$4 sm:$0xff]   ;;  %v7254_v55 = vld [vmem:[%s9431_s6 + $0x78] sm:$0xff]  }
 0x2f2   : > { %5255 = vmatprep.subr.bf16.mxu1 %v7167_v27  ;;  %v7221_v27 = vld [vmem:[%s9429_s4 + $0x38] ss:$12 sps:$4 sm:$0xff]   ;;  %v7258_v45 = vld [vmem:[%s9431_s6 + $0x90] sm:$0xff]  }
 0x2f3   : > { %v7255_v18 = vld [vmem:[%s9431_s6 + $0x38] sm:$0xff]  }
 0x2f4   : > { %6251 = vmatpush3.bf16.msra.mxu0 %v7251_v61  ;;  %v7259_v3 = vld [vmem:[%s9431_s6 + $0x98] sm:$0xff]  }
 0x2f5   : > { %5256 = vmatpush1.bf16.msra.mxu1 %v7165_v56  ;;  %v7225_v56 = vld [vmem:[%s9429_s4 + $0x68] ss:$12 sps:$4 sm:$0xff]  }
 0x2f6   : > { %5257 = vmatprep.subr.bf16.mxu1 %v7170_v4  ;;  %v7226_v4 = vld [vmem:[%s9429_s4 + $0x140] ss:$12 sps:$4 sm:$0xff]  }
 0x2f9   : > { %5258 = vmatpush1.bf16.msra.mxu1 %v7168_v34  ;;  %v7227_v34 = vld [vmem:[%s9429_s4 + $0x80] ss:$12 sps:$4 sm:$0xff]  }
 0x2fa   : > { %5259 = vmatprep.subr.bf16.mxu1 %v7173_v20  ;;  %v7228_v20 = vld [vmem:[%s9429_s4 + $0x158] ss:$12 sps:$4 sm:$0xff]  }
 0x2fd   : > { %5260 = vmatpush1.bf16.msra.mxu1 %v7171_v43  ;;  %v7232_v43 = vld [vmem:[%s9429_s4 + $0x308] ss:$12 sps:$4 sm:$0xff]  }
 0x2fe   : > { %5261 = vmatprep.subr.bf16.mxu1 %v7176_v58  ;;  %v7287_v58 = vmov 0.0  }
 0x301   : > { %5262 = vmatpush1.bf16.msra.mxu1 %v7174_v24  ;;  %v7236_v24 = vld [vmem:[%s9429_s4 + $0x368] ss:$12 sps:$4 sm:$0xff]  }
 0x302   : > { %5263 = vmatprep.subr.bf16.mxu1 %v7179_v10  ;;  %v7237_v10 = vld [vmem:[%s9429_s4 + $0x380] ss:$12 sps:$4 sm:$0xff]  }
 0x305   : > { %5264 = vmatpush1.bf16.msra.mxu1 %v7177_v30  ;;  %v7252_v30 = vld [vmem:[%s9431_s6 + $0x70] sm:$0xff]  }
 0x306   : > { %5265 = vmatprep.subr.bf16.mxu1 %v7182_v0  ;;  %v7253_v0 = vld [vmem:[%s9431_s6 + $0x30] sm:$0xff]   ;;  %6252 = vmatprep.subr.bf16.mxu0 %v7252_v30 }
 0x307   : > { %6253 = vmatpush3.bf16.msra.mxu0 %v7253_v0 }
 0x308   : > { %6254 = vmatprep.subr.bf16.mxu0 %v7254_v55 }
 0x309   : > { %5266 = vmatpush1.bf16.msra.mxu1 %v7180_v29  ;;  %v7256_v29 = vld [vmem:[%s9431_s6 + $0x80] sm:$0xff]  }
 0x30a   : > { %5267 = vmatprep.subr.bf16.mxu1 %v7185_v51  ;;  %v7257_v51 = vld [vmem:[%s9431_s6 + $0x88] sm:$0xff]  }
 0x30b   : > { %6255 = vmatpush3.bf16.msra.mxu0 %v7255_v18 }
 0x30d   : > { %5268 = vmatpush1.bf16.msra.mxu1 %v7183_v16  ;;  %v4411_v16 = vld [vmem:[%s9430_s5] sm:$0x7] }
 0x30e   : > { %5269 = vmatprep.subr.bf16.mxu1 %v7188_v37  ;;  %v4416_v37 = vrot.slane %v4411_v16, %v8871_v46  ;;  %v4420_v61 = vrot.slane %v4411_v16, %v8874_v1 }
 0x311   : > { %5270 = vmatpush1.bf16.msra.mxu1 %v7186_v6 }
 0x312   : > { %5271 = vmatprep.subr.bf16.mxu1 %v7191_v23 }
 0x315   : > { %5272 = vmatpush1.bf16.msra.mxu1 %v7189_v57 }
 0x316   : > { %5282 = vmatprep.subr.bf16.mxu1 %v7194_v48 }
 0x318   : > { %5274 = vmatmul.mubr.bf16.vlgmr.msra.gmra.mrb[32].mxu1 %v8851_v33  ;;  %v7203_v33 = vld [vmem:[%s9429_s4 + $0x34c] ss:$12 sps:$4 sm:$0xff]  }
 0x319   : > { %5283 = vmatpush1.bf16.msra.mxu1 %v7192_v25  ;;  %5314 = vmatprep.mubr.bf16.mxu1 %v7286_v2  ;;  %v7201_v2 = vld [vmem:[%s9429_s4 + $0x348] ss:$12 sps:$4 sm:$0xff]  }
 0x31a   : > { %5284 = vmatprep.subr.bf16.mxu1 %v7197_v42 }
 0x31d   : > { %5285 = vmatpush1.bf16.msra.mxu1 %v7195_v38 }
 0x31e   : > { %5286 = vmatprep.subr.bf16.mxu1 %v7200_v26 }
 0x321   : > { %5287 = vmatpush1.bf16.msra.mxu1 %v7198_v8 }
 0x322   : > { %5288 = vmatprep.subr.bf16.mxu1 %v7203_v33 }
 0x325   : > { %5289 = vmatpush1.bf16.msra.mxu1 %v7201_v2  ;;  %v6225_v9 = vpop.f32.mrb[48].mxu0 }
 0x326   : > { %5290 = vmatprep.subr.bf16.mxu1 %v7206_v53  ;;  %v6226_v32 = vpop.f32.mrb[49].mxu0  ;;  %v4424_v53 = vrot.slane %v4411_v16, %v8576_v50 }
 0x327   : > { %v9288_v40 = vadd.f32 %v6226_v32, %v6225_v9  ;;  %v6228_v5 = vpop.f32.mrb[50].mxu0 }
 0x328   : > { %v6229_v28 = vpop.f32.mrb[51].mxu0 }
 0x329   : > { %5291 = vmatpush1.bf16.msra.mxu1 %v7204_v59 }
 0x32a   : > { %5292 = vmatprep.subr.bf16.mxu1 %v7209_v11 }
 0x32d   : > { %5293 = vmatpush1.bf16.msra.mxu1 %v7207_v60 }
 0x32e   : > { %5294 = vmatprep.subr.bf16.mxu1 %v7212_v44 }
 0x331   : > { %5295 = vmatpush1.bf16.msra.mxu1 %v7210_v35 }
 0x332   : > { %5296 = vmatprep.subr.bf16.mxu1 %v7215_v13 }
 0x335   : > { %5297 = vmatpush1.bf16.msra.mxu1 %v7213_v19 }
 0x336   : > { %6187 = vmatprep.subr.bf16.mxu1 %v7216_v31 }
 0x338   : > { %5315 = vmatmul.mubr.bf16.vlgmr.msra.gmra.mrb[32].mxu1 %v4554_v7 }
 0x339   : > { %6188 = vmatpush3.bf16.msra.mxu1 %v7217_v14  ;;  %5355 = vmatprep.mubr.bf16.mxu1 %v9092_v49  ;;  %v7223_v49 = vld [vmem:[%s9429_s4 + $0x50] ss:$12 sps:$4 sm:$0xff]  }
 0x33a   : > { %6189 = vmatprep.subr.bf16.mxu1 %v7218_v15 }
 0x33d   : > { %6190 = vmatpush3.bf16.msra.mxu1 %v7219_v41 }
 0x33e   : > { %6191 = vmatprep.subr.bf16.mxu1 %v7220_v54 }
 0x341   : > { %6192 = vmatpush3.bf16.msra.mxu1 %v7221_v27 }
 0x342   : > { %6193 = vmatprep.subr.bf16.mxu1 %v7222_v36 }
 0x345   : > { %6194 = vmatpush3.bf16.msra.mxu1 %v7223_v49 }
 0x346   : > { %6195 = vmatprep.subr.bf16.mxu1 %v7224_v39 }
 0x349   : > { %6196 = vmatpush3.bf16.msra.mxu1 %v7225_v56 }
 0x34a   : > { %6197 = vmatprep.subr.bf16.mxu1 %v7226_v4 }
 0x34d   : > { %6198 = vmatpush3.bf16.msra.mxu1 %v7227_v34 }
 0x34e   : > { %6199 = vmatprep.subr.bf16.mxu1 %v7228_v20 }
 0x351   : > { %6200 = vmatpush3.bf16.msra.mxu1 %v7229_v52 }
 0x352   : > { %6201 = vmatprep.subr.bf16.mxu1 %v7230_v22 }
 0x355   : > { %6202 = vmatpush3.bf16.msra.mxu1 %v7231_v63 }
 0x356   : > { %6427 = vmatprep.subr.bf16.mxu1 %v7287_v58 }
 0x358   : > { %5356 = vmatmul.mubr.bf16.vlgmr.msra.gmra.mrb[36].mxu1 %v9104_v21  ;;  %v7235_v21 = vld [vmem:[%s9429_s4 + $0x350] ss:$12 sps:$4 sm:$0xff]  }
 0x359   : > { %6428 = vmatpush3.bf16.msra.mxu1 %v7232_v43  ;;  %6443 = vmatprep.mubr.msk.bf16.mxu1 %vm7288_vm5, %v7287_v58 }
 0x35a   : > { %6429 = vmatprep.subr.bf16.mxu1 %v7287_v58 }
 0x35d   : > { %6430 = vmatpush3.bf16.msra.mxu1 %v7233_v17 }
 0x35e   : > { %6431 = vmatprep.subr.bf16.mxu1 %v7287_v58 }
 0x361   : > { %6432 = vmatpush3.bf16.msra.mxu1 %v7234_v62 }
 0x362   : > { %6433 = vmatprep.subr.bf16.mxu1 %v7287_v58 }
 0x365   : > { %6434 = vmatpush3.bf16.msra.mxu1 %v7235_v21 }
 0x366   : > { %6435 = vmatprep.subr.bf16.mxu1 %v7287_v58 }
 0x369   : > { %6436 = vmatpush3.bf16.msra.mxu1 %v7236_v24 }
 0x36a   : > { %6437 = vmatprep.subr.bf16.mxu1 %v7287_v58 }
 0x36d   : > { %6438 = vmatpush3.bf16.msra.mxu1 %v7237_v10 }
 0x36e   : > { %6439 = vmatprep.subr.bf16.mxu1 %v7287_v58 }
 0x371   : > { %6440 = vmatpush3.bf16.msra.mxu1 %v7238_v47 }
 0x372   : > { %6441 = vmatprep.subr.bf16.mxu1 %v7287_v58 }
 0x375   : > { %6442 = vmatpush3.bf16.msra.mxu1 %v7239_v12 }
 0x376   : > { %6447 = vmatprep.subr.bf16.mxu1 %v7287_v58 }
 0x378   : > { %6444 = vmatmul.mubr.bf16.vlgmr.msra.gmra.mrb[40].mxu1 %v4554_v7 }
 0x379   : > { %6455 = vmatprep.mubr.msk.bf16.mxu1 %vm7288_vm5, %v7287_v58  ;;  %6448 = vmatpush3.bf16.msra.mxu1 %v7256_v29 }
 0x37a   : > { %6449 = vmatprep.subr.bf16.mxu1 %v7287_v58 }
 0x37d   : > { %6450 = vmatpush3.bf16.msra.mxu1 %v7257_v51 }
 0x37e   : > { %6451 = vmatprep.subr.bf16.mxu1 %v7287_v58 }
 0x381   : > { %6452 = vmatpush3.bf16.msra.mxu1 %v7258_v45 }
 0x382   : > { %6453 = vmatprep.subr.bf16.mxu1 %v7287_v58 }
 0x385   : > { %6454 = vmatpush3.bf16.msra.mxu1 %v7259_v3 }
 0x40b   : > { %v5316_v6 = vpop.f32.mrb[32].mxu1 }
 0x40c   : > { %v6459_v23 = vadd.f32 %v5316_v6, %v4416_v37  ;;  %v5318_v57 = vpop.f32.mrb[33].mxu1 }
 0x40d   : > { %v6460_v48 = vadd.f32 %v5318_v57, %v4420_v61  ;;  %v5320_v25 = vpop.f32.mrb[34].mxu1 }
 0x40e   : > { %v5443_v42 = vmax.f32 %v6459_v23, 0.0  ;;  %v5321_v38 = vpop.f32.mrb[35].mxu1 }
 0x40f   : > { %v5444_v26 = vmax.f32 %v6460_v48, 0.0 }
 0x410   : > { %v5446_v33 = vpack.c.bf16 %v5443_v42, %v5443_v42 }
 0x411   : > { %v5447_v8 = vpack.c.bf16 %v5444_v26, %v5444_v26 }
 0x413   : > { %5652 = vmatprep.mubr.bf16.mxu0 %v5447_v8 }
 0x414   : > { %5653 = vmatmul.mubr.bf16.vlgmr.msra.gmra.mrb[52].mxu0 %v5446_v33 }
 0x42b   : > { %v6203_v2 = vpop.f32.mrb[36].mxu1 }
 0x42c   : > { %v6204_v59 = vpop.f32.mrb[37].mxu1 }
 0x42d   : > { %v6205_v9 = vadd.f32 %v6204_v59, %v6203_v2  ;;  %v6206_v46 = vpop.f32.mrb[38].mxu1 }
 0x42e   : > { %v6207_v11 = vpop.f32.mrb[39].mxu1 }
 0x42f   : > { %v5358_v1 = vadd.f32 %v6205_v9, %v4424_v53 }
 0x431   : > { %v5398_v32 = vadd.f32 %v9288_v40, %v5358_v1  ;;  %v6083_v40 = vld [vmem:[%s9432_s7] ss:$0 sm:$0xff] }
 0x44b   : > { %v5437_v5 = vpop.f32.mrb[40].mxu1 }
 0x44c   : > { %v5438_v28 = vadd.f32 %v5437_v5, %v5398_v32  ;;  %v6445_v60 = vpop.f32.mrb[41].mxu1 }
 0x44d   : > { %v5440_v44 = vpop.f32.mrb[42].mxu1 }
 0x44e   : > { %v5445_v35 = vmax.f32 %v5438_v28, 0.0  ;;  %v6446_v13 = vpop.f32.mrb[43].mxu1 }
 0x450   : > { %v5448_v19 = vpack.c.bf16 %v5445_v35, %v5445_v35 }
 0x452   : > { %6456 = vmatmul.mubr.msk.bf16.vlgmr.msra.gmra.mrb[44].mxu1 %vm5616_vm6, %v5448_v19 }
 0x4e7   : > { %v6256_v31 = vpop.f32.mrb[52].mxu0 }
 0x4e8   : > { %v6257_v50 = vpop.f32.mrb[53].mxu0 }
 0x4e9   : > { %v6258_v14 = vadd.f32 %v6257_v50, %v6256_v31  ;;  %v6259_v7 = vpop.f32.mrb[54].mxu0 }
 0x4ea   : > { %v6260_v15 = vpop.f32.mrb[55].mxu0 }
 0x4eb   : > { %v5655_v41 = vadd.f32 %v6258_v14, %v6083_v40 }
 0x525   : > { %v5694_v54 = vpop.f32.mrb[44].mxu1 }
 0x526   : > { %v5695_v27 = vadd.f32 %v5694_v54, %v5655_v41  ;;  %v6457_v36 = vpop.f32.mrb[45].mxu1 }
 0x527   : > { %v5697_v49 = vpop.f32.mrb[46].mxu1 }
 0x528   : > { %5701 = vst.msk [vmem:[%s305_s21] sm:$0xff] %vm5700_vm7, %v5695_v27  ;;  %v6458_v39 = vpop.f32.mrb[47].mxu1 }
 0x529 PF: > { %s18_s27 = sadd.s32 1, %s7284_s27  }
 0x52a   : > { %p15_p5 = scmp.ge.s32.totalorder %s18_s27, 4  }
 0x52c   :  { %17 = sbr.rel (!%p15_p5) target bundleno = 1 (0x1), region = 82 }

</bundles_post_ra>
